<compile_context>
chip_gen: v7x
topology: tpu7x:2x2x1
jax: 0.10.0
libtpu: 0.0.40
codegen_flags: <defaults>
</compile_context>

<pallas_src>
import jax
import jax.numpy as jnp
from jax.experimental import pallas as pl
from jax.experimental.pallas import tpu as pltpu

EMBED_DIM = 384          # feature_size for 'HIPT' (ViT-small)
PROJ_DIM = 128           # latent_embedding_dimension
PATCH = 16
CHANNELS = 3
LN_EPS_BACKBONE = 1e-6   # partial(nn.LayerNorm, eps=1e-6) in vit_small
LN_EPS_HEAD = 1e-5       # nn.LayerNorm default in Projection_Head


def _pick_batch_tile(b):
    # Largest tile that (a) keeps the second-minor output block dim a multiple
    # of 8 and (b) leaves >= 2 iterations on the parallel grid axis so both v7x
    # TensorCores get work.  Falling back to the full batch is always legal
    # (block dim == full array dim).
    for cand in (128, 64, 32, 16, 8):
        if b % cand == 0 and b // cand >= 2:
            return cand
    return b


def _pick_row_block(nh, tb, c, w):
    # Patch-rows per grid step.  R > 1 cuts the accumulator read-modify-write
    # traffic and the ~0.35us/step fixed cost by R, bounded so the (double-
    # buffered) f32 input block stays <= 4 MiB of VMEM per buffer.
    for cand in (4, 2):
        if nh % cand == 0 and tb * c * cand * PATCH * w * 4 <= (4 << 20):
            return cand
    return 1


def _layer_norm(x, gamma, beta, eps):
    mu = jnp.mean(x, axis=-1, keepdims=True)
    var = jnp.mean((x - mu) ** 2, axis=-1, keepdims=True)
    return (x - mu) * jax.lax.rsqrt(var + eps) * gamma + beta


def _head_math(feat, w1, b1, w2, b2, gamma, beta):
    # Projection_Head: Linear -> GELU(exact erf) -> Linear -> residual -> LayerNorm
    proj = jnp.dot(feat.astype(jnp.bfloat16), w1,
                   preferred_element_type=jnp.float32) + b1
    h = jax.nn.gelu(proj, approximate=False)
    y = jnp.dot(h.astype(jnp.bfloat16), w2,
                preferred_element_type=jnp.float32) + b2
    y = y + proj
    return _layer_norm(y, gamma, beta, LN_EPS_HEAD)


# ----------------------------------------------------------------------------
# Backbone kernel: NCHW patch-row blocks -> pooled column sums (VMEM acc)
# -> patch-embed matmul + bias + LayerNorm  [+ fused projection head]
# ----------------------------------------------------------------------------
def _make_backbone_kernel(inv_num_patches, fused_head):
    def kernel(x_ref, wf_ref, pb_ref, g_ref, be_ref, *rest):
        if fused_head:
            (w1_ref, b1_ref, w2_ref, b2_ref, hg_ref, hb_ref,
             feat_ref, proj_ref, acc_ref) = rest
        else:
            feat_ref, acc_ref = rest

        r = pl.program_id(1)
        tb, c, rp, w = x_ref.shape          # (TB, C, R*PATCH, W)
        rows = rp // PATCH

        @pl.when(r == 0)
        def _init():
            acc_ref[...] = jnp.zeros_like(acc_ref)

        # Sum the R patch-rows of this block (static, tile-aligned sublane
        # slices of the ref), then a single accumulator RMW.
        s = x_ref[:, :, 0:PATCH, :].astype(jnp.float32)
        for rr in range(1, rows):
            s = s + x_ref[:, :, rr * PATCH:(rr + 1) * PATCH, :].astype(jnp.float32)
        acc_ref[...] += s

        @pl.when(r == pl.num_programs(1) - 1)
        def _finalize():
            d = feat_ref.shape[-1]
            _, _, p, _ = acc_ref.shape
            emb = jnp.zeros((tb, d), jnp.float32)
            # Mean-pool-first patch embedding: contract each (c, kh) column-sum
            # slab with its nw-tiled weight slab.  Ref-level slices keep this a
            # strided load (no value-level sublane repack); W is already the
            # lane/contraction axis so no reshape is needed.  Runs once per
            # batch tile -> negligible next to the per-step HBM image read.
            for ci in range(c):
                for kh in range(p):
                    slab = acc_ref[:, ci, kh, :] * inv_num_patches
                    emb = emb + jnp.dot(slab.astype(jnp.bfloat16),
                                        wf_ref[ci * p + kh],
                                        preferred_element_type=jnp.float32)
            emb = emb + pb_ref[...]                      # bias added post-pool
            feat = _layer_norm(emb, g_ref[...], be_ref[...], LN_EPS_BACKBONE)
            feat_ref[...] = feat
            if fused_head:
                proj_ref[...] = _head_math(feat, w1_ref[...], b1_ref[...],
                                           w2_ref[...], b2_ref[...],
                                           hg_ref[...], hb_ref[...])
    return kernel


def backbone_forward(x, wfold, pe_b, bb_gamma, bb_beta, head_params=None):
    B, C, H, W = x.shape
    assert C == CHANNELS and H % PATCH == 0 and W % PATCH == 0
    nh = H // PATCH
    nw = W // PATCH
    cp = C * PATCH
    d = wfold.shape[-1]
    tb = _pick_batch_tile(B)
    R = _pick_row_block(nh, tb, C, W)
    fused = head_params is not None

    kernel = _make_backbone_kernel(1.0 / float(nh * nw), fused)

    const2 = lambda i, r: (0, 0)
    in_specs = [
        pl.BlockSpec((tb, C, R * PATCH, W), lambda i, r: (i, 0, r, 0)),  # image rows
        pl.BlockSpec((cp, W, d), lambda i, r: (0, 0, 0)),                # resident W
        pl.BlockSpec((1, d), const2),                                    # bias
        pl.BlockSpec((1, d), const2),                                    # ln gamma
        pl.BlockSpec((1, d), const2),                                    # ln beta
    ]
    args = [x, wfold, pe_b, bb_gamma, bb_beta]
    out_shape = jax.ShapeDtypeStruct((B, d), jnp.float32)
    out_specs = pl.BlockSpec((tb, d), lambda i, r: (i, 0))
    pj = 0

    if fused:
        w1, b1, w2, b2, hg, hb = head_params
        pj = w1.shape[-1]
        in_specs += [pl.BlockSpec(prm.shape, const2)
                     for prm in (w1, b1, w2, b2, hg, hb)]
        args += [w1, b1, w2, b2, hg, hb]
        out_shape = (out_shape, jax.ShapeDtypeStruct((B, pj), jnp.float32))
        out_specs = (out_specs, pl.BlockSpec((tb, pj), lambda i, r: (i, 0)))

    # Explicit VMEM budget: double-buffered input block + (conservatively
    # double-buffered) resident bf16 weight + f32 accumulator + outputs + consts.
    x_bytes = x.dtype.itemsize
    est = (2 * tb * C * R * PATCH * W * x_bytes      # input tiles (x2 buffers)
           + 2 * cp * W * d * 2                      # nw-tiled patch-embed weight
           + tb * C * PATCH * W * 4                  # f32 accumulator scratch
           + 2 * tb * d * 4 + 2 * tb * max(pj, 1) * 4
           + 8 * d * 4 + (d * PROJ_DIM + PROJ_DIM * PROJ_DIM) * 2 + 8 * PROJ_DIM * 4)
    vmem_limit = min(int(est * 1.3) + (2 << 20), 56 << 20)   # <= 56 MiB for v7x

    return pl.pallas_call(
        kernel,
        out_shape=out_shape,
        grid=(B // tb, nh // R),
        in_specs=in_specs,
        out_specs=out_specs,
        scratch_shapes=[pltpu.VMEM((tb, C, PATCH, W), jnp.float32)],
        compiler_params=pltpu.CompilerParams(
            dimension_semantics=("parallel", "arbitrary"),
            vmem_limit_bytes=vmem_limit),
    )(*args)


# ----------------------------------------------------------------------------
# Standalone Projection_Head kernel (forward_head), tiled over batch
# ----------------------------------------------------------------------------
def _projection_head_kernel(x_ref, w1_ref, b1_ref, w2_ref, b2_ref,
                            g_ref, b_ref, out_ref):
    out_ref[...] = _head_math(x_ref[...], w1_ref[...], b1_ref[...],
                              w2_ref[...], b2_ref[...], g_ref[...], b_ref[...])


def projection_head_forward(x, w1, b1, w2, b2, gamma, beta):
    B, d = x.shape
    pj = w1.shape[-1]
    tb = _pick_batch_tile(B)
    const = lambda i: (0, 0)
    return pl.pallas_call(
        _projection_head_kernel,
        out_shape=jax.ShapeDtypeStruct((B, pj), jnp.float32),
        grid=(B // tb,),
        in_specs=[pl.BlockSpec((tb, d), lambda i: (i, 0)),
                  pl.BlockSpec(w1.shape, const), pl.BlockSpec(b1.shape, const),
                  pl.BlockSpec(w2.shape, const), pl.BlockSpec(b2.shape, const),
                  pl.BlockSpec(gamma.shape, const), pl.BlockSpec(beta.shape, const)],
        out_specs=pl.BlockSpec((tb, pj), lambda i: (i, 0)),
        compiler_params=pltpu.CompilerParams(dimension_semantics=("parallel",)),
    )(x, w1, b1, w2, b2, gamma, beta)


# ----------------------------------------------------------------------------
# ImageEncoder (JAX/Pallas)
# ----------------------------------------------------------------------------
class ImageEncoderPallas:
    def __init__(self, key, latent_embedding_dimension=PROJ_DIM):
        assert latent_embedding_dimension == PROJ_DIM
        self.feature_size = EMBED_DIM
        k = jax.random.split(key, 4)
        K = CHANNELS * PATCH * PATCH
        # Backbone patch-embed conv (embed_dim, C, P, P) as a (K, D) matmul,
        # stored as (C*P, P, D) bf16 for the MXU / resident VMEM weight.
        pe_w = 0.02 * jax.random.normal(k[0], (K, EMBED_DIM), jnp.float32)
        self.w3 = pe_w.reshape(CHANNELS * PATCH, PATCH, EMBED_DIM).astype(jnp.bfloat16)
        self.pe_b = jnp.zeros((1, EMBED_DIM), jnp.float32)
        self.bb_gamma = jnp.ones((1, EMBED_DIM), jnp.float32)
        self.bb_beta = jnp.zeros((1, EMBED_DIM), jnp.float32)
        # Projection_Head(384, latent_embedding_dimension): matmul weights bf16,
        # biases / LN params f32.
        self.w1 = (0.02 * jax.random.normal(k[1], (EMBED_DIM, PROJ_DIM))).astype(jnp.bfloat16)
        self.b1 = jnp.zeros((1, PROJ_DIM), jnp.float32)
        self.w2 = (0.02 * jax.random.normal(k[2], (PROJ_DIM, PROJ_DIM))).astype(jnp.bfloat16)
        self.b2 = jnp.zeros((1, PROJ_DIM), jnp.float32)
        self.ln_gamma = jnp.ones((1, PROJ_DIM), jnp.float32)
        self.ln_beta = jnp.zeros((1, PROJ_DIM), jnp.float32)
        # nw-tiled patch-embed weight, built once per image width and cached
        # (hoisted out of the per-call path per the perf review).
        self._wfold_cache = {}

    def _wfold(self, width):
        wf = self._wfold_cache.get(width)
        if wf is None:
            assert width % PATCH == 0
            nw = width // PATCH
            cp = CHANNELS * PATCH
            # wfold[k, nw_i*P + kw, :] == w3[k, kw, :]
            wf = jnp.broadcast_to(self.w3[:, None, :, :],
                                  (cp, nw, PATCH, EMBED_DIM)).reshape(cp, width, EMBED_DIM)
            wf = jax.block_until_ready(wf)
            self._wfold_cache[width] = wf
        return wf

    def _head_params(self):
        return (self.w1, self.b1, self.w2, self.b2, self.ln_gamma, self.ln_beta)

    def forward(self, images_tensor, retrieval_parallel=False):
        # No wrapper-side dtype cast: the f32 (or bf16) images are DMA'd straight
        # into the kernel, which up-casts to f32 for the accumulation.
        x = images_tensor
        if x.dtype not in (jnp.float32, jnp.bfloat16):
            x = x.astype(jnp.float32)
        wfold = self._wfold(x.shape[-1])
        if retrieval_parallel:
            feat, projected = backbone_forward(
                x, wfold, self.pe_b, self.bb_gamma, self.bb_beta,
                head_params=self._head_params())
            return feat, projected
        return backbone_forward(x, wfold, self.pe_b, self.bb_gamma, self.bb_beta)

    def forward_head(self, x):
        return projection_head_forward(x, *self._head_params())


if __name__ == "__main__":
    key = jax.random.PRNGKey(0)
    pkey, xkey = jax.random.split(key)
    encoder = ImageEncoderPallas(pkey, latent_embedding_dimension=PROJ_DIM)

    # Small RGB images, NCHW like the PyTorch module.
    x = jax.random.normal(xkey, (2, 3, 32, 32), dtype=jnp.float32)

    feats_only = encoder.forward(x)                                  # default path
    feats, projected = encoder.forward(x, retrieval_parallel=True)   # fused head path
    head_out = encoder.forward_head(feats)                           # forward_head

    jax.block_until_ready((feats_only, feats, projected, head_out))

    assert feats_only.shape == (2, EMBED_DIM)
    assert feats.shape == (2, EMBED_DIM)
    assert projected.shape == (2, PROJ_DIM)
    assert head_out.shape == (2, PROJ_DIM)
    print("KERNEL_OK")
</pallas_src>

<mosaic_0001>
module attributes {stable_mosaic.version = 11 : i64} {
  func.func @kernel(%arg0: i32, %arg1: i32, %arg2: memref<2x3x32x32xf32, #tpu.memory_space<vmem>>, %arg3: memref<48x32x384xbf16, #tpu.memory_space<vmem>>, %arg4: memref<1x384xf32, #tpu.memory_space<vmem>>, %arg5: memref<1x384xf32, #tpu.memory_space<vmem>>, %arg6: memref<1x384xf32, #tpu.memory_space<vmem>>, %arg7: memref<2x384xf32, #tpu.memory_space<vmem>>, %arg8: memref<2x3x16x32xf32, #tpu.memory_space<vmem>>) attributes {dimension_semantics = [#tpu.dimension_semantics<parallel>, #tpu.dimension_semantics<arbitrary>], iteration_bounds = array<i64: 1, 1>, scalar_prefetch = 0 : i64, scratch_operands = 1 : i64, tpu.core_type = #tpu.core_type<tc>, window_params = [{transform_indices = @transform_0, window_bounds = array<i64: 2, 3, 32, 32>}, {pipeline_mode = #tpu.pipeline_mode<synchronous>, transform_indices = @transform_1, window_bounds = array<i64: 48, 32, 384>}, {pipeline_mode = #tpu.pipeline_mode<synchronous>, transform_indices = @transform_2, window_bounds = array<i64: 1, 384>}, {pipeline_mode = #tpu.pipeline_mode<synchronous>, transform_indices = @transform_3, window_bounds = array<i64: 1, 384>}, {pipeline_mode = #tpu.pipeline_mode<synchronous>, transform_indices = @transform_4, window_bounds = array<i64: 1, 384>}, {transform_indices = @transform_5, window_bounds = array<i64: 2, 384>}]} {
    %c0_i32 = arith.constant 0 : i32
    %0 = arith.cmpi eq, %arg1, %c0_i32 : i32
    %1 = arith.extui %0 : i1 to i32
    %c0_i32_0 = arith.constant 0 : i32
    %2 = arith.cmpi ne, %1, %c0_i32_0 : i32
    scf.if %2 {
      %cst = arith.constant 0.000000e+00 : f32
      %12 = vector.broadcast %cst : f32 to vector<2x3x16x32xf32>
      %c0_17 = arith.constant 0 : index
      %c0_18 = arith.constant 0 : index
      %c0_19 = arith.constant 0 : index
      %c0_20 = arith.constant 0 : index
      %13 = vector.load %arg8[%c0_17, %c0_18, %c0_19, %c0_20] : memref<2x3x16x32xf32, #tpu.memory_space<vmem>>, vector<2x3x16x32xf32>
      tpu.vector_store %arg8[%c0_17, %c0_18, %c0_19, %c0_20], %12 {strides = array<i32>} : memref<2x3x16x32xf32, #tpu.memory_space<vmem>>, vector<2x3x16x32xf32>,
    } else {
    }
    %c0 = arith.constant 0 : index
    %c0_1 = arith.constant 0 : index
    %c0_2 = arith.constant 0 : index
    %c0_3 = arith.constant 0 : index
    %3 = vector.load %arg2[%c0, %c0_1, %c0_2, %c0_3] : memref<2x3x32x32xf32, #tpu.memory_space<vmem>>, vector<2x3x16x32xf32>
    %c0_4 = arith.constant 0 : index
    %c0_5 = arith.constant 0 : index
    %c16 = arith.constant 16 : index
    %c0_6 = arith.constant 0 : index
    %4 = vector.load %arg2[%c0_4, %c0_5, %c16, %c0_6] : memref<2x3x32x32xf32, #tpu.memory_space<vmem>>, vector<2x3x16x32xf32>
    %5 = arith.addf %3, %4 : vector<2x3x16x32xf32>
    %c0_7 = arith.constant 0 : index
    %c0_8 = arith.constant 0 : index
    %c0_9 = arith.constant 0 : index
    %c0_10 = arith.constant 0 : index
    %6 = vector.load %arg8[%c0_7, %c0_8, %c0_9, %c0_10] : memref<2x3x16x32xf32, #tpu.memory_space<vmem>>, vector<2x3x16x32xf32>
    %7 = arith.addf %6, %5 : vector<2x3x16x32xf32>
    %c0_11 = arith.constant 0 : index
    %c0_12 = arith.constant 0 : index
    %c0_13 = arith.constant 0 : index
    %c0_14 = arith.constant 0 : index
    %8 = vector.load %arg8[%c0_11, %c0_12, %c0_13, %c0_14] : memref<2x3x16x32xf32, #tpu.memory_space<vmem>>, vector<2x3x16x32xf32>
    tpu.vector_store %arg8[%c0_11, %c0_12, %c0_13, %c0_14], %7 {strides = array<i32>} : memref<2x3x16x32xf32, #tpu.memory_space<vmem>>, vector<2x3x16x32xf32>,
    %c0_i32_15 = arith.constant 0 : i32
    %9 = arith.cmpi eq, %arg1, %c0_i32_15 : i32
    %10 = arith.extui %9 : i1 to i32
    %c0_i32_16 = arith.constant 0 : i32
    %11 = arith.cmpi ne, %10, %c0_i32_16 : i32
    scf.if %11 {
      %cst = arith.constant 0.000000e+00 : f32
      %12 = vector.broadcast %cst : f32 to vector<2x384xf32>
      %c0_17 = arith.constant 0 : index
      %c0_18 = arith.constant 0 : index
      %c0_19 = arith.constant 0 : index
      %c0_20 = arith.constant 0 : index
      %13 = vector.load %arg8[%c0_17, %c0_18, %c0_19, %c0_20] : memref<2x3x16x32xf32, #tpu.memory_space<vmem>>, vector<2x1x1x32xf32>
      %14 = vector.shape_cast %13 : vector<2x1x1x32xf32> to vector<2x32xf32>
      %cst_21 = arith.constant 2.500000e-01 : f32
      %15 = vector.broadcast %cst_21 : f32 to vector<2x32xf32>
      %16 = arith.mulf %14, %15 : vector<2x32xf32>
      %17 = arith.truncf %16 : vector<2x32xf32> to vector<2x32xbf16>
      %c0_22 = arith.constant 0 : index
      %c0_23 = arith.constant 0 : index
      %c0_24 = arith.constant 0 : index
      %18 = vector.load %arg3[%c0_22, %c0_23, %c0_24] : memref<48x32x384xbf16, #tpu.memory_space<vmem>>, vector<1x32x384xbf16>
      %19 = vector.shape_cast %18 : vector<1x32x384xbf16> to vector<32x384xbf16>
      %cst_25 = arith.constant dense<0.000000e+00> : vector<2x384xf32>
      %20 = tpu.matmul %17, %19, %cst_25 {dimension_numbers = #tpu.dot_dimension_numbers<[1], [0], [0], [1], [0, 0, 1, 1], [], []>} : vector<2x32xbf16>, vector<32x384xbf16>, vector<2x384xf32> -> vector<2x384xf32>
      %21 = arith.addf %12, %20 : vector<2x384xf32>
      %c0_26 = arith.constant 0 : index
      %c0_27 = arith.constant 0 : index
      %c1 = arith.constant 1 : index
      %c0_28 = arith.constant 0 : index
      %22 = vector.load %arg8[%c0_26, %c0_27, %c1, %c0_28] : memref<2x3x16x32xf32, #tpu.memory_space<vmem>>, vector<2x1x1x32xf32>
      %23 = vector.shape_cast %22 : vector<2x1x1x32xf32> to vector<2x32xf32>
      %cst_29 = arith.constant 2.500000e-01 : f32
      %24 = vector.broadcast %cst_29 : f32 to vector<2x32xf32>
      %25 = arith.mulf %23, %24 : vector<2x32xf32>
      %26 = arith.truncf %25 : vector<2x32xf32> to vector<2x32xbf16>
      %c1_30 = arith.constant 1 : index
      %c0_31 = arith.constant 0 : index
      %c0_32 = arith.constant 0 : index
      %27 = vector.load %arg3[%c1_30, %c0_31, %c0_32] : memref<48x32x384xbf16, #tpu.memory_space<vmem>>, vector<1x32x384xbf16>
      %28 = vector.shape_cast %27 : vector<1x32x384xbf16> to vector<32x384xbf16>
      %cst_33 = arith.constant dense<0.000000e+00> : vector<2x384xf32>
      %29 = tpu.matmul %26, %28, %cst_33 {dimension_numbers = #tpu.dot_dimension_numbers<[1], [0], [0], [1], [0, 0, 1, 1], [], []>} : vector<2x32xbf16>, vector<32x384xbf16>, vector<2x384xf32> -> vector<2x384xf32>
      %30 = arith.addf %21, %29 : vector<2x384xf32>
      %c0_34 = arith.constant 0 : index
      %c0_35 = arith.constant 0 : index
      %c2 = arith.constant 2 : index
      %c0_36 = arith.constant 0 : index
      %31 = vector.load %arg8[%c0_34, %c0_35, %c2, %c0_36] : memref<2x3x16x32xf32, #tpu.memory_space<vmem>>, vector<2x1x1x32xf32>
      %32 = vector.shape_cast %31 : vector<2x1x1x32xf32> to vector<2x32xf32>
      %cst_37 = arith.constant 2.500000e-01 : f32
      %33 = vector.broadcast %cst_37 : f32 to vector<2x32xf32>
      %34 = arith.mulf %32, %33 : vector<2x32xf32>
      %35 = arith.truncf %34 : vector<2x32xf32> to vector<2x32xbf16>
      %c2_38 = arith.constant 2 : index
      %c0_39 = arith.constant 0 : index
      %c0_40 = arith.constant 0 : index
      %36 = vector.load %arg3[%c2_38, %c0_39, %c0_40] : memref<48x32x384xbf16, #tpu.memory_space<vmem>>, vector<1x32x384xbf16>
      %37 = vector.shape_cast %36 : vector<1x32x384xbf16> to vector<32x384xbf16>
      %cst_41 = arith.constant dense<0.000000e+00> : vector<2x384xf32>
      %38 = tpu.matmul %35, %37, %cst_41 {dimension_numbers = #tpu.dot_dimension_numbers<[1], [0], [0], [1], [0, 0, 1, 1], [], []>} : vector<2x32xbf16>, vector<32x384xbf16>, vector<2x384xf32> -> vector<2x384xf32>
      %39 = arith.addf %30, %38 : vector<2x384xf32>
      %c0_42 = arith.constant 0 : index
      %c0_43 = arith.constant 0 : index
      %c3 = arith.constant 3 : index
      %c0_44 = arith.constant 0 : index
      %40 = vector.load %arg8[%c0_42, %c0_43, %c3, %c0_44] : memref<2x3x16x32xf32, #tpu.memory_space<vmem>>, vector<2x1x1x32xf32>
      %41 = vector.shape_cast %40 : vector<2x1x1x32xf32> to vector<2x32xf32>
      %cst_45 = arith.constant 2.500000e-01 : f32
      %42 = vector.broadcast %cst_45 : f32 to vector<2x32xf32>
      %43 = arith.mulf %41, %42 : vector<2x32xf32>
      %44 = arith.truncf %43 : vector<2x32xf32> to vector<2x32xbf16>
      %c3_46 = arith.constant 3 : index
      %c0_47 = arith.constant 0 : index
      %c0_48 = arith.constant 0 : index
      %45 = vector.load %arg3[%c3_46, %c0_47, %c0_48] : memref<48x32x384xbf16, #tpu.memory_space<vmem>>, vector<1x32x384xbf16>
      %46 = vector.shape_cast %45 : vector<1x32x384xbf16> to vector<32x384xbf16>
      %cst_49 = arith.constant dense<0.000000e+00> : vector<2x384xf32>
      %47 = tpu.matmul %44, %46, %cst_49 {dimension_numbers = #tpu.dot_dimension_numbers<[1], [0], [0], [1], [0, 0, 1, 1], [], []>} : vector<2x32xbf16>, vector<32x384xbf16>, vector<2x384xf32> -> vector<2x384xf32>
      %48 = arith.addf %39, %47 : vector<2x384xf32>
      %c0_50 = arith.constant 0 : index
      %c0_51 = arith.constant 0 : index
      %c4 = arith.constant 4 : index
      %c0_52 = arith.constant 0 : index
      %49 = vector.load %arg8[%c0_50, %c0_51, %c4, %c0_52] : memref<2x3x16x32xf32, #tpu.memory_space<vmem>>, vector<2x1x1x32xf32>
      %50 = vector.shape_cast %49 : vector<2x1x1x32xf32> to vector<2x32xf32>
      %cst_53 = arith.constant 2.500000e-01 : f32
      %51 = vector.broadcast %cst_53 : f32 to vector<2x32xf32>
      %52 = arith.mulf %50, %51 : vector<2x32xf32>
      %53 = arith.truncf %52 : vector<2x32xf32> to vector<2x32xbf16>
      %c4_54 = arith.constant 4 : index
      %c0_55 = arith.constant 0 : index
      %c0_56 = arith.constant 0 : index
      %54 = vector.load %arg3[%c4_54, %c0_55, %c0_56] : memref<48x32x384xbf16, #tpu.memory_space<vmem>>, vector<1x32x384xbf16>
      %55 = vector.shape_cast %54 : vector<1x32x384xbf16> to vector<32x384xbf16>
      %cst_57 = arith.constant dense<0.000000e+00> : vector<2x384xf32>
      %56 = tpu.matmul %53, %55, %cst_57 {dimension_numbers = #tpu.dot_dimension_numbers<[1], [0], [0], [1], [0, 0, 1, 1], [], []>} : vector<2x32xbf16>, vector<32x384xbf16>, vector<2x384xf32> -> vector<2x384xf32>
      %57 = arith.addf %48, %56 : vector<2x384xf32>
      %c0_58 = arith.constant 0 : index
      %c0_59 = arith.constant 0 : index
      %c5 = arith.constant 5 : index
      %c0_60 = arith.constant 0 : index
      %58 = vector.load %arg8[%c0_58, %c0_59, %c5, %c0_60] : memref<2x3x16x32xf32, #tpu.memory_space<vmem>>, vector<2x1x1x32xf32>
      %59 = vector.shape_cast %58 : vector<2x1x1x32xf32> to vector<2x32xf32>
      %cst_61 = arith.constant 2.500000e-01 : f32
      %60 = vector.broadcast %cst_61 : f32 to vector<2x32xf32>
      %61 = arith.mulf %59, %60 : vector<2x32xf32>
      %62 = arith.truncf %61 : vector<2x32xf32> to vector<2x32xbf16>
      %c5_62 = arith.constant 5 : index
      %c0_63 = arith.constant 0 : index
      %c0_64 = arith.constant 0 : index
      %63 = vector.load %arg3[%c5_62, %c0_63, %c0_64] : memref<48x32x384xbf16, #tpu.memory_space<vmem>>, vector<1x32x384xbf16>
      %64 = vector.shape_cast %63 : vector<1x32x384xbf16> to vector<32x384xbf16>
      %cst_65 = arith.constant dense<0.000000e+00> : vector<2x384xf32>
      %65 = tpu.matmul %62, %64, %cst_65 {dimension_numbers = #tpu.dot_dimension_numbers<[1], [0], [0], [1], [0, 0, 1, 1], [], []>} : vector<2x32xbf16>, vector<32x384xbf16>, vector<2x384xf32> -> vector<2x384xf32>
      %66 = arith.addf %57, %65 : vector<2x384xf32>
      %c0_66 = arith.constant 0 : index
      %c0_67 = arith.constant 0 : index
      %c6 = arith.constant 6 : index
      %c0_68 = arith.constant 0 : index
      %67 = vector.load %arg8[%c0_66, %c0_67, %c6, %c0_68] : memref<2x3x16x32xf32, #tpu.memory_space<vmem>>, vector<2x1x1x32xf32>
      %68 = vector.shape_cast %67 : vector<2x1x1x32xf32> to vector<2x32xf32>
      %cst_69 = arith.constant 2.500000e-01 : f32
      %69 = vector.broadcast %cst_69 : f32 to vector<2x32xf32>
      %70 = arith.mulf %68, %69 : vector<2x32xf32>
      %71 = arith.truncf %70 : vector<2x32xf32> to vector<2x32xbf16>
      %c6_70 = arith.constant 6 : index
      %c0_71 = arith.constant 0 : index
      %c0_72 = arith.constant 0 : index
      %72 = vector.load %arg3[%c6_70, %c0_71, %c0_72] : memref<48x32x384xbf16, #tpu.memory_space<vmem>>, vector<1x32x384xbf16>
      %73 = vector.shape_cast %72 : vector<1x32x384xbf16> to vector<32x384xbf16>
      %cst_73 = arith.constant dense<0.000000e+00> : vector<2x384xf32>
      %74 = tpu.matmul %71, %73, %cst_73 {dimension_numbers = #tpu.dot_dimension_numbers<[1], [0], [0], [1], [0, 0, 1, 1], [], []>} : vector<2x32xbf16>, vector<32x384xbf16>, vector<2x384xf32> -> vector<2x384xf32>
      %75 = arith.addf %66, %74 : vector<2x384xf32>
      %c0_74 = arith.constant 0 : index
      %c0_75 = arith.constant 0 : index
      %c7 = arith.constant 7 : index
      %c0_76 = arith.constant 0 : index
      %76 = vector.load %arg8[%c0_74, %c0_75, %c7, %c0_76] : memref<2x3x16x32xf32, #tpu.memory_space<vmem>>, vector<2x1x1x32xf32>
      %77 = vector.shape_cast %76 : vector<2x1x1x32xf32> to vector<2x32xf32>
      %cst_77 = arith.constant 2.500000e-01 : f32
      %78 = vector.broadcast %cst_77 : f32 to vector<2x32xf32>
      %79 = arith.mulf %77, %78 : vector<2x32xf32>
      %80 = arith.truncf %79 : vector<2x32xf32> to vector<2x32xbf16>
      %c7_78 = arith.constant 7 : index
      %c0_79 = arith.constant 0 : index
      %c0_80 = arith.constant 0 : index
      %81 = vector.load %arg3[%c7_78, %c0_79, %c0_80] : memref<48x32x384xbf16, #tpu.memory_space<vmem>>, vector<1x32x384xbf16>
      %82 = vector.shape_cast %81 : vector<1x32x384xbf16> to vector<32x384xbf16>
      %cst_81 = arith.constant dense<0.000000e+00> : vector<2x384xf32>
      %83 = tpu.matmul %80, %82, %cst_81 {dimension_numbers = #tpu.dot_dimension_numbers<[1], [0], [0], [1], [0, 0, 1, 1], [], []>} : vector<2x32xbf16>, vector<32x384xbf16>, vector<2x384xf32> -> vector<2x384xf32>
      %84 = arith.addf %75, %83 : vector<2x384xf32>
      %c0_82 = arith.constant 0 : index
      %c0_83 = arith.constant 0 : index
      %c8 = arith.constant 8 : index
      %c0_84 = arith.constant 0 : index
      %85 = vector.load %arg8[%c0_82, %c0_83, %c8, %c0_84] : memref<2x3x16x32xf32, #tpu.memory_space<vmem>>, vector<2x1x1x32xf32>
      %86 = vector.shape_cast %85 : vector<2x1x1x32xf32> to vector<2x32xf32>
      %cst_85 = arith.constant 2.500000e-01 : f32
      %87 = vector.broadcast %cst_85 : f32 to vector<2x32xf32>
      %88 = arith.mulf %86, %87 : vector<2x32xf32>
      %89 = arith.truncf %88 : vector<2x32xf32> to vector<2x32xbf16>
      %c8_86 = arith.constant 8 : index
      %c0_87 = arith.constant 0 : index
      %c0_88 = arith.constant 0 : index
      %90 = vector.load %arg3[%c8_86, %c0_87, %c0_88] : memref<48x32x384xbf16, #tpu.memory_space<vmem>>, vector<1x32x384xbf16>
      %91 = vector.shape_cast %90 : vector<1x32x384xbf16> to vector<32x384xbf16>
      %cst_89 = arith.constant dense<0.000000e+00> : vector<2x384xf32>
      %92 = tpu.matmul %89, %91, %cst_89 {dimension_numbers = #tpu.dot_dimension_numbers<[1], [0], [0], [1], [0, 0, 1, 1], [], []>} : vector<2x32xbf16>, vector<32x384xbf16>, vector<2x384xf32> -> vector<2x384xf32>
      %93 = arith.addf %84, %92 : vector<2x384xf32>
      %c0_90 = arith.constant 0 : index
      %c0_91 = arith.constant 0 : index
      %c9 = arith.constant 9 : index
      %c0_92 = arith.constant 0 : index
      %94 = vector.load %arg8[%c0_90, %c0_91, %c9, %c0_92] : memref<2x3x16x32xf32, #tpu.memory_space<vmem>>, vector<2x1x1x32xf32>
      %95 = vector.shape_cast %94 : vector<2x1x1x32xf32> to vector<2x32xf32>
      %cst_93 = arith.constant 2.500000e-01 : f32
      %96 = vector.broadcast %cst_93 : f32 to vector<2x32xf32>
      %97 = arith.mulf %95, %96 : vector<2x32xf32>
      %98 = arith.truncf %97 : vector<2x32xf32> to vector<2x32xbf16>
      %c9_94 = arith.constant 9 : index
      %c0_95 = arith.constant 0 : index
      %c0_96 = arith.constant 0 : index
      %99 = vector.load %arg3[%c9_94, %c0_95, %c0_96] : memref<48x32x384xbf16, #tpu.memory_space<vmem>>, vector<1x32x384xbf16>
      %100 = vector.shape_cast %99 : vector<1x32x384xbf16> to vector<32x384xbf16>
      %cst_97 = arith.constant dense<0.000000e+00> : vector<2x384xf32>
      %101 = tpu.matmul %98, %100, %cst_97 {dimension_numbers = #tpu.dot_dimension_numbers<[1], [0], [0], [1], [0, 0, 1, 1], [], []>} : vector<2x32xbf16>, vector<32x384xbf16>, vector<2x384xf32> -> vector<2x384xf32>
      %102 = arith.addf %93, %101 : vector<2x384xf32>
      %c0_98 = arith.constant 0 : index
      %c0_99 = arith.constant 0 : index
      %c10 = arith.constant 10 : index
      %c0_100 = arith.constant 0 : index
      %103 = vector.load %arg8[%c0_98, %c0_99, %c10, %c0_100] : memref<2x3x16x32xf32, #tpu.memory_space<vmem>>, vector<2x1x1x32xf32>
      %104 = vector.shape_cast %103 : vector<2x1x1x32xf32> to vector<2x32xf32>
      %cst_101 = arith.constant 2.500000e-01 : f32
      %105 = vector.broadcast %cst_101 : f32 to vector<2x32xf32>
      %106 = arith.mulf %104, %105 : vector<2x32xf32>
      %107 = arith.truncf %106 : vector<2x32xf32> to vector<2x32xbf16>
      %c10_102 = arith.constant 10 : index
      %c0_103 = arith.constant 0 : index
      %c0_104 = arith.constant 0 : index
      %108 = vector.load %arg3[%c10_102, %c0_103, %c0_104] : memref<48x32x384xbf16, #tpu.memory_space<vmem>>, vector<1x32x384xbf16>
      %109 = vector.shape_cast %108 : vector<1x32x384xbf16> to vector<32x384xbf16>
      %cst_105 = arith.constant dense<0.000000e+00> : vector<2x384xf32>
      %110 = tpu.matmul %107, %109, %cst_105 {dimension_numbers = #tpu.dot_dimension_numbers<[1], [0], [0], [1], [0, 0, 1, 1], [], []>} : vector<2x32xbf16>, vector<32x384xbf16>, vector<2x384xf32> -> vector<2x384xf32>
      %111 = arith.addf %102, %110 : vector<2x384xf32>
      %c0_106 = arith.constant 0 : index
      %c0_107 = arith.constant 0 : index
      %c11 = arith.constant 11 : index
      %c0_108 = arith.constant 0 : index
      %112 = vector.load %arg8[%c0_106, %c0_107, %c11, %c0_108] : memref<2x3x16x32xf32, #tpu.memory_space<vmem>>, vector<2x1x1x32xf32>
      %113 = vector.shape_cast %112 : vector<2x1x1x32xf32> to vector<2x32xf32>
      %cst_109 = arith.constant 2.500000e-01 : f32
      %114 = vector.broadcast %cst_109 : f32 to vector<2x32xf32>
      %115 = arith.mulf %113, %114 : vector<2x32xf32>
      %116 = arith.truncf %115 : vector<2x32xf32> to vector<2x32xbf16>
      %c11_110 = arith.constant 11 : index
      %c0_111 = arith.constant 0 : index
      %c0_112 = arith.constant 0 : index
      %117 = vector.load %arg3[%c11_110, %c0_111, %c0_112] : memref<48x32x384xbf16, #tpu.memory_space<vmem>>, vector<1x32x384xbf16>
      %118 = vector.shape_cast %117 : vector<1x32x384xbf16> to vector<32x384xbf16>
      %cst_113 = arith.constant dense<0.000000e+00> : vector<2x384xf32>
      %119 = tpu.matmul %116, %118, %cst_113 {dimension_numbers = #tpu.dot_dimension_numbers<[1], [0], [0], [1], [0, 0, 1, 1], [], []>} : vector<2x32xbf16>, vector<32x384xbf16>, vector<2x384xf32> -> vector<2x384xf32>
      %120 = arith.addf %111, %119 : vector<2x384xf32>
      %c0_114 = arith.constant 0 : index
      %c0_115 = arith.constant 0 : index
      %c12 = arith.constant 12 : index
      %c0_116 = arith.constant 0 : index
      %121 = vector.load %arg8[%c0_114, %c0_115, %c12, %c0_116] : memref<2x3x16x32xf32, #tpu.memory_space<vmem>>, vector<2x1x1x32xf32>
      %122 = vector.shape_cast %121 : vector<2x1x1x32xf32> to vector<2x32xf32>
      %cst_117 = arith.constant 2.500000e-01 : f32
      %123 = vector.broadcast %cst_117 : f32 to vector<2x32xf32>
      %124 = arith.mulf %122, %123 : vector<2x32xf32>
      %125 = arith.truncf %124 : vector<2x32xf32> to vector<2x32xbf16>
      %c12_118 = arith.constant 12 : index
      %c0_119 = arith.constant 0 : index
      %c0_120 = arith.constant 0 : index
      %126 = vector.load %arg3[%c12_118, %c0_119, %c0_120] : memref<48x32x384xbf16, #tpu.memory_space<vmem>>, vector<1x32x384xbf16>
      %127 = vector.shape_cast %126 : vector<1x32x384xbf16> to vector<32x384xbf16>
      %cst_121 = arith.constant dense<0.000000e+00> : vector<2x384xf32>
      %128 = tpu.matmul %125, %127, %cst_121 {dimension_numbers = #tpu.dot_dimension_numbers<[1], [0], [0], [1], [0, 0, 1, 1], [], []>} : vector<2x32xbf16>, vector<32x384xbf16>, vector<2x384xf32> -> vector<2x384xf32>
      %129 = arith.addf %120, %128 : vector<2x384xf32>
      %c0_122 = arith.constant 0 : index
      %c0_123 = arith.constant 0 : index
      %c13 = arith.constant 13 : index
      %c0_124 = arith.constant 0 : index
      %130 = vector.load %arg8[%c0_122, %c0_123, %c13, %c0_124] : memref<2x3x16x32xf32, #tpu.memory_space<vmem>>, vector<2x1x1x32xf32>
      %131 = vector.shape_cast %130 : vector<2x1x1x32xf32> to vector<2x32xf32>
      %cst_125 = arith.constant 2.500000e-01 : f32
      %132 = vector.broadcast %cst_125 : f32 to vector<2x32xf32>
      %133 = arith.mulf %131, %132 : vector<2x32xf32>
      %134 = arith.truncf %133 : vector<2x32xf32> to vector<2x32xbf16>
      %c13_126 = arith.constant 13 : index
      %c0_127 = arith.constant 0 : index
      %c0_128 = arith.constant 0 : index
      %135 = vector.load %arg3[%c13_126, %c0_127, %c0_128] : memref<48x32x384xbf16, #tpu.memory_space<vmem>>, vector<1x32x384xbf16>
      %136 = vector.shape_cast %135 : vector<1x32x384xbf16> to vector<32x384xbf16>
      %cst_129 = arith.constant dense<0.000000e+00> : vector<2x384xf32>
      %137 = tpu.matmul %134, %136, %cst_129 {dimension_numbers = #tpu.dot_dimension_numbers<[1], [0], [0], [1], [0, 0, 1, 1], [], []>} : vector<2x32xbf16>, vector<32x384xbf16>, vector<2x384xf32> -> vector<2x384xf32>
      %138 = arith.addf %129, %137 : vector<2x384xf32>
      %c0_130 = arith.constant 0 : index
      %c0_131 = arith.constant 0 : index
      %c14 = arith.constant 14 : index
      %c0_132 = arith.constant 0 : index
      %139 = vector.load %arg8[%c0_130, %c0_131, %c14, %c0_132] : memref<2x3x16x32xf32, #tpu.memory_space<vmem>>, vector<2x1x1x32xf32>
      %140 = vector.shape_cast %139 : vector<2x1x1x32xf32> to vector<2x32xf32>
      %cst_133 = arith.constant 2.500000e-01 : f32
      %141 = vector.broadcast %cst_133 : f32 to vector<2x32xf32>
      %142 = arith.mulf %140, %141 : vector<2x32xf32>
      %143 = arith.truncf %142 : vector<2x32xf32> to vector<2x32xbf16>
      %c14_134 = arith.constant 14 : index
      %c0_135 = arith.constant 0 : index
      %c0_136 = arith.constant 0 : index
      %144 = vector.load %arg3[%c14_134, %c0_135, %c0_136] : memref<48x32x384xbf16, #tpu.memory_space<vmem>>, vector<1x32x384xbf16>
      %145 = vector.shape_cast %144 : vector<1x32x384xbf16> to vector<32x384xbf16>
      %cst_137 = arith.constant dense<0.000000e+00> : vector<2x384xf32>
      %146 = tpu.matmul %143, %145, %cst_137 {dimension_numbers = #tpu.dot_dimension_numbers<[1], [0], [0], [1], [0, 0, 1, 1], [], []>} : vector<2x32xbf16>, vector<32x384xbf16>, vector<2x384xf32> -> vector<2x384xf32>
      %147 = arith.addf %138, %146 : vector<2x384xf32>
      %c0_138 = arith.constant 0 : index
      %c0_139 = arith.constant 0 : index
      %c15 = arith.constant 15 : index
      %c0_140 = arith.constant 0 : index
      %148 = vector.load %arg8[%c0_138, %c0_139, %c15, %c0_140] : memref<2x3x16x32xf32, #tpu.memory_space<vmem>>, vector<2x1x1x32xf32>
      %149 = vector.shape_cast %148 : vector<2x1x1x32xf32> to vector<2x32xf32>
      %cst_141 = arith.constant 2.500000e-01 : f32
      %150 = vector.broadcast %cst_141 : f32 to vector<2x32xf32>
      %151 = arith.mulf %149, %150 : vector<2x32xf32>
      %152 = arith.truncf %151 : vector<2x32xf32> to vector<2x32xbf16>
      %c15_142 = arith.constant 15 : index
      %c0_143 = arith.constant 0 : index
      %c0_144 = arith.constant 0 : index
      %153 = vector.load %arg3[%c15_142, %c0_143, %c0_144] : memref<48x32x384xbf16, #tpu.memory_space<vmem>>, vector<1x32x384xbf16>
      %154 = vector.shape_cast %153 : vector<1x32x384xbf16> to vector<32x384xbf16>
      %cst_145 = arith.constant dense<0.000000e+00> : vector<2x384xf32>
      %155 = tpu.matmul %152, %154, %cst_145 {dimension_numbers = #tpu.dot_dimension_numbers<[1], [0], [0], [1], [0, 0, 1, 1], [], []>} : vector<2x32xbf16>, vector<32x384xbf16>, vector<2x384xf32> -> vector<2x384xf32>
      %156 = arith.addf %147, %155 : vector<2x384xf32>
      %c0_146 = arith.constant 0 : index
      %c1_147 = arith.constant 1 : index
      %c0_148 = arith.constant 0 : index
      %c0_149 = arith.constant 0 : index
      %157 = vector.load %arg8[%c0_146, %c1_147, %c0_148, %c0_149] : memref<2x3x16x32xf32, #tpu.memory_space<vmem>>, vector<2x1x1x32xf32>
      %158 = vector.shape_cast %157 : vector<2x1x1x32xf32> to vector<2x32xf32>
      %cst_150 = arith.constant 2.500000e-01 : f32
      %159 = vector.broadcast %cst_150 : f32 to vector<2x32xf32>
      %160 = arith.mulf %158, %159 : vector<2x32xf32>
      %161 = arith.truncf %160 : vector<2x32xf32> to vector<2x32xbf16>
      %c16_151 = arith.constant 16 : index
      %c0_152 = arith.constant 0 : index
      %c0_153 = arith.constant 0 : index
      %162 = vector.load %arg3[%c16_151, %c0_152, %c0_153] : memref<48x32x384xbf16, #tpu.memory_space<vmem>>, vector<1x32x384xbf16>
      %163 = vector.shape_cast %162 : vector<1x32x384xbf16> to vector<32x384xbf16>
      %cst_154 = arith.constant dense<0.000000e+00> : vector<2x384xf32>
      %164 = tpu.matmul %161, %163, %cst_154 {dimension_numbers = #tpu.dot_dimension_numbers<[1], [0], [0], [1], [0, 0, 1, 1], [], []>} : vector<2x32xbf16>, vector<32x384xbf16>, vector<2x384xf32> -> vector<2x384xf32>
      %165 = arith.addf %156, %164 : vector<2x384xf32>
      %c0_155 = arith.constant 0 : index
      %c1_156 = arith.constant 1 : index
      %c1_157 = arith.constant 1 : index
      %c0_158 = arith.constant 0 : index
      %166 = vector.load %arg8[%c0_155, %c1_156, %c1_157, %c0_158] : memref<2x3x16x32xf32, #tpu.memory_space<vmem>>, vector<2x1x1x32xf32>
      %167 = vector.shape_cast %166 : vector<2x1x1x32xf32> to vector<2x32xf32>
      %cst_159 = arith.constant 2.500000e-01 : f32
      %168 = vector.broadcast %cst_159 : f32 to vector<2x32xf32>
      %169 = arith.mulf %167, %168 : vector<2x32xf32>
      %170 = arith.truncf %169 : vector<2x32xf32> to vector<2x32xbf16>
      %c17 = arith.constant 17 : index
      %c0_160 = arith.constant 0 : index
      %c0_161 = arith.constant 0 : index
      %171 = vector.load %arg3[%c17, %c0_160, %c0_161] : memref<48x32x384xbf16, #tpu.memory_space<vmem>>, vector<1x32x384xbf16>
      %172 = vector.shape_cast %171 : vector<1x32x384xbf16> to vector<32x384xbf16>
      %cst_162 = arith.constant dense<0.000000e+00> : vector<2x384xf32>
      %173 = tpu.matmul %170, %172, %cst_162 {dimension_numbers = #tpu.dot_dimension_numbers<[1], [0], [0], [1], [0, 0, 1, 1], [], []>} : vector<2x32xbf16>, vector<32x384xbf16>, vector<2x384xf32> -> vector<2x384xf32>
      %174 = arith.addf %165, %173 : vector<2x384xf32>
      %c0_163 = arith.constant 0 : index
      %c1_164 = arith.constant 1 : index
      %c2_165 = arith.constant 2 : index
      %c0_166 = arith.constant 0 : index
      %175 = vector.load %arg8[%c0_163, %c1_164, %c2_165, %c0_166] : memref<2x3x16x32xf32, #tpu.memory_space<vmem>>, vector<2x1x1x32xf32>
      %176 = vector.shape_cast %175 : vector<2x1x1x32xf32> to vector<2x32xf32>
      %cst_167 = arith.constant 2.500000e-01 : f32
      %177 = vector.broadcast %cst_167 : f32 to vector<2x32xf32>
      %178 = arith.mulf %176, %177 : vector<2x32xf32>
      %179 = arith.truncf %178 : vector<2x32xf32> to vector<2x32xbf16>
      %c18 = arith.constant 18 : index
      %c0_168 = arith.constant 0 : index
      %c0_169 = arith.constant 0 : index
      %180 = vector.load %arg3[%c18, %c0_168, %c0_169] : memref<48x32x384xbf16, #tpu.memory_space<vmem>>, vector<1x32x384xbf16>
      %181 = vector.shape_cast %180 : vector<1x32x384xbf16> to vector<32x384xbf16>
      %cst_170 = arith.constant dense<0.000000e+00> : vector<2x384xf32>
      %182 = tpu.matmul %179, %181, %cst_170 {dimension_numbers = #tpu.dot_dimension_numbers<[1], [0], [0], [1], [0, 0, 1, 1], [], []>} : vector<2x32xbf16>, vector<32x384xbf16>, vector<2x384xf32> -> vector<2x384xf32>
      %183 = arith.addf %174, %182 : vector<2x384xf32>
      %c0_171 = arith.constant 0 : index
      %c1_172 = arith.constant 1 : index
      %c3_173 = arith.constant 3 : index
      %c0_174 = arith.constant 0 : index
      %184 = vector.load %arg8[%c0_171, %c1_172, %c3_173, %c0_174] : memref<2x3x16x32xf32, #tpu.memory_space<vmem>>, vector<2x1x1x32xf32>
      %185 = vector.shape_cast %184 : vector<2x1x1x32xf32> to vector<2x32xf32>
      %cst_175 = arith.constant 2.500000e-01 : f32
      %186 = vector.broadcast %cst_175 : f32 to vector<2x32xf32>
      %187 = arith.mulf %185, %186 : vector<2x32xf32>
      %188 = arith.truncf %187 : vector<2x32xf32> to vector<2x32xbf16>
      %c19 = arith.constant 19 : index
      %c0_176 = arith.constant 0 : index
      %c0_177 = arith.constant 0 : index
      %189 = vector.load %arg3[%c19, %c0_176, %c0_177] : memref<48x32x384xbf16, #tpu.memory_space<vmem>>, vector<1x32x384xbf16>
      %190 = vector.shape_cast %189 : vector<1x32x384xbf16> to vector<32x384xbf16>
      %cst_178 = arith.constant dense<0.000000e+00> : vector<2x384xf32>
      %191 = tpu.matmul %188, %190, %cst_178 {dimension_numbers = #tpu.dot_dimension_numbers<[1], [0], [0], [1], [0, 0, 1, 1], [], []>} : vector<2x32xbf16>, vector<32x384xbf16>, vector<2x384xf32> -> vector<2x384xf32>
      %192 = arith.addf %183, %191 : vector<2x384xf32>
      %c0_179 = arith.constant 0 : index
      %c1_180 = arith.constant 1 : index
      %c4_181 = arith.constant 4 : index
      %c0_182 = arith.constant 0 : index
      %193 = vector.load %arg8[%c0_179, %c1_180, %c4_181, %c0_182] : memref<2x3x16x32xf32, #tpu.memory_space<vmem>>, vector<2x1x1x32xf32>
      %194 = vector.shape_cast %193 : vector<2x1x1x32xf32> to vector<2x32xf32>
      %cst_183 = arith.constant 2.500000e-01 : f32
      %195 = vector.broadcast %cst_183 : f32 to vector<2x32xf32>
      %196 = arith.mulf %194, %195 : vector<2x32xf32>
      %197 = arith.truncf %196 : vector<2x32xf32> to vector<2x32xbf16>
      %c20 = arith.constant 20 : index
      %c0_184 = arith.constant 0 : index
      %c0_185 = arith.constant 0 : index
      %198 = vector.load %arg3[%c20, %c0_184, %c0_185] : memref<48x32x384xbf16, #tpu.memory_space<vmem>>, vector<1x32x384xbf16>
      %199 = vector.shape_cast %198 : vector<1x32x384xbf16> to vector<32x384xbf16>
      %cst_186 = arith.constant dense<0.000000e+00> : vector<2x384xf32>
      %200 = tpu.matmul %197, %199, %cst_186 {dimension_numbers = #tpu.dot_dimension_numbers<[1], [0], [0], [1], [0, 0, 1, 1], [], []>} : vector<2x32xbf16>, vector<32x384xbf16>, vector<2x384xf32> -> vector<2x384xf32>
      %201 = arith.addf %192, %200 : vector<2x384xf32>
      %c0_187 = arith.constant 0 : index
      %c1_188 = arith.constant 1 : index
      %c5_189 = arith.constant 5 : index
      %c0_190 = arith.constant 0 : index
      %202 = vector.load %arg8[%c0_187, %c1_188, %c5_189, %c0_190] : memref<2x3x16x32xf32, #tpu.memory_space<vmem>>, vector<2x1x1x32xf32>
      %203 = vector.shape_cast %202 : vector<2x1x1x32xf32> to vector<2x32xf32>
      %cst_191 = arith.constant 2.500000e-01 : f32
      %204 = vector.broadcast %cst_191 : f32 to vector<2x32xf32>
      %205 = arith.mulf %203, %204 : vector<2x32xf32>
      %206 = arith.truncf %205 : vector<2x32xf32> to vector<2x32xbf16>
      %c21 = arith.constant 21 : index
      %c0_192 = arith.constant 0 : index
      %c0_193 = arith.constant 0 : index
      %207 = vector.load %arg3[%c21, %c0_192, %c0_193] : memref<48x32x384xbf16, #tpu.memory_space<vmem>>, vector<1x32x384xbf16>
      %208 = vector.shape_cast %207 : vector<1x32x384xbf16> to vector<32x384xbf16>
      %cst_194 = arith.constant dense<0.000000e+00> : vector<2x384xf32>
      %209 = tpu.matmul %206, %208, %cst_194 {dimension_numbers = #tpu.dot_dimension_numbers<[1], [0], [0], [1], [0, 0, 1, 1], [], []>} : vector<2x32xbf16>, vector<32x384xbf16>, vector<2x384xf32> -> vector<2x384xf32>
      %210 = arith.addf %201, %209 : vector<2x384xf32>
      %c0_195 = arith.constant 0 : index
      %c1_196 = arith.constant 1 : index
      %c6_197 = arith.constant 6 : index
      %c0_198 = arith.constant 0 : index
      %211 = vector.load %arg8[%c0_195, %c1_196, %c6_197, %c0_198] : memref<2x3x16x32xf32, #tpu.memory_space<vmem>>, vector<2x1x1x32xf32>
      %212 = vector.shape_cast %211 : vector<2x1x1x32xf32> to vector<2x32xf32>
      %cst_199 = arith.constant 2.500000e-01 : f32
      %213 = vector.broadcast %cst_199 : f32 to vector<2x32xf32>
      %214 = arith.mulf %212, %213 : vector<2x32xf32>
      %215 = arith.truncf %214 : vector<2x32xf32> to vector<2x32xbf16>
      %c22 = arith.constant 22 : index
      %c0_200 = arith.constant 0 : index
      %c0_201 = arith.constant 0 : index
      %216 = vector.load %arg3[%c22, %c0_200, %c0_201] : memref<48x32x384xbf16, #tpu.memory_space<vmem>>, vector<1x32x384xbf16>
      %217 = vector.shape_cast %216 : vector<1x32x384xbf16> to vector<32x384xbf16>
      %cst_202 = arith.constant dense<0.000000e+00> : vector<2x384xf32>
      %218 = tpu.matmul %215, %217, %cst_202 {dimension_numbers = #tpu.dot_dimension_numbers<[1], [0], [0], [1], [0, 0, 1, 1], [], []>} : vector<2x32xbf16>, vector<32x384xbf16>, vector<2x384xf32> -> vector<2x384xf32>
      %219 = arith.addf %210, %218 : vector<2x384xf32>
      %c0_203 = arith.constant 0 : index
      %c1_204 = arith.constant 1 : index
      %c7_205 = arith.constant 7 : index
      %c0_206 = arith.constant 0 : index
      %220 = vector.load %arg8[%c0_203, %c1_204, %c7_205, %c0_206] : memref<2x3x16x32xf32, #tpu.memory_space<vmem>>, vector<2x1x1x32xf32>
      %221 = vector.shape_cast %220 : vector<2x1x1x32xf32> to vector<2x32xf32>
      %cst_207 = arith.constant 2.500000e-01 : f32
      %222 = vector.broadcast %cst_207 : f32 to vector<2x32xf32>
      %223 = arith.mulf %221, %222 : vector<2x32xf32>
      %224 = arith.truncf %223 : vector<2x32xf32> to vector<2x32xbf16>
      %c23 = arith.constant 23 : index
      %c0_208 = arith.constant 0 : index
      %c0_209 = arith.constant 0 : index
      %225 = vector.load %arg3[%c23, %c0_208, %c0_209] : memref<48x32x384xbf16, #tpu.memory_space<vmem>>, vector<1x32x384xbf16>
      %226 = vector.shape_cast %225 : vector<1x32x384xbf16> to vector<32x384xbf16>
      %cst_210 = arith.constant dense<0.000000e+00> : vector<2x384xf32>
      %227 = tpu.matmul %224, %226, %cst_210 {dimension_numbers = #tpu.dot_dimension_numbers<[1], [0], [0], [1], [0, 0, 1, 1], [], []>} : vector<2x32xbf16>, vector<32x384xbf16>, vector<2x384xf32> -> vector<2x384xf32>
      %228 = arith.addf %219, %227 : vector<2x384xf32>
      %c0_211 = arith.constant 0 : index
      %c1_212 = arith.constant 1 : index
      %c8_213 = arith.constant 8 : index
      %c0_214 = arith.constant 0 : index
      %229 = vector.load %arg8[%c0_211, %c1_212, %c8_213, %c0_214] : memref<2x3x16x32xf32, #tpu.memory_space<vmem>>, vector<2x1x1x32xf32>
      %230 = vector.shape_cast %229 : vector<2x1x1x32xf32> to vector<2x32xf32>
      %cst_215 = arith.constant 2.500000e-01 : f32
      %231 = vector.broadcast %cst_215 : f32 to vector<2x32xf32>
      %232 = arith.mulf %230, %231 : vector<2x32xf32>
      %233 = arith.truncf %232 : vector<2x32xf32> to vector<2x32xbf16>
      %c24 = arith.constant 24 : index
      %c0_216 = arith.constant 0 : index
      %c0_217 = arith.constant 0 : index
      %234 = vector.load %arg3[%c24, %c0_216, %c0_217] : memref<48x32x384xbf16, #tpu.memory_space<vmem>>, vector<1x32x384xbf16>
      %235 = vector.shape_cast %234 : vector<1x32x384xbf16> to vector<32x384xbf16>
      %cst_218 = arith.constant dense<0.000000e+00> : vector<2x384xf32>
      %236 = tpu.matmul %233, %235, %cst_218 {dimension_numbers = #tpu.dot_dimension_numbers<[1], [0], [0], [1], [0, 0, 1, 1], [], []>} : vector<2x32xbf16>, vector<32x384xbf16>, vector<2x384xf32> -> vector<2x384xf32>
      %237 = arith.addf %228, %236 : vector<2x384xf32>
      %c0_219 = arith.constant 0 : index
      %c1_220 = arith.constant 1 : index
      %c9_221 = arith.constant 9 : index
      %c0_222 = arith.constant 0 : index
      %238 = vector.load %arg8[%c0_219, %c1_220, %c9_221, %c0_222] : memref<2x3x16x32xf32, #tpu.memory_space<vmem>>, vector<2x1x1x32xf32>
      %239 = vector.shape_cast %238 : vector<2x1x1x32xf32> to vector<2x32xf32>
      %cst_223 = arith.constant 2.500000e-01 : f32
      %240 = vector.broadcast %cst_223 : f32 to vector<2x32xf32>
      %241 = arith.mulf %239, %240 : vector<2x32xf32>
      %242 = arith.truncf %241 : vector<2x32xf32> to vector<2x32xbf16>
      %c25 = arith.constant 25 : index
      %c0_224 = arith.constant 0 : index
      %c0_225 = arith.constant 0 : index
      %243 = vector.load %arg3[%c25, %c0_224, %c0_225] : memref<48x32x384xbf16, #tpu.memory_space<vmem>>, vector<1x32x384xbf16>
      %244 = vector.shape_cast %243 : vector<1x32x384xbf16> to vector<32x384xbf16>
      %cst_226 = arith.constant dense<0.000000e+00> : vector<2x384xf32>
      %245 = tpu.matmul %242, %244, %cst_226 {dimension_numbers = #tpu.dot_dimension_numbers<[1], [0], [0], [1], [0, 0, 1, 1], [], []>} : vector<2x32xbf16>, vector<32x384xbf16>, vector<2x384xf32> -> vector<2x384xf32>
      %246 = arith.addf %237, %245 : vector<2x384xf32>
      %c0_227 = arith.constant 0 : index
      %c1_228 = arith.constant 1 : index
      %c10_229 = arith.constant 10 : index
      %c0_230 = arith.constant 0 : index
      %247 = vector.load %arg8[%c0_227, %c1_228, %c10_229, %c0_230] : memref<2x3x16x32xf32, #tpu.memory_space<vmem>>, vector<2x1x1x32xf32>
      %248 = vector.shape_cast %247 : vector<2x1x1x32xf32> to vector<2x32xf32>
      %cst_231 = arith.constant 2.500000e-01 : f32
      %249 = vector.broadcast %cst_231 : f32 to vector<2x32xf32>
      %250 = arith.mulf %248, %249 : vector<2x32xf32>
      %251 = arith.truncf %250 : vector<2x32xf32> to vector<2x32xbf16>
      %c26 = arith.constant 26 : index
      %c0_232 = arith.constant 0 : index
      %c0_233 = arith.constant 0 : index
      %252 = vector.load %arg3[%c26, %c0_232, %c0_233] : memref<48x32x384xbf16, #tpu.memory_space<vmem>>, vector<1x32x384xbf16>
      %253 = vector.shape_cast %252 : vector<1x32x384xbf16> to vector<32x384xbf16>
      %cst_234 = arith.constant dense<0.000000e+00> : vector<2x384xf32>
      %254 = tpu.matmul %251, %253, %cst_234 {dimension_numbers = #tpu.dot_dimension_numbers<[1], [0], [0], [1], [0, 0, 1, 1], [], []>} : vector<2x32xbf16>, vector<32x384xbf16>, vector<2x384xf32> -> vector<2x384xf32>
      %255 = arith.addf %246, %254 : vector<2x384xf32>
      %c0_235 = arith.constant 0 : index
      %c1_236 = arith.constant 1 : index
      %c11_237 = arith.constant 11 : index
      %c0_238 = arith.constant 0 : index
      %256 = vector.load %arg8[%c0_235, %c1_236, %c11_237, %c0_238] : memref<2x3x16x32xf32, #tpu.memory_space<vmem>>, vector<2x1x1x32xf32>
      %257 = vector.shape_cast %256 : vector<2x1x1x32xf32> to vector<2x32xf32>
      %cst_239 = arith.constant 2.500000e-01 : f32
      %258 = vector.broadcast %cst_239 : f32 to vector<2x32xf32>
      %259 = arith.mulf %257, %258 : vector<2x32xf32>
      %260 = arith.truncf %259 : vector<2x32xf32> to vector<2x32xbf16>
      %c27 = arith.constant 27 : index
      %c0_240 = arith.constant 0 : index
      %c0_241 = arith.constant 0 : index
      %261 = vector.load %arg3[%c27, %c0_240, %c0_241] : memref<48x32x384xbf16, #tpu.memory_space<vmem>>, vector<1x32x384xbf16>
      %262 = vector.shape_cast %261 : vector<1x32x384xbf16> to vector<32x384xbf16>
      %cst_242 = arith.constant dense<0.000000e+00> : vector<2x384xf32>
      %263 = tpu.matmul %260, %262, %cst_242 {dimension_numbers = #tpu.dot_dimension_numbers<[1], [0], [0], [1], [0, 0, 1, 1], [], []>} : vector<2x32xbf16>, vector<32x384xbf16>, vector<2x384xf32> -> vector<2x384xf32>
      %264 = arith.addf %255, %263 : vector<2x384xf32>
      %c0_243 = arith.constant 0 : index
      %c1_244 = arith.constant 1 : index
      %c12_245 = arith.constant 12 : index
      %c0_246 = arith.constant 0 : index
      %265 = vector.load %arg8[%c0_243, %c1_244, %c12_245, %c0_246] : memref<2x3x16x32xf32, #tpu.memory_space<vmem>>, vector<2x1x1x32xf32>
      %266 = vector.shape_cast %265 : vector<2x1x1x32xf32> to vector<2x32xf32>
      %cst_247 = arith.constant 2.500000e-01 : f32
      %267 = vector.broadcast %cst_247 : f32 to vector<2x32xf32>
      %268 = arith.mulf %266, %267 : vector<2x32xf32>
      %269 = arith.truncf %268 : vector<2x32xf32> to vector<2x32xbf16>
      %c28 = arith.constant 28 : index
      %c0_248 = arith.constant 0 : index
      %c0_249 = arith.constant 0 : index
      %270 = vector.load %arg3[%c28, %c0_248, %c0_249] : memref<48x32x384xbf16, #tpu.memory_space<vmem>>, vector<1x32x384xbf16>
      %271 = vector.shape_cast %270 : vector<1x32x384xbf16> to vector<32x384xbf16>
      %cst_250 = arith.constant dense<0.000000e+00> : vector<2x384xf32>
      %272 = tpu.matmul %269, %271, %cst_250 {dimension_numbers = #tpu.dot_dimension_numbers<[1], [0], [0], [1], [0, 0, 1, 1], [], []>} : vector<2x32xbf16>, vector<32x384xbf16>, vector<2x384xf32> -> vector<2x384xf32>
      %273 = arith.addf %264, %272 : vector<2x384xf32>
      %c0_251 = arith.constant 0 : index
      %c1_252 = arith.constant 1 : index
      %c13_253 = arith.constant 13 : index
      %c0_254 = arith.constant 0 : index
      %274 = vector.load %arg8[%c0_251, %c1_252, %c13_253, %c0_254] : memref<2x3x16x32xf32, #tpu.memory_space<vmem>>, vector<2x1x1x32xf32>
      %275 = vector.shape_cast %274 : vector<2x1x1x32xf32> to vector<2x32xf32>
      %cst_255 = arith.constant 2.500000e-01 : f32
      %276 = vector.broadcast %cst_255 : f32 to vector<2x32xf32>
      %277 = arith.mulf %275, %276 : vector<2x32xf32>
      %278 = arith.truncf %277 : vector<2x32xf32> to vector<2x32xbf16>
      %c29 = arith.constant 29 : index
      %c0_256 = arith.constant 0 : index
      %c0_257 = arith.constant 0 : index
      %279 = vector.load %arg3[%c29, %c0_256, %c0_257] : memref<48x32x384xbf16, #tpu.memory_space<vmem>>, vector<1x32x384xbf16>
      %280 = vector.shape_cast %279 : vector<1x32x384xbf16> to vector<32x384xbf16>
      %cst_258 = arith.constant dense<0.000000e+00> : vector<2x384xf32>
      %281 = tpu.matmul %278, %280, %cst_258 {dimension_numbers = #tpu.dot_dimension_numbers<[1], [0], [0], [1], [0, 0, 1, 1], [], []>} : vector<2x32xbf16>, vector<32x384xbf16>, vector<2x384xf32> -> vector<2x384xf32>
      %282 = arith.addf %273, %281 : vector<2x384xf32>
      %c0_259 = arith.constant 0 : index
      %c1_260 = arith.constant 1 : index
      %c14_261 = arith.constant 14 : index
      %c0_262 = arith.constant 0 : index
      %283 = vector.load %arg8[%c0_259, %c1_260, %c14_261, %c0_262] : memref<2x3x16x32xf32, #tpu.memory_space<vmem>>, vector<2x1x1x32xf32>
      %284 = vector.shape_cast %283 : vector<2x1x1x32xf32> to vector<2x32xf32>
      %cst_263 = arith.constant 2.500000e-01 : f32
      %285 = vector.broadcast %cst_263 : f32 to vector<2x32xf32>
      %286 = arith.mulf %284, %285 : vector<2x32xf32>
      %287 = arith.truncf %286 : vector<2x32xf32> to vector<2x32xbf16>
      %c30 = arith.constant 30 : index
      %c0_264 = arith.constant 0 : index
      %c0_265 = arith.constant 0 : index
      %288 = vector.load %arg3[%c30, %c0_264, %c0_265] : memref<48x32x384xbf16, #tpu.memory_space<vmem>>, vector<1x32x384xbf16>
      %289 = vector.shape_cast %288 : vector<1x32x384xbf16> to vector<32x384xbf16>
      %cst_266 = arith.constant dense<0.000000e+00> : vector<2x384xf32>
      %290 = tpu.matmul %287, %289, %cst_266 {dimension_numbers = #tpu.dot_dimension_numbers<[1], [0], [0], [1], [0, 0, 1, 1], [], []>} : vector<2x32xbf16>, vector<32x384xbf16>, vector<2x384xf32> -> vector<2x384xf32>
      %291 = arith.addf %282, %290 : vector<2x384xf32>
      %c0_267 = arith.constant 0 : index
      %c1_268 = arith.constant 1 : index
      %c15_269 = arith.constant 15 : index
      %c0_270 = arith.constant 0 : index
      %292 = vector.load %arg8[%c0_267, %c1_268, %c15_269, %c0_270] : memref<2x3x16x32xf32, #tpu.memory_space<vmem>>, vector<2x1x1x32xf32>
      %293 = vector.shape_cast %292 : vector<2x1x1x32xf32> to vector<2x32xf32>
      %cst_271 = arith.constant 2.500000e-01 : f32
      %294 = vector.broadcast %cst_271 : f32 to vector<2x32xf32>
      %295 = arith.mulf %293, %294 : vector<2x32xf32>
      %296 = arith.truncf %295 : vector<2x32xf32> to vector<2x32xbf16>
      %c31 = arith.constant 31 : index
      %c0_272 = arith.constant 0 : index
      %c0_273 = arith.constant 0 : index
      %297 = vector.load %arg3[%c31, %c0_272, %c0_273] : memref<48x32x384xbf16, #tpu.memory_space<vmem>>, vector<1x32x384xbf16>
      %298 = vector.shape_cast %297 : vector<1x32x384xbf16> to vector<32x384xbf16>
      %cst_274 = arith.constant dense<0.000000e+00> : vector<2x384xf32>
      %299 = tpu.matmul %296, %298, %cst_274 {dimension_numbers = #tpu.dot_dimension_numbers<[1], [0], [0], [1], [0, 0, 1, 1], [], []>} : vector<2x32xbf16>, vector<32x384xbf16>, vector<2x384xf32> -> vector<2x384xf32>
      %300 = arith.addf %291, %299 : vector<2x384xf32>
      %c0_275 = arith.constant 0 : index
      %c2_276 = arith.constant 2 : index
      %c0_277 = arith.constant 0 : index
      %c0_278 = arith.constant 0 : index
      %301 = vector.load %arg8[%c0_275, %c2_276, %c0_277, %c0_278] : memref<2x3x16x32xf32, #tpu.memory_space<vmem>>, vector<2x1x1x32xf32>
      %302 = vector.shape_cast %301 : vector<2x1x1x32xf32> to vector<2x32xf32>
      %cst_279 = arith.constant 2.500000e-01 : f32
      %303 = vector.broadcast %cst_279 : f32 to vector<2x32xf32>
      %304 = arith.mulf %302, %303 : vector<2x32xf32>
      %305 = arith.truncf %304 : vector<2x32xf32> to vector<2x32xbf16>
      %c32 = arith.constant 32 : index
      %c0_280 = arith.constant 0 : index
      %c0_281 = arith.constant 0 : index
      %306 = vector.load %arg3[%c32, %c0_280, %c0_281] : memref<48x32x384xbf16, #tpu.memory_space<vmem>>, vector<1x32x384xbf16>
      %307 = vector.shape_cast %306 : vector<1x32x384xbf16> to vector<32x384xbf16>
      %cst_282 = arith.constant dense<0.000000e+00> : vector<2x384xf32>
      %308 = tpu.matmul %305, %307, %cst_282 {dimension_numbers = #tpu.dot_dimension_numbers<[1], [0], [0], [1], [0, 0, 1, 1], [], []>} : vector<2x32xbf16>, vector<32x384xbf16>, vector<2x384xf32> -> vector<2x384xf32>
      %309 = arith.addf %300, %308 : vector<2x384xf32>
      %c0_283 = arith.constant 0 : index
      %c2_284 = arith.constant 2 : index
      %c1_285 = arith.constant 1 : index
      %c0_286 = arith.constant 0 : index
      %310 = vector.load %arg8[%c0_283, %c2_284, %c1_285, %c0_286] : memref<2x3x16x32xf32, #tpu.memory_space<vmem>>, vector<2x1x1x32xf32>
      %311 = vector.shape_cast %310 : vector<2x1x1x32xf32> to vector<2x32xf32>
      %cst_287 = arith.constant 2.500000e-01 : f32
      %312 = vector.broadcast %cst_287 : f32 to vector<2x32xf32>
      %313 = arith.mulf %311, %312 : vector<2x32xf32>
      %314 = arith.truncf %313 : vector<2x32xf32> to vector<2x32xbf16>
      %c33 = arith.constant 33 : index
      %c0_288 = arith.constant 0 : index
      %c0_289 = arith.constant 0 : index
      %315 = vector.load %arg3[%c33, %c0_288, %c0_289] : memref<48x32x384xbf16, #tpu.memory_space<vmem>>, vector<1x32x384xbf16>
      %316 = vector.shape_cast %315 : vector<1x32x384xbf16> to vector<32x384xbf16>
      %cst_290 = arith.constant dense<0.000000e+00> : vector<2x384xf32>
      %317 = tpu.matmul %314, %316, %cst_290 {dimension_numbers = #tpu.dot_dimension_numbers<[1], [0], [0], [1], [0, 0, 1, 1], [], []>} : vector<2x32xbf16>, vector<32x384xbf16>, vector<2x384xf32> -> vector<2x384xf32>
      %318 = arith.addf %309, %317 : vector<2x384xf32>
      %c0_291 = arith.constant 0 : index
      %c2_292 = arith.constant 2 : index
      %c2_293 = arith.constant 2 : index
      %c0_294 = arith.constant 0 : index
      %319 = vector.load %arg8[%c0_291, %c2_292, %c2_293, %c0_294] : memref<2x3x16x32xf32, #tpu.memory_space<vmem>>, vector<2x1x1x32xf32>
      %320 = vector.shape_cast %319 : vector<2x1x1x32xf32> to vector<2x32xf32>
      %cst_295 = arith.constant 2.500000e-01 : f32
      %321 = vector.broadcast %cst_295 : f32 to vector<2x32xf32>
      %322 = arith.mulf %320, %321 : vector<2x32xf32>
      %323 = arith.truncf %322 : vector<2x32xf32> to vector<2x32xbf16>
      %c34 = arith.constant 34 : index
      %c0_296 = arith.constant 0 : index
      %c0_297 = arith.constant 0 : index
      %324 = vector.load %arg3[%c34, %c0_296, %c0_297] : memref<48x32x384xbf16, #tpu.memory_space<vmem>>, vector<1x32x384xbf16>
      %325 = vector.shape_cast %324 : vector<1x32x384xbf16> to vector<32x384xbf16>
      %cst_298 = arith.constant dense<0.000000e+00> : vector<2x384xf32>
      %326 = tpu.matmul %323, %325, %cst_298 {dimension_numbers = #tpu.dot_dimension_numbers<[1], [0], [0], [1], [0, 0, 1, 1], [], []>} : vector<2x32xbf16>, vector<32x384xbf16>, vector<2x384xf32> -> vector<2x384xf32>
      %327 = arith.addf %318, %326 : vector<2x384xf32>
      %c0_299 = arith.constant 0 : index
      %c2_300 = arith.constant 2 : index
      %c3_301 = arith.constant 3 : index
      %c0_302 = arith.constant 0 : index
      %328 = vector.load %arg8[%c0_299, %c2_300, %c3_301, %c0_302] : memref<2x3x16x32xf32, #tpu.memory_space<vmem>>, vector<2x1x1x32xf32>
      %329 = vector.shape_cast %328 : vector<2x1x1x32xf32> to vector<2x32xf32>
      %cst_303 = arith.constant 2.500000e-01 : f32
      %330 = vector.broadcast %cst_303 : f32 to vector<2x32xf32>
      %331 = arith.mulf %329, %330 : vector<2x32xf32>
      %332 = arith.truncf %331 : vector<2x32xf32> to vector<2x32xbf16>
      %c35 = arith.constant 35 : index
      %c0_304 = arith.constant 0 : index
      %c0_305 = arith.constant 0 : index
      %333 = vector.load %arg3[%c35, %c0_304, %c0_305] : memref<48x32x384xbf16, #tpu.memory_space<vmem>>, vector<1x32x384xbf16>
      %334 = vector.shape_cast %333 : vector<1x32x384xbf16> to vector<32x384xbf16>
      %cst_306 = arith.constant dense<0.000000e+00> : vector<2x384xf32>
      %335 = tpu.matmul %332, %334, %cst_306 {dimension_numbers = #tpu.dot_dimension_numbers<[1], [0], [0], [1], [0, 0, 1, 1], [], []>} : vector<2x32xbf16>, vector<32x384xbf16>, vector<2x384xf32> -> vector<2x384xf32>
      %336 = arith.addf %327, %335 : vector<2x384xf32>
      %c0_307 = arith.constant 0 : index
      %c2_308 = arith.constant 2 : index
      %c4_309 = arith.constant 4 : index
      %c0_310 = arith.constant 0 : index
      %337 = vector.load %arg8[%c0_307, %c2_308, %c4_309, %c0_310] : memref<2x3x16x32xf32, #tpu.memory_space<vmem>>, vector<2x1x1x32xf32>
      %338 = vector.shape_cast %337 : vector<2x1x1x32xf32> to vector<2x32xf32>
      %cst_311 = arith.constant 2.500000e-01 : f32
      %339 = vector.broadcast %cst_311 : f32 to vector<2x32xf32>
      %340 = arith.mulf %338, %339 : vector<2x32xf32>
      %341 = arith.truncf %340 : vector<2x32xf32> to vector<2x32xbf16>
      %c36 = arith.constant 36 : index
      %c0_312 = arith.constant 0 : index
      %c0_313 = arith.constant 0 : index
      %342 = vector.load %arg3[%c36, %c0_312, %c0_313] : memref<48x32x384xbf16, #tpu.memory_space<vmem>>, vector<1x32x384xbf16>
      %343 = vector.shape_cast %342 : vector<1x32x384xbf16> to vector<32x384xbf16>
      %cst_314 = arith.constant dense<0.000000e+00> : vector<2x384xf32>
      %344 = tpu.matmul %341, %343, %cst_314 {dimension_numbers = #tpu.dot_dimension_numbers<[1], [0], [0], [1], [0, 0, 1, 1], [], []>} : vector<2x32xbf16>, vector<32x384xbf16>, vector<2x384xf32> -> vector<2x384xf32>
      %345 = arith.addf %336, %344 : vector<2x384xf32>
      %c0_315 = arith.constant 0 : index
      %c2_316 = arith.constant 2 : index
      %c5_317 = arith.constant 5 : index
      %c0_318 = arith.constant 0 : index
      %346 = vector.load %arg8[%c0_315, %c2_316, %c5_317, %c0_318] : memref<2x3x16x32xf32, #tpu.memory_space<vmem>>, vector<2x1x1x32xf32>
      %347 = vector.shape_cast %346 : vector<2x1x1x32xf32> to vector<2x32xf32>
      %cst_319 = arith.constant 2.500000e-01 : f32
      %348 = vector.broadcast %cst_319 : f32 to vector<2x32xf32>
      %349 = arith.mulf %347, %348 : vector<2x32xf32>
      %350 = arith.truncf %349 : vector<2x32xf32> to vector<2x32xbf16>
      %c37 = arith.constant 37 : index
      %c0_320 = arith.constant 0 : index
      %c0_321 = arith.constant 0 : index
      %351 = vector.load %arg3[%c37, %c0_320, %c0_321] : memref<48x32x384xbf16, #tpu.memory_space<vmem>>, vector<1x32x384xbf16>
      %352 = vector.shape_cast %351 : vector<1x32x384xbf16> to vector<32x384xbf16>
      %cst_322 = arith.constant dense<0.000000e+00> : vector<2x384xf32>
      %353 = tpu.matmul %350, %352, %cst_322 {dimension_numbers = #tpu.dot_dimension_numbers<[1], [0], [0], [1], [0, 0, 1, 1], [], []>} : vector<2x32xbf16>, vector<32x384xbf16>, vector<2x384xf32> -> vector<2x384xf32>
      %354 = arith.addf %345, %353 : vector<2x384xf32>
      %c0_323 = arith.constant 0 : index
      %c2_324 = arith.constant 2 : index
      %c6_325 = arith.constant 6 : index
      %c0_326 = arith.constant 0 : index
      %355 = vector.load %arg8[%c0_323, %c2_324, %c6_325, %c0_326] : memref<2x3x16x32xf32, #tpu.memory_space<vmem>>, vector<2x1x1x32xf32>
      %356 = vector.shape_cast %355 : vector<2x1x1x32xf32> to vector<2x32xf32>
      %cst_327 = arith.constant 2.500000e-01 : f32
      %357 = vector.broadcast %cst_327 : f32 to vector<2x32xf32>
      %358 = arith.mulf %356, %357 : vector<2x32xf32>
      %359 = arith.truncf %358 : vector<2x32xf32> to vector<2x32xbf16>
      %c38 = arith.constant 38 : index
      %c0_328 = arith.constant 0 : index
      %c0_329 = arith.constant 0 : index
      %360 = vector.load %arg3[%c38, %c0_328, %c0_329] : memref<48x32x384xbf16, #tpu.memory_space<vmem>>, vector<1x32x384xbf16>
      %361 = vector.shape_cast %360 : vector<1x32x384xbf16> to vector<32x384xbf16>
      %cst_330 = arith.constant dense<0.000000e+00> : vector<2x384xf32>
      %362 = tpu.matmul %359, %361, %cst_330 {dimension_numbers = #tpu.dot_dimension_numbers<[1], [0], [0], [1], [0, 0, 1, 1], [], []>} : vector<2x32xbf16>, vector<32x384xbf16>, vector<2x384xf32> -> vector<2x384xf32>
      %363 = arith.addf %354, %362 : vector<2x384xf32>
      %c0_331 = arith.constant 0 : index
      %c2_332 = arith.constant 2 : index
      %c7_333 = arith.constant 7 : index
      %c0_334 = arith.constant 0 : index
      %364 = vector.load %arg8[%c0_331, %c2_332, %c7_333, %c0_334] : memref<2x3x16x32xf32, #tpu.memory_space<vmem>>, vector<2x1x1x32xf32>
      %365 = vector.shape_cast %364 : vector<2x1x1x32xf32> to vector<2x32xf32>
      %cst_335 = arith.constant 2.500000e-01 : f32
      %366 = vector.broadcast %cst_335 : f32 to vector<2x32xf32>
      %367 = arith.mulf %365, %366 : vector<2x32xf32>
      %368 = arith.truncf %367 : vector<2x32xf32> to vector<2x32xbf16>
      %c39 = arith.constant 39 : index
      %c0_336 = arith.constant 0 : index
      %c0_337 = arith.constant 0 : index
      %369 = vector.load %arg3[%c39, %c0_336, %c0_337] : memref<48x32x384xbf16, #tpu.memory_space<vmem>>, vector<1x32x384xbf16>
      %370 = vector.shape_cast %369 : vector<1x32x384xbf16> to vector<32x384xbf16>
      %cst_338 = arith.constant dense<0.000000e+00> : vector<2x384xf32>
      %371 = tpu.matmul %368, %370, %cst_338 {dimension_numbers = #tpu.dot_dimension_numbers<[1], [0], [0], [1], [0, 0, 1, 1], [], []>} : vector<2x32xbf16>, vector<32x384xbf16>, vector<2x384xf32> -> vector<2x384xf32>
      %372 = arith.addf %363, %371 : vector<2x384xf32>
      %c0_339 = arith.constant 0 : index
      %c2_340 = arith.constant 2 : index
      %c8_341 = arith.constant 8 : index
      %c0_342 = arith.constant 0 : index
      %373 = vector.load %arg8[%c0_339, %c2_340, %c8_341, %c0_342] : memref<2x3x16x32xf32, #tpu.memory_space<vmem>>, vector<2x1x1x32xf32>
      %374 = vector.shape_cast %373 : vector<2x1x1x32xf32> to vector<2x32xf32>
      %cst_343 = arith.constant 2.500000e-01 : f32
      %375 = vector.broadcast %cst_343 : f32 to vector<2x32xf32>
      %376 = arith.mulf %374, %375 : vector<2x32xf32>
      %377 = arith.truncf %376 : vector<2x32xf32> to vector<2x32xbf16>
      %c40 = arith.constant 40 : index
      %c0_344 = arith.constant 0 : index
      %c0_345 = arith.constant 0 : index
      %378 = vector.load %arg3[%c40, %c0_344, %c0_345] : memref<48x32x384xbf16, #tpu.memory_space<vmem>>, vector<1x32x384xbf16>
      %379 = vector.shape_cast %378 : vector<1x32x384xbf16> to vector<32x384xbf16>
      %cst_346 = arith.constant dense<0.000000e+00> : vector<2x384xf32>
      %380 = tpu.matmul %377, %379, %cst_346 {dimension_numbers = #tpu.dot_dimension_numbers<[1], [0], [0], [1], [0, 0, 1, 1], [], []>} : vector<2x32xbf16>, vector<32x384xbf16>, vector<2x384xf32> -> vector<2x384xf32>
      %381 = arith.addf %372, %380 : vector<2x384xf32>
      %c0_347 = arith.constant 0 : index
      %c2_348 = arith.constant 2 : index
      %c9_349 = arith.constant 9 : index
      %c0_350 = arith.constant 0 : index
      %382 = vector.load %arg8[%c0_347, %c2_348, %c9_349, %c0_350] : memref<2x3x16x32xf32, #tpu.memory_space<vmem>>, vector<2x1x1x32xf32>
      %383 = vector.shape_cast %382 : vector<2x1x1x32xf32> to vector<2x32xf32>
      %cst_351 = arith.constant 2.500000e-01 : f32
      %384 = vector.broadcast %cst_351 : f32 to vector<2x32xf32>
      %385 = arith.mulf %383, %384 : vector<2x32xf32>
      %386 = arith.truncf %385 : vector<2x32xf32> to vector<2x32xbf16>
      %c41 = arith.constant 41 : index
      %c0_352 = arith.constant 0 : index
      %c0_353 = arith.constant 0 : index
      %387 = vector.load %arg3[%c41, %c0_352, %c0_353] : memref<48x32x384xbf16, #tpu.memory_space<vmem>>, vector<1x32x384xbf16>
      %388 = vector.shape_cast %387 : vector<1x32x384xbf16> to vector<32x384xbf16>
      %cst_354 = arith.constant dense<0.000000e+00> : vector<2x384xf32>
      %389 = tpu.matmul %386, %388, %cst_354 {dimension_numbers = #tpu.dot_dimension_numbers<[1], [0], [0], [1], [0, 0, 1, 1], [], []>} : vector<2x32xbf16>, vector<32x384xbf16>, vector<2x384xf32> -> vector<2x384xf32>
      %390 = arith.addf %381, %389 : vector<2x384xf32>
      %c0_355 = arith.constant 0 : index
      %c2_356 = arith.constant 2 : index
      %c10_357 = arith.constant 10 : index
      %c0_358 = arith.constant 0 : index
      %391 = vector.load %arg8[%c0_355, %c2_356, %c10_357, %c0_358] : memref<2x3x16x32xf32, #tpu.memory_space<vmem>>, vector<2x1x1x32xf32>
      %392 = vector.shape_cast %391 : vector<2x1x1x32xf32> to vector<2x32xf32>
      %cst_359 = arith.constant 2.500000e-01 : f32
      %393 = vector.broadcast %cst_359 : f32 to vector<2x32xf32>
      %394 = arith.mulf %392, %393 : vector<2x32xf32>
      %395 = arith.truncf %394 : vector<2x32xf32> to vector<2x32xbf16>
      %c42 = arith.constant 42 : index
      %c0_360 = arith.constant 0 : index
      %c0_361 = arith.constant 0 : index
      %396 = vector.load %arg3[%c42, %c0_360, %c0_361] : memref<48x32x384xbf16, #tpu.memory_space<vmem>>, vector<1x32x384xbf16>
      %397 = vector.shape_cast %396 : vector<1x32x384xbf16> to vector<32x384xbf16>
      %cst_362 = arith.constant dense<0.000000e+00> : vector<2x384xf32>
      %398 = tpu.matmul %395, %397, %cst_362 {dimension_numbers = #tpu.dot_dimension_numbers<[1], [0], [0], [1], [0, 0, 1, 1], [], []>} : vector<2x32xbf16>, vector<32x384xbf16>, vector<2x384xf32> -> vector<2x384xf32>
      %399 = arith.addf %390, %398 : vector<2x384xf32>
      %c0_363 = arith.constant 0 : index
      %c2_364 = arith.constant 2 : index
      %c11_365 = arith.constant 11 : index
      %c0_366 = arith.constant 0 : index
      %400 = vector.load %arg8[%c0_363, %c2_364, %c11_365, %c0_366] : memref<2x3x16x32xf32, #tpu.memory_space<vmem>>, vector<2x1x1x32xf32>
      %401 = vector.shape_cast %400 : vector<2x1x1x32xf32> to vector<2x32xf32>
      %cst_367 = arith.constant 2.500000e-01 : f32
      %402 = vector.broadcast %cst_367 : f32 to vector<2x32xf32>
      %403 = arith.mulf %401, %402 : vector<2x32xf32>
      %404 = arith.truncf %403 : vector<2x32xf32> to vector<2x32xbf16>
      %c43 = arith.constant 43 : index
      %c0_368 = arith.constant 0 : index
      %c0_369 = arith.constant 0 : index
      %405 = vector.load %arg3[%c43, %c0_368, %c0_369] : memref<48x32x384xbf16, #tpu.memory_space<vmem>>, vector<1x32x384xbf16>
      %406 = vector.shape_cast %405 : vector<1x32x384xbf16> to vector<32x384xbf16>
      %cst_370 = arith.constant dense<0.000000e+00> : vector<2x384xf32>
      %407 = tpu.matmul %404, %406, %cst_370 {dimension_numbers = #tpu.dot_dimension_numbers<[1], [0], [0], [1], [0, 0, 1, 1], [], []>} : vector<2x32xbf16>, vector<32x384xbf16>, vector<2x384xf32> -> vector<2x384xf32>
      %408 = arith.addf %399, %407 : vector<2x384xf32>
      %c0_371 = arith.constant 0 : index
      %c2_372 = arith.constant 2 : index
      %c12_373 = arith.constant 12 : index
      %c0_374 = arith.constant 0 : index
      %409 = vector.load %arg8[%c0_371, %c2_372, %c12_373, %c0_374] : memref<2x3x16x32xf32, #tpu.memory_space<vmem>>, vector<2x1x1x32xf32>
      %410 = vector.shape_cast %409 : vector<2x1x1x32xf32> to vector<2x32xf32>
      %cst_375 = arith.constant 2.500000e-01 : f32
      %411 = vector.broadcast %cst_375 : f32 to vector<2x32xf32>
      %412 = arith.mulf %410, %411 : vector<2x32xf32>
      %413 = arith.truncf %412 : vector<2x32xf32> to vector<2x32xbf16>
      %c44 = arith.constant 44 : index
      %c0_376 = arith.constant 0 : index
      %c0_377 = arith.constant 0 : index
      %414 = vector.load %arg3[%c44, %c0_376, %c0_377] : memref<48x32x384xbf16, #tpu.memory_space<vmem>>, vector<1x32x384xbf16>
      %415 = vector.shape_cast %414 : vector<1x32x384xbf16> to vector<32x384xbf16>
      %cst_378 = arith.constant dense<0.000000e+00> : vector<2x384xf32>
      %416 = tpu.matmul %413, %415, %cst_378 {dimension_numbers = #tpu.dot_dimension_numbers<[1], [0], [0], [1], [0, 0, 1, 1], [], []>} : vector<2x32xbf16>, vector<32x384xbf16>, vector<2x384xf32> -> vector<2x384xf32>
      %417 = arith.addf %408, %416 : vector<2x384xf32>
      %c0_379 = arith.constant 0 : index
      %c2_380 = arith.constant 2 : index
      %c13_381 = arith.constant 13 : index
      %c0_382 = arith.constant 0 : index
      %418 = vector.load %arg8[%c0_379, %c2_380, %c13_381, %c0_382] : memref<2x3x16x32xf32, #tpu.memory_space<vmem>>, vector<2x1x1x32xf32>
      %419 = vector.shape_cast %418 : vector<2x1x1x32xf32> to vector<2x32xf32>
      %cst_383 = arith.constant 2.500000e-01 : f32
      %420 = vector.broadcast %cst_383 : f32 to vector<2x32xf32>
      %421 = arith.mulf %419, %420 : vector<2x32xf32>
      %422 = arith.truncf %421 : vector<2x32xf32> to vector<2x32xbf16>
      %c45 = arith.constant 45 : index
      %c0_384 = arith.constant 0 : index
      %c0_385 = arith.constant 0 : index
      %423 = vector.load %arg3[%c45, %c0_384, %c0_385] : memref<48x32x384xbf16, #tpu.memory_space<vmem>>, vector<1x32x384xbf16>
      %424 = vector.shape_cast %423 : vector<1x32x384xbf16> to vector<32x384xbf16>
      %cst_386 = arith.constant dense<0.000000e+00> : vector<2x384xf32>
      %425 = tpu.matmul %422, %424, %cst_386 {dimension_numbers = #tpu.dot_dimension_numbers<[1], [0], [0], [1], [0, 0, 1, 1], [], []>} : vector<2x32xbf16>, vector<32x384xbf16>, vector<2x384xf32> -> vector<2x384xf32>
      %426 = arith.addf %417, %425 : vector<2x384xf32>
      %c0_387 = arith.constant 0 : index
      %c2_388 = arith.constant 2 : index
      %c14_389 = arith.constant 14 : index
      %c0_390 = arith.constant 0 : index
      %427 = vector.load %arg8[%c0_387, %c2_388, %c14_389, %c0_390] : memref<2x3x16x32xf32, #tpu.memory_space<vmem>>, vector<2x1x1x32xf32>
      %428 = vector.shape_cast %427 : vector<2x1x1x32xf32> to vector<2x32xf32>
      %cst_391 = arith.constant 2.500000e-01 : f32
      %429 = vector.broadcast %cst_391 : f32 to vector<2x32xf32>
      %430 = arith.mulf %428, %429 : vector<2x32xf32>
      %431 = arith.truncf %430 : vector<2x32xf32> to vector<2x32xbf16>
      %c46 = arith.constant 46 : index
      %c0_392 = arith.constant 0 : index
      %c0_393 = arith.constant 0 : index
      %432 = vector.load %arg3[%c46, %c0_392, %c0_393] : memref<48x32x384xbf16, #tpu.memory_space<vmem>>, vector<1x32x384xbf16>
      %433 = vector.shape_cast %432 : vector<1x32x384xbf16> to vector<32x384xbf16>
      %cst_394 = arith.constant dense<0.000000e+00> : vector<2x384xf32>
      %434 = tpu.matmul %431, %433, %cst_394 {dimension_numbers = #tpu.dot_dimension_numbers<[1], [0], [0], [1], [0, 0, 1, 1], [], []>} : vector<2x32xbf16>, vector<32x384xbf16>, vector<2x384xf32> -> vector<2x384xf32>
      %435 = arith.addf %426, %434 : vector<2x384xf32>
      %c0_395 = arith.constant 0 : index
      %c2_396 = arith.constant 2 : index
      %c15_397 = arith.constant 15 : index
      %c0_398 = arith.constant 0 : index
      %436 = vector.load %arg8[%c0_395, %c2_396, %c15_397, %c0_398] : memref<2x3x16x32xf32, #tpu.memory_space<vmem>>, vector<2x1x1x32xf32>
      %437 = vector.shape_cast %436 : vector<2x1x1x32xf32> to vector<2x32xf32>
      %cst_399 = arith.constant 2.500000e-01 : f32
      %438 = vector.broadcast %cst_399 : f32 to vector<2x32xf32>
      %439 = arith.mulf %437, %438 : vector<2x32xf32>
      %440 = arith.truncf %439 : vector<2x32xf32> to vector<2x32xbf16>
      %c47 = arith.constant 47 : index
      %c0_400 = arith.constant 0 : index
      %c0_401 = arith.constant 0 : index
      %441 = vector.load %arg3[%c47, %c0_400, %c0_401] : memref<48x32x384xbf16, #tpu.memory_space<vmem>>, vector<1x32x384xbf16>
      %442 = vector.shape_cast %441 : vector<1x32x384xbf16> to vector<32x384xbf16>
      %cst_402 = arith.constant dense<0.000000e+00> : vector<2x384xf32>
      %443 = tpu.matmul %440, %442, %cst_402 {dimension_numbers = #tpu.dot_dimension_numbers<[1], [0], [0], [1], [0, 0, 1, 1], [], []>} : vector<2x32xbf16>, vector<32x384xbf16>, vector<2x384xf32> -> vector<2x384xf32>
      %444 = arith.addf %435, %443 : vector<2x384xf32>
      %c0_403 = arith.constant 0 : index
      %c0_404 = arith.constant 0 : index
      %445 = vector.load %arg4[%c0_403, %c0_404] : memref<1x384xf32, #tpu.memory_space<vmem>>, vector<1x384xf32>
      %446 = vector.broadcast %445 : vector<1x384xf32> to vector<2x384xf32>
      %447 = arith.addf %444, %446 : vector<2x384xf32>
      %c0_405 = arith.constant 0 : index
      %c0_406 = arith.constant 0 : index
      %448 = vector.load %arg5[%c0_405, %c0_406] : memref<1x384xf32, #tpu.memory_space<vmem>>, vector<1x384xf32>
      %c0_407 = arith.constant 0 : index
      %c0_408 = arith.constant 0 : index
      %449 = vector.load %arg6[%c0_407, %c0_408] : memref<1x384xf32, #tpu.memory_space<vmem>>, vector<1x384xf32>
      %cst_409 = arith.constant dense<0.000000e+00> : vector<2xf32>
      %450 = vector.multi_reduction <add>, %447, %cst_409 [1] : vector<2x384xf32> to vector<2xf32>
      %451 = vector.shape_cast %450 : vector<2xf32> to vector<2x1xf32>
      %cst_410 = arith.constant 3.840000e+02 : f32
      %452 = vector.broadcast %cst_410 : f32 to vector<2x1xf32>
      %453 = arith.divf %451, %452 : vector<2x1xf32>
      %454 = vector.broadcast %453 : vector<2x1xf32> to vector<2x384xf32>
      %455 = arith.subf %447, %454 : vector<2x384xf32>
      %456 = arith.mulf %455, %455 : vector<2x384xf32>
      %cst_411 = arith.constant dense<0.000000e+00> : vector<2xf32>
      %457 = vector.multi_reduction <add>, %456, %cst_411 [1] : vector<2x384xf32> to vector<2xf32>
      %458 = vector.shape_cast %457 : vector<2xf32> to vector<2x1xf32>
      %cst_412 = arith.constant 3.840000e+02 : f32
      %459 = vector.broadcast %cst_412 : f32 to vector<2x1xf32>
      %460 = arith.divf %458, %459 : vector<2x1xf32>
      %461 = vector.broadcast %453 : vector<2x1xf32> to vector<2x384xf32>
      %462 = arith.subf %447, %461 : vector<2x384xf32>
      %cst_413 = arith.constant 9.99999997E-7 : f32
      %463 = vector.broadcast %cst_413 : f32 to vector<2x1xf32>
      %464 = arith.addf %460, %463 : vector<2x1xf32>
      %465 = math.rsqrt %464 : vector<2x1xf32>
      %466 = vector.broadcast %465 : vector<2x1xf32> to vector<2x384xf32>
      %467 = arith.mulf %462, %466 : vector<2x384xf32>
      %468 = vector.broadcast %448 : vector<1x384xf32> to vector<2x384xf32>
      %469 = arith.mulf %467, %468 : vector<2x384xf32>
      %470 = vector.broadcast %449 : vector<1x384xf32> to vector<2x384xf32>
      %471 = arith.addf %469, %470 : vector<2x384xf32>
      %c0_414 = arith.constant 0 : index
      %c0_415 = arith.constant 0 : index
      %472 = vector.load %arg7[%c0_414, %c0_415] : memref<2x384xf32, #tpu.memory_space<vmem>>, vector<2x384xf32>
      tpu.vector_store %arg7[%c0_414, %c0_415], %471 {strides = array<i32>} : memref<2x384xf32, #tpu.memory_space<vmem>>, vector<2x384xf32>,
    } else {
    }
    return
  }
  func.func @transform_0(%arg0: i32, %arg1: i32) -> (i32, i32, i32, i32) {
    %c0_i32 = arith.constant 0 : i32
    %c0_i32_0 = arith.constant 0 : i32
    %c0_i32_1 = arith.constant 0 : i32
    return %arg0, %c0_i32, %arg1, %c0_i32_0 : i32, i32, i32, i32
  }
  func.func @transform_1(%arg0: i32, %arg1: i32) -> (i32, i32, i32) {
    %c0_i32 = arith.constant 0 : i32
    %c0_i32_0 = arith.constant 0 : i32
    %c0_i32_1 = arith.constant 0 : i32
    %c0_i32_2 = arith.constant 0 : i32
    return %c0_i32, %c0_i32_0, %c0_i32_1 : i32, i32, i32
  }
  func.func @transform_2(%arg0: i32, %arg1: i32) -> (i32, i32) {
    %c0_i32 = arith.constant 0 : i32
    %c0_i32_0 = arith.constant 0 : i32
    %c0_i32_1 = arith.constant 0 : i32
    return %c0_i32, %c0_i32_0 : i32, i32
  }
  func.func @transform_3(%arg0: i32, %arg1: i32) -> (i32, i32) {
    %c0_i32 = arith.constant 0 : i32
    %c0_i32_0 = arith.constant 0 : i32
    %c0_i32_1 = arith.constant 0 : i32
    return %c0_i32, %c0_i32_0 : i32, i32
  }
  func.func @transform_4(%arg0: i32, %arg1: i32) -> (i32, i32) {
    %c0_i32 = arith.constant 0 : i32
    %c0_i32_0 = arith.constant 0 : i32
    %c0_i32_1 = arith.constant 0 : i32
    return %c0_i32, %c0_i32_0 : i32, i32
  }
  func.func @transform_5(%arg0: i32, %arg1: i32) -> (i32, i32) {
    %c0_i32 = arith.constant 0 : i32
    %c0_i32_0 = arith.constant 0 : i32
    return %arg0, %c0_i32 : i32, i32
  }
}

</mosaic_0001>

<bundles_post_ra>
// kernel: tpu_custom_call.1
= control target key start
LH: loop header
LB: loop body
LE: loop exit
PB: predicated region body
PF: predicated region fallthrough
CT: control target
= control target key end

     0   :  { %10 = vsyncpa [#allocation4], 0  ;;  %s9083_s0 = inlined_call_operand.hbm [shape: f32[2,3,32,32], index: 0, kind: input, shape index: {}]   ;;  %s9084_s1 = inlined_call_operand.hbm [shape: bf16[48,32,384], index: 1, kind: input, shape index: {}]   ;;  %s9085_s2 = inlined_call_operand.hbm [shape: f32[1,384], index: 2, kind: input, shape index: {}]   ;;  %s9086_s3 = inlined_call_operand.hbm [shape: f32[1,384], index: 3, kind: input, shape index: {}]   ;;  %s9087_s4 = inlined_call_operand.hbm [shape: f32[1,384], index: 4, kind: input, shape index: {}]   ;;  %s9088_s5 = inlined_call_operand.hbm [shape: f32[2,384], index: 5, kind: output, shape index: {}]  }
   0x1   :  { %11 = vsyncpa [#allocation7], 0 }
   0x2   :  { %12 = vsyncpa [#allocation10], 0 }
   0x3   :  { %13 = vsyncpa [#allocation5], 0  ;;  %s8520_s18 = smov [#allocation6]   ;;  %s8380_s22 = scalar_lea.hbm %s9084_s1, 36864 }
   0x4   :  { %s31_s19 = sshll.u32 %s8520_s18, 4  ;;  %p8381_p0 = scmp.ne.s32.totalorder %s9084_s1, %s8380_s22  ;;  %s32_s19 = int_to_ptr.vmem [resolvable:$true] %s31_s19 }
   0x5   :  { %p8384_p1 = scmp.lt.u32.totalorder %s8380_s22, %s9084_s1 }
   0x7   :  { %p8386_p2 = pnand %p8384_p1, %p8381_p0 }
   0x9   :  { %8389 = shalt.err (!%p8386_p2)
}
   0xa   :  { %s8390_s27 = scalar_lea.vmem %s32_s19, 36864  ;;  %p8395_p4 = scmp.lt.s32.totalorder %s32_s19, %s32_s19 }
   0xb   :  { %p8391_p3 = scmp.ne.s32.totalorder %s32_s19, %s8390_s27  ;;  %p8396_p5 = scmp.lt.s32.totalorder %s8390_s27, %s8390_s27 }
   0xd   :  { %p8397_p6 = por %p8396_p5, %p8395_p4 }
   0xf   :  { %p8398_p7 = pnand %p8397_p6, %p8391_p3 }
  0x11   :  { %8401 = shalt.err (!%p8398_p7)
}
  0x12   :  { %s8521_s28 = smov 192   ;;  %s8522_s29 = smov 12  }
  0x13   :  { %37 = dma.hbm_to_vmem [thread:$0]  %s9084_s1, 36864, %s32_s19, [#allocation7], %s8521_s28, %s8521_s28, %s8522_s29  }
  0x14   :  { %s8523_s7 = smov [#allocation9]   ;;  %s8524_s9 = smov [#allocation3]  }
  0x15   :  { %s54_s8 = sshll.u32 %s8523_s7, 4  ;;  %s19_s10 = sshll.u32 %s8524_s9, 4  ;;  %s55_s8 = int_to_ptr.vmem [resolvable:$true] %s54_s8  ;;  %s20_s10 = int_to_ptr.vmem [resolvable:$true] %s19_s10 }
  0x16   :  { %s8402_s13 = scalar_lea.hbm %s9086_s3, 48 }
  0x17   :  { %p8403_p8 = scmp.ne.s32.totalorder %s9086_s3, %s8402_s13  ;;  %p8406_p9 = scmp.lt.u32.totalorder %s8402_s13, %s9086_s3 }
  0x19   :  { %p8408_p10 = pnand %p8406_p9, %p8403_p8 }
  0x1b   :  { %8411 = shalt.err (!%p8408_p10)
}
  0x1c   :  { %s8412_s1 = scalar_lea.vmem %s55_s8, 48  ;;  %s8416_s18 = scalar_lea.vmem %s55_s8, 64 }
  0x1d   :  { %p8413_p11 = scmp.ne.s32.totalorder %s55_s8, %s8412_s1  ;;  %p8417_p12 = scmp.lt.s32.totalorder %s55_s8, %s55_s8 }
  0x1e   :  { %p8418_p13 = scmp.lt.s32.totalorder %s8416_s18, %s8412_s1 }
  0x20   :  { %p8419_p0 = por %p8418_p13, %p8417_p12 }
  0x22   :  { %p8420_p1 = pnand %p8419_p0, %p8413_p11 }
  0x24   :  { %8423 = shalt.err (!%p8420_p1)
}
  0x25   :  { %57 = dma.hbm_to_vmem [thread:$0]  %s9086_s3, 48, %s55_s8, [#allocation10]  }
  0x26   :  { %s8424_s23 = scalar_lea.hbm %s9083_s0, 3072 }
  0x27   :  { %p8425_p2 = scmp.ne.s32.totalorder %s9083_s0, %s8424_s23  ;;  %p8428_p3 = scmp.lt.u32.totalorder %s8424_s23, %s9083_s0 }
  0x29   :  { %p8430_p4 = pnand %p8428_p3, %p8425_p2 }
  0x2b   :  { %8433 = shalt.err (!%p8430_p4)
}
  0x2c   :  { %s8434_s28 = scalar_lea.vmem %s20_s10, 3072  ;;  %p8439_p6 = scmp.lt.s32.totalorder %s20_s10, %s20_s10 }
  0x2d   :  { %p8435_p5 = scmp.ne.s32.totalorder %s20_s10, %s8434_s28  ;;  %p8440_p7 = scmp.lt.s32.totalorder %s8434_s28, %s8434_s28 }
  0x2f   :  { %p8441_p8 = por %p8440_p7, %p8439_p6 }
  0x31   :  { %p8442_p9 = pnand %p8441_p8, %p8435_p5 }
  0x33   :  { %8445 = shalt.err (!%p8442_p9)
}
  0x34   :  { %s8525_s3 = smov 128   ;;  %s8526_s29 = smov 8  }
  0x35   :  { %25 = dma.hbm_to_vmem [thread:$0]  %s9083_s0, 3072, %s20_s10, [#allocation4], %s8525_s3, %s8525_s3, %s8526_s29  }
  0x36   :  { %s8527_s7 = smov [#allocation8]   ;;  %s8528_s9 = smov [#allocation11]  }
  0x37   :  { %s44_s8 = sshll.u32 %s8527_s7, 4  ;;  %s64_s11 = sshll.u32 %s8528_s9, 4  ;;  %s45_s8 = int_to_ptr.vmem [resolvable:$true] %s44_s8  ;;  %s65_s11 = int_to_ptr.vmem [resolvable:$true] %s64_s11 }
  0x38   :  { %s8446_s14 = scalar_lea.hbm %s9085_s2, 48 }
  0x39   :  { %p8447_p10 = scmp.ne.s32.totalorder %s9085_s2, %s8446_s14  ;;  %p8450_p11 = scmp.lt.u32.totalorder %s8446_s14, %s9085_s2 }
  0x3b   :  { %p8452_p12 = pnand %p8450_p11, %p8447_p10 }
  0x3d   :  { %8455 = shalt.err (!%p8452_p12)
}
  0x3e   :  { %s8456_s0 = scalar_lea.vmem %s45_s8, 48  ;;  %s8460_s10 = scalar_lea.vmem %s45_s8, 64 }
  0x3f   :  { %p8457_p13 = scmp.ne.s32.totalorder %s45_s8, %s8456_s0  ;;  %p8461_p0 = scmp.lt.s32.totalorder %s45_s8, %s45_s8 }
  0x40   :  { %p8462_p1 = scmp.lt.s32.totalorder %s8460_s10, %s8456_s0 }
  0x42   :  { %p8463_p2 = por %p8462_p1, %p8461_p0 }
  0x44   :  { %p8464_p3 = pnand %p8463_p2, %p8457_p13 }
  0x46   :  { %8467 = shalt.err (!%p8464_p3)
}
  0x47   :  { %47 = dma.hbm_to_vmem [thread:$0]  %s9085_s2, 48, %s45_s8, [#allocation7]  }
  0x48   :  { %s8468_s22 = scalar_lea.hbm %s9087_s4, 48 }
  0x49   :  { %p8469_p4 = scmp.ne.s32.totalorder %s9087_s4, %s8468_s22  ;;  %p8472_p5 = scmp.lt.u32.totalorder %s8468_s22, %s9087_s4 }
  0x4b   :  { %p8474_p6 = pnand %p8472_p5, %p8469_p4 }
  0x4d   :  { %8477 = shalt.err (!%p8474_p6)
}
  0x4e   :  { %s8478_s27 = scalar_lea.vmem %s65_s11, 48  ;;  %s8482_s28 = scalar_lea.vmem %s65_s11, 64 }
  0x4f   :  { %p8479_p7 = scmp.ne.s32.totalorder %s65_s11, %s8478_s27  ;;  %p8483_p8 = scmp.lt.s32.totalorder %s65_s11, %s65_s11 }
  0x50   :  { %p8484_p9 = scmp.lt.s32.totalorder %s8482_s28, %s8478_s27 }
  0x52   :  { %p8485_p10 = por %p8484_p9, %p8483_p8 }
  0x54   :  { %p8486_p11 = pnand %p8485_p10, %p8479_p7 }
  0x56   :  { %8489 = shalt.err (!%p8486_p11)
}
  0x57   :  { %67 = dma.hbm_to_vmem [thread:$0]  %s9087_s4, 48, %s65_s11, [#allocation10]  }
  0x58   :  { %8512 = dma.done.wait [#allocation4], 3072  }
  0x59   :  { %8513 = vsyncadd [#allocation4], 4294964224 }
  0x5a   :  { %8514 = dma.done.wait [#allocation7], 36912  }
  0x5b   :  { %8515 = vsyncadd [#allocation7], 4294930384 }
  0x5c   :  { %8516 = dma.done.wait [#allocation10], 96  }
  0x5d   :  { %8517 = vsyncadd [#allocation10], 4294967200  ;;  %vm88_vm0 = vcmask 261120   ;;  %v8529_v0 = vmov 0.0   ;;  %v8530_v1 = vmov 0   ;;  %vm8531_vm1 = vmmov 0  }
  0x5e   :  { %7596 = vmatprep.subr.bf16.mxu1 %v8529_v0  ;;  %281 = vmatprep.mubr.bf16.mxu0 %v8530_v1  ;;  %89 = vst.msk [vmem:[#allocation2] sm:$0xff] %vm88_vm0, %v8529_v0  ;;  %95 = vst.msk [vmem:[#allocation2 + $0x30] sm:$0xff] %vm88_vm0, %v8529_v0  ;;  %v7994_v2 = vld [vmem:[#allocation6 + $0x34] ss:$12 sps:$4 sm:$0xff]   ;;  %v7996_v3 = vld [vmem:[#allocation6 + $0x30] ss:$12 sps:$4 sm:$0xff]  }
  0x5f   :  { %90 = vst.msk [vmem:[#allocation2 + $0x8] sm:$0xff] %vm88_vm0, %v8529_v0  ;;  %91 = vst.msk [vmem:[#allocation2 + $0x10] sm:$0xff] %vm88_vm0, %v8529_v0  ;;  %7600 = vmatprep.mubr.msk.bf16.mxu1 %vm8531_vm1, %v8529_v0  ;;  %249 = vmatprep.subr.bf16.mxu0 %v7994_v2  ;;  %v7997_v4 = vld [vmem:[#allocation6 + $0x38] ss:$12 sps:$4 sm:$0xff]   ;;  %v8000_v6 = vld [vmem:[#allocation6 + $0x48] ss:$12 sps:$4 sm:$0xff]  }
  0x60   :  { %92 = vst.msk [vmem:[#allocation2 + $0x18] sm:$0xff] %vm88_vm0, %v8529_v0  ;;  %93 = vst.msk [vmem:[#allocation2 + $0x20] sm:$0xff] %vm88_vm0, %v8529_v0  ;;  %250 = vmatpush1.bf16.msra.mxu0 %v7996_v3  ;;  %v7998_v5 = vld [vmem:[#allocation6 + $0x4c] ss:$12 sps:$4 sm:$0xff]   ;;  %7597 = vmatpush3.bf16.msra.mxu1 %v7997_v4  ;;  %v8001_v7 = vld [vmem:[#allocation6 + $0x50] ss:$12 sps:$4 sm:$0xff]  }
  0x61   :  { %94 = vst.msk [vmem:[#allocation2 + $0x28] sm:$0xff] %vm88_vm0, %v8529_v0  ;;  %96 = vst.msk [vmem:[#allocation2 + $0x38] sm:$0xff] %vm88_vm0, %v8529_v0  ;;  %251 = vmatprep.subr.bf16.mxu0 %v7998_v5  ;;  %7598 = vmatprep.subr.bf16.mxu1 %v8529_v0  ;;  %v8004_v8 = vld [vmem:[#allocation6 + $0x4] ss:$12 sps:$4 sm:$0xff]   ;;  %vm211_vm2 = vcmask 1041409   ;;  %vm6963_vm3 = vcmask 1041408  }
  0x62   :  { %97 = vst.msk [vmem:[#allocation2 + $0x40] sm:$0xff] %vm88_vm0, %v8529_v0  ;;  %98 = vst.msk [vmem:[#allocation2 + $0x48] sm:$0xff] %vm88_vm0, %v8529_v0  ;;  %v101_v9 = vld [vmem:[#allocation3] sm:$0xff]  ;;  %v113_v11 = vld [vmem:[#allocation3 + $0x10] sm:$0xff]  ;;  %s8533_s4 = smov [#allocation12]  }
  0x63   :  { %99 = vst.msk [vmem:[#allocation2 + $0x50] sm:$0xff] %vm88_vm0, %v8529_v0  ;;  %100 = vst.msk [vmem:[#allocation2 + $0x58] sm:$0xff] %vm88_vm0, %v8529_v0  ;;  %v107_v10 = vld [vmem:[#allocation3 + $0x60] sm:$0xff]  ;;  %v119_v12 = vld [vmem:[#allocation3 + $0x70] sm:$0xff]  ;;  %v125_v13 = vadd.f32 %v113_v11, %v101_v9  ;;  %s7057_s29 = sshll.u32 %s8533_s4, 4  ;;  %s7058_s29 = int_to_ptr.vmem [resolvable:$true] %s7057_s29 }
  0x64   :  { %252 = vmatpush1.bf16.msra.mxu0 %v8000_v6  ;;  %7599 = vmatpush3.bf16.msra.mxu1 %v8001_v7  ;;  %v131_v16 = vadd.f32 %v119_v12, %v107_v10  ;;  %v8002_v38 = vld [vmem:[#allocation6] ss:$12 sps:$4 sm:$0xff]   ;;  %v8005_v39 = vld [vmem:[#allocation6 + $0x8] ss:$12 sps:$4 sm:$0xff]   ;;  %v8006_v48 = vld [vmem:[#allocation6 + $0x18] ss:$12 sps:$4 sm:$0xff]   ;;  %p8495_p13 = scmp.lt.s32.totalorder %s7058_s29, %s7058_s29 }
  0x65   :  { %v137_v14 = vld [vmem:[#allocation2] sm:$0xff]  ;;  %v143_v15 = vld [vmem:[#allocation2 + $0x30] sm:$0xff]  ;;  %372 = vmatprep.subr.bf16.mxu0 %v8004_v8  ;;  %7604 = vmatprep.subr.bf16.mxu1 %v8529_v0  ;;  %v8008_v46 = vld [vmem:[#allocation6 + $0x1c] ss:$12 sps:$4 sm:$0xff]   ;;  %s8490_s30 = scalar_lea.vmem %s7058_s29, 96 }
  0x66   :  { %v149_v17 = vadd.f32 %v137_v14, %v125_v13  ;;  %v155_v18 = vadd.f32 %v143_v15, %v131_v16  ;;  %v8009_v49 = vld [vmem:[#allocation6 + $0x20] ss:$12 sps:$4 sm:$0xff]   ;;  %v8012_v54 = vld [vmem:[#allocation6 + $0x64] ss:$12 sps:$4 sm:$0xff]   ;;  %v8013_v58 = vld [vmem:[#allocation6 + $0x68] ss:$12 sps:$4 sm:$0xff]   ;;  %p8491_p12 = scmp.ne.s32.totalorder %s7058_s29, %s8490_s30  ;;  %p8496_p0 = scmp.lt.s32.totalorder %s8490_s30, %s8490_s30 }
  0x67   :  { %v8010_v56 = vld [vmem:[#allocation6 + $0x60] ss:$12 sps:$4 sm:$0xff]   ;;  %v8016_v2 = vld [vmem:[#allocation6 + $0x7c] ss:$12 sps:$4 sm:$0xff]   ;;  %v8014_v3 = vld [vmem:[#allocation6 + $0x78] ss:$12 sps:$4 sm:$0xff]  }
  0x68   :  { %162 = vst.msk [vmem:[#allocation2] sm:$0xff] %vm88_vm0, %v149_v17  ;;  %168 = vst.msk [vmem:[#allocation2 + $0x30] sm:$0xff] %vm88_vm0, %v155_v18  ;;  %v8017_v4 = vld [vmem:[#allocation6 + $0x80] ss:$12 sps:$4 sm:$0xff]   ;;  %v8018_v11 = vld [vmem:[#allocation6 + $0x90] ss:$12 sps:$4 sm:$0xff]   ;;  %p8497_p1 = por %p8496_p0, %p8495_p13 }
  0x69   :  { %v8020_v10 = vld [vmem:[#allocation6 + $0x94] ss:$12 sps:$4 sm:$0xff]   ;;  %v8021_v15 = vld [vmem:[#allocation6 + $0x98] ss:$12 sps:$4 sm:$0xff]  }
  0x6a   :  { %v8024_v16 = vld [vmem:[#allocation6 + $0xac] ss:$12 sps:$4 sm:$0xff]   ;;  %p8498_p2 = pnand %p8497_p1, %p8491_p12 }
  0x6f   :  { %v191_v19 = vld [vmem:[#allocation2 + $0x1] sm:$0x1]  ;;  %v177_v20 = vld [vmem:[#allocation2] sm:$0x1]  ;;  %v192_v21 = vld [vmem:[#allocation2 + $0x31] sm:$0x1] }
  0x70   :  { %v193_v22 = vmul.f32 0.25, %v191_v19  ;;  %v178_v23 = vld [vmem:[#allocation2 + $0x30] sm:$0x1]  ;;  %v179_v24 = vmul.f32 0.25, %v177_v20  ;;  %v194_v25 = vmul.f32 0.25, %v192_v21 }
  0x71   :  { %v180_v26 = vmul.f32 0.25, %v178_v23  ;;  %v454_v28 = vld [vmem:[#allocation2 + $0x32] sm:$0x1]  ;;  %v453_v35 = vld [vmem:[#allocation2 + $0x2] sm:$0x1] }
  0x72   :  { %v195_v27 = vpack.c.bf16 %v193_v22, %v193_v22  ;;  %v196_v29 = vpack.c.bf16 %v194_v25, %v194_v25  ;;  %v181_v31 = vpack.c.bf16 %v179_v24, %v179_v24  ;;  %v456_v36 = vmul.f32 0.25, %v454_v28  ;;  %v595_v47 = vld [vmem:[#allocation2 + $0x33] sm:$0x1]  ;;  %v594_v55 = vld [vmem:[#allocation2 + $0x3] sm:$0x1] }
  0x73   :  { %v182_v30 = vpack.c.bf16 %v180_v26, %v180_v26  ;;  %v455_v40 = vmul.f32 0.25, %v453_v35  ;;  %v597_v53 = vmul.f32 0.25, %v595_v47  ;;  %v596_v61 = vmul.f32 0.25, %v594_v55  ;;  %v736_v63 = vld [vmem:[#allocation2 + $0x34] sm:$0x1] }
  0x74   :  { %v208_v32 = vunpack.c.l.b16 %v195_v27  ;;  %v209_v33 = vunpack.c.l.b16 %v196_v29  ;;  %v332_v42 = vunpack.c.l.b16 %v181_v31  ;;  %v458_v44 = vpack.c.bf16 %v456_v36, %v456_v36  ;;  %v735_v9 = vld [vmem:[#allocation2 + $0x4] sm:$0x1]  ;;  %v877_v19 = vld [vmem:[#allocation2 + $0x35] sm:$0x1]  ;;  %v8025_v21 = vld [vmem:[#allocation6 + $0xb0] ss:$12 sps:$4 sm:$0xff]  }
  0x75   :  { %v333_v34 = vunpack.c.l.b16 %v182_v30  ;;  %v457_v51 = vpack.c.bf16 %v455_v40, %v455_v40  ;;  %v599_v62 = vpack.c.bf16 %v597_v53, %v597_v53  ;;  %v738_v5 = vmul.f32 0.25, %v736_v63  ;;  %v8022_v20 = vld [vmem:[#allocation6 + $0xa8] ss:$12 sps:$4 sm:$0xff]   ;;  %v8028_v22 = vld [vmem:[#allocation6 + $0xc4] ss:$12 sps:$4 sm:$0xff]  }
  0x76   :  { %v210_v37 = vrot.slane %v209_v33, 7  ;;  %v471_v52 = vunpack.c.l.b16 %v458_v44  ;;  %v598_v7 = vpack.c.bf16 %v596_v61, %v596_v61  ;;  %v737_v13 = vmul.f32 0.25, %v735_v9  ;;  %v876_v27 = vld [vmem:[#allocation2 + $0x5] sm:$0x1]  ;;  %v8026_v28 = vld [vmem:[#allocation6 + $0xc0] ss:$12 sps:$4 sm:$0xff]  }
  0x77   :  { %v334_v43 = vrot.slane %v333_v34, 7  ;;  %v470_v59 = vunpack.c.l.b16 %v457_v51  ;;  %v612_v8 = vunpack.c.l.b16 %v599_v62  ;;  %v740_v14 = vpack.c.bf16 %v738_v5, %v738_v5  ;;  %v8029_v30 = vld [vmem:[#allocation6 + $0xc8] ss:$12 sps:$4 sm:$0xff]   ;;  %v8030_v40 = vld [vmem:[#allocation6 + $0xd8] ss:$12 sps:$4 sm:$0xff]  }
  0x78   :  { %v212_v41 = vsel %vm211_vm2, %v210_v37, %v208_v32  ;;  %v472_v60 = vrot.slane %v471_v52, 7  ;;  %v611_v17 = vunpack.c.l.b16 %v598_v7  ;;  %v739_v23 = vpack.c.bf16 %v737_v13, %v737_v13  ;;  %v8032_v33 = vld [vmem:[#allocation6 + $0xdc] ss:$12 sps:$4 sm:$0xff]   ;;  %v1018_v36 = vld [vmem:[#allocation2 + $0x36] sm:$0x1] }
  0x79   :  { %v213_v45 = vpack.c.b16 %v212_v41, %v212_v41  ;;  %v335_v50 = vsel %vm211_vm2, %v334_v43, %v332_v42  ;;  %v613_v18 = vrot.slane %v612_v8, 7  ;;  %v753_v24 = vunpack.c.l.b16 %v740_v14  ;;  %v102_v37 = vld [vmem:[#allocation3 + $0x8] sm:$0xff]  ;;  %v120_v41 = vld [vmem:[#allocation3 + $0x78] sm:$0xff]  ;;  %v1017_v53 = vld [vmem:[#allocation2 + $0x6] sm:$0x1] }
  0x7a   :  { %v336_v57 = vpack.c.b16 %v335_v50, %v335_v50  ;;  %v473_v6 = vsel %vm211_vm2, %v472_v60, %v470_v59  ;;  %v879_v26 = vmul.f32 0.25, %v877_v19  ;;  %v752_v31 = vunpack.c.l.b16 %v739_v23  ;;  %v138_v43 = vld [vmem:[#allocation2 + $0x8] sm:$0xff]  ;;  %v144_v44 = vld [vmem:[#allocation2 + $0x38] sm:$0xff]  ;;  %v1159_v63 = vld [vmem:[#allocation2 + $0x37] sm:$0x1] }
  0x7b   :  { %7074 = vmatmul.mubr.msk.bf16.vlgmr.msra.gmra.mrb[0].mxu0 %vm88_vm0, %v213_v45  ;;  %7601 = vmatmul.mubr.msk.bf16.vlgmr.msra.gmra.mrb[0].mxu1 %vm88_vm0, %v213_v45  ;;  %v474_v12 = vpack.c.b16 %v473_v6, %v473_v6  ;;  %v614_v25 = vsel %vm211_vm2, %v613_v18, %v611_v17  ;;  %v754_v32 = vrot.slane %v753_v24, 7  ;;  %v878_v34 = vmul.f32 0.25, %v876_v27  ;;  %v8033_v45 = vld [vmem:[#allocation6 + $0xe0] ss:$12 sps:$4 sm:$0xff]   ;;  %v8034_v55 = vld [vmem:[#allocation6 + $0xf0] ss:$12 sps:$4 sm:$0xff]  }
  0x7c   :  { %373 = vmatpush1.bf16.msra.mxu0 %v8002_v38  ;;  %7605 = vmatpush3.bf16.msra.mxu1 %v8005_v39  ;;  %v615_v29 = vpack.c.b16 %v614_v25, %v614_v25  ;;  %v881_v35 = vpack.c.bf16 %v879_v26, %v879_v26  ;;  %v108_v38 = vld [vmem:[#allocation3 + $0x68] sm:$0xff]  ;;  %v114_v39 = vld [vmem:[#allocation3 + $0x18] sm:$0xff]  ;;  %v1020_v51 = vmul.f32 0.25, %v1018_v36  ;;  %v1019_v60 = vmul.f32 0.25, %v1017_v53  ;;  %v8044_v8 = vld [vmem:[#allocation6 + $0x124] ss:$12 sps:$4 sm:$0xff]  }
  0x7d   :  { %374 = vmatprep.subr.bf16.mxu0 %v8008_v46  ;;  %7606 = vmatprep.subr.bf16.mxu1 %v8529_v0  ;;  %v126_v42 = vadd.f32 %v114_v39, %v102_v37  ;;  %v755_v46 = vsel %vm211_vm2, %v754_v32, %v752_v31  ;;  %v132_v47 = vadd.f32 %v120_v41, %v108_v38  ;;  %v8040_v62 = vld [vmem:[#allocation6 + $0x10c] ss:$12 sps:$4 sm:$0xff]   ;;  %v1161_v7 = vmul.f32 0.25, %v1159_v63  ;;  %v1158_v9 = vld [vmem:[#allocation2 + $0x7] sm:$0x1] }
  0x7e   :  { %404 = vmatprep.mubr.bf16.mxu0 %v8530_v1  ;;  %7608 = vmatprep.mubr.msk.bf16.mxu1 %vm8531_vm1, %v8529_v0  ;;  %v894_v50 = vunpack.c.l.b16 %v881_v35  ;;  %v1022_v61 = vpack.c.bf16 %v1020_v51, %v1020_v51  ;;  %v1021_v5 = vpack.c.bf16 %v1019_v60, %v1019_v60  ;;  %v8048_v13 = vld [vmem:[#allocation6 + $0x13c] ss:$12 sps:$4 sm:$0xff]   ;;  %v8046_v19 = vld [vmem:[#allocation6 + $0x138] ss:$12 sps:$4 sm:$0xff]  }
  0x7f   :  { %v150_v52 = vadd.f32 %v138_v43, %v126_v42  ;;  %v1163_v17 = vpack.c.bf16 %v1161_v7, %v1161_v7  ;;  %v8050_v27 = vld [vmem:[#allocation6 + $0x150] ss:$12 sps:$4 sm:$0xff]   ;;  %v8054_v36 = vld [vmem:[#allocation6 + $0x168] ss:$12 sps:$4 sm:$0xff]   ;;  %v8062_v53 = vld [vmem:[#allocation6 + $0x198] ss:$12 sps:$4 sm:$0xff]  }
  0x80   :  { %375 = vmatpush1.bf16.msra.mxu0 %v8006_v48  ;;  %7607 = vmatpush3.bf16.msra.mxu1 %v8009_v49  ;;  %v8036_v48 = vld [vmem:[#allocation6 + $0xf4] ss:$12 sps:$4 sm:$0xff]   ;;  %v880_v49 = vpack.c.bf16 %v878_v34, %v878_v34  ;;  %v895_v59 = vrot.slane %v894_v50, 7  ;;  %v1035_v6 = vunpack.c.l.b16 %v1022_v61  ;;  %v1034_v14 = vunpack.c.l.b16 %v1021_v5  ;;  %v8056_v34 = vld [vmem:[#allocation6 + $0x16c] ss:$12 sps:$4 sm:$0xff]  }
  0x81   :  { %510 = vmatprep.subr.bf16.mxu0 %v8012_v54  ;;  %7612 = vmatprep.subr.bf16.mxu1 %v8529_v0  ;;  %v156_v54 = vadd.f32 %v144_v44, %v132_v47  ;;  %163 = vst.msk [vmem:[#allocation2 + $0x8] sm:$0xff] %vm88_vm0, %v150_v52  ;;  %v1176_v24 = vunpack.c.l.b16 %v1163_v17  ;;  %v8057_v37 = vld [vmem:[#allocation6 + $0x170] ss:$12 sps:$4 sm:$0xff]   ;;  %v8058_v44 = vld [vmem:[#allocation6 + $0x180] ss:$12 sps:$4 sm:$0xff]  }
  0x82   :  { %v8060_v38 = vld [vmem:[#allocation6 + $0x184] ss:$12 sps:$4 sm:$0xff]   ;;  %v8064_v51 = vld [vmem:[#allocation6 + $0x19c] ss:$12 sps:$4 sm:$0xff]  }
  0x83   :  { %7082 = vmatmul.mubr.msk.bf16.vlgmr.msra.gmra.mrb[4].mxu0 %vm88_vm0, %v336_v57  ;;  %7609 = vmatmul.mubr.msk.bf16.vlgmr.msra.gmra.mrb[4].mxu1 %vm88_vm0, %v336_v57  ;;  %v8037_v57 = vld [vmem:[#allocation6 + $0xf8] ss:$12 sps:$4 sm:$0xff]   ;;  %169 = vst.msk [vmem:[#allocation2 + $0x38] sm:$0xff] %vm88_vm0, %v156_v54  ;;  %v1177_v31 = vrot.slane %v1176_v24, 7  ;;  %v8065_v54 = vld [vmem:[#allocation6 + $0x1a0] ss:$12 sps:$4 sm:$0xff]  }
  0x84   :  { %511 = vmatpush1.bf16.msra.mxu0 %v8010_v56  ;;  %7613 = vmatpush3.bf16.msra.mxu1 %v8013_v58  ;;  %v756_v56 = vpack.c.b16 %v755_v46, %v755_v46  ;;  %v893_v58 = vunpack.c.l.b16 %v880_v49  ;;  %v8061_v46 = vld [vmem:[#allocation6 + $0x188] ss:$12 sps:$4 sm:$0xff]   ;;  %v8066_v61 = vld [vmem:[#allocation6 + $0x1b0] ss:$12 sps:$4 sm:$0xff]   ;;  %v8069_v63 = vld [vmem:[#allocation6 + $0x1b8] ss:$12 sps:$4 sm:$0xff]  }
  0x85   :  { %512 = vmatprep.subr.bf16.mxu0 %v8016_v2  ;;  %7614 = vmatprep.subr.bf16.mxu1 %v8529_v0  ;;  %v8038_v2 = vld [vmem:[#allocation6 + $0x108] ss:$12 sps:$4 sm:$0xff]  }
  0x86   :  { %542 = vmatprep.mubr.bf16.mxu0 %v8530_v1  ;;  %7616 = vmatprep.mubr.msk.bf16.mxu1 %vm8531_vm1, %v8529_v0  ;;  %v8077_v17 = vld [vmem:[#allocation6 + $0x1e8] ss:$12 sps:$4 sm:$0xff]  }
  0x88   :  { %513 = vmatpush1.bf16.msra.mxu0 %v8014_v3  ;;  %7615 = vmatpush3.bf16.msra.mxu1 %v8017_v4  ;;  %v8041_v3 = vld [vmem:[#allocation6 + $0x110] ss:$12 sps:$4 sm:$0xff]   ;;  %v896_v4 = vsel %vm211_vm2, %v895_v59, %v893_v58  ;;  %v1299_v26 = vld [vmem:[#allocation2 + $0x8] sm:$0x1]  ;;  %v1440_v43 = vld [vmem:[#allocation2 + $0x9] sm:$0x1] }
  0x89   :  { %651 = vmatprep.subr.bf16.mxu0 %v8020_v10  ;;  %7620 = vmatprep.subr.bf16.mxu1 %v8529_v0  ;;  %v8042_v10 = vld [vmem:[#allocation6 + $0x120] ss:$12 sps:$4 sm:$0xff]   ;;  %v1301_v32 = vmul.f32 0.25, %v1299_v26  ;;  %v1442_v49 = vmul.f32 0.25, %v1440_v43  ;;  %v1581_v60 = vld [vmem:[#allocation2 + $0xa] sm:$0x1] }
  0x8a   :  { %v1300_v18 = vld [vmem:[#allocation2 + $0x38] sm:$0x1]  ;;  %v1441_v35 = vld [vmem:[#allocation2 + $0x39] sm:$0x1]  ;;  %v1582_v52 = vld [vmem:[#allocation2 + $0x3a] sm:$0x1] }
  0x8b   :  { %7090 = vmatmul.mubr.msk.bf16.vlgmr.msra.gmra.mrb[8].mxu0 %vm88_vm0, %v474_v12  ;;  %7617 = vmatmul.mubr.msk.bf16.vlgmr.msra.gmra.mrb[8].mxu1 %vm88_vm0, %v474_v12  ;;  %v8045_v12 = vld [vmem:[#allocation6 + $0x128] ss:$12 sps:$4 sm:$0xff]   ;;  %v1302_v25 = vmul.f32 0.25, %v1300_v18  ;;  %v1443_v42 = vmul.f32 0.25, %v1441_v35  ;;  %v1584_v59 = vmul.f32 0.25, %v1582_v52  ;;  %v1583_v5 = vmul.f32 0.25, %v1581_v60 }
  0x8c   :  { %652 = vmatpush1.bf16.msra.mxu0 %v8018_v11  ;;  %7621 = vmatpush3.bf16.msra.mxu1 %v8021_v15  ;;  %v897_v11 = vpack.c.b16 %v896_v4, %v896_v4  ;;  %v1036_v15 = vrot.slane %v1035_v6, 7  ;;  %v1723_v7 = vld [vmem:[#allocation2 + $0x3b] sm:$0x1]  ;;  %v109_v26 = vld [vmem:[#allocation3 + $0x80] sm:$0xff]  ;;  %v8082_v43 = vld [vmem:[#allocation6 + $0x210] ss:$12 sps:$4 sm:$0xff]  }
  0x8d   :  { %653 = vmatprep.subr.bf16.mxu0 %v8024_v16  ;;  %7622 = vmatprep.subr.bf16.mxu1 %v8529_v0  ;;  %v1160_v16 = vmul.f32 0.25, %v1158_v9  ;;  %v1445_v50 = vpack.c.bf16 %v1443_v42, %v1443_v42  ;;  %v1586_v6 = vpack.c.bf16 %v1584_v59, %v1584_v59  ;;  %v8073_v9 = vld [vmem:[#allocation6 + $0x1d0] ss:$12 sps:$4 sm:$0xff]   ;;  %v8084_v35 = vld [vmem:[#allocation6 + $0x214] ss:$12 sps:$4 sm:$0xff]  }
  0x8e   :  { %683 = vmatprep.mubr.bf16.mxu0 %v8530_v1  ;;  %7624 = vmatprep.mubr.msk.bf16.mxu1 %vm8531_vm1, %v8529_v0  ;;  %v1863_v42 = vld [vmem:[#allocation2 + $0xc] sm:$0x1]  ;;  %v8086_v52 = vld [vmem:[#allocation6 + $0x228] ss:$12 sps:$4 sm:$0xff]   ;;  %v2004_v59 = vld [vmem:[#allocation2 + $0xd] sm:$0x1] }
  0x8f   :  { %v1162_v23 = vpack.c.bf16 %v1160_v16, %v1160_v16  ;;  %v1458_v58 = vunpack.c.l.b16 %v1445_v50  ;;  %v8074_v16 = vld [vmem:[#allocation6 + $0x1e0] ss:$12 sps:$4 sm:$0xff]  }
  0x90   :  { %654 = vmatpush1.bf16.msra.mxu0 %v8022_v20  ;;  %7623 = vmatpush3.bf16.msra.mxu1 %v8025_v21  ;;  %v8049_v20 = vld [vmem:[#allocation6 + $0x140] ss:$12 sps:$4 sm:$0xff]  }
  0x91   :  { %792 = vmatprep.subr.bf16.mxu0 %v8028_v22  ;;  %7628 = vmatprep.subr.bf16.mxu1 %v8529_v0  ;;  %v8052_v21 = vld [vmem:[#allocation6 + $0x154] ss:$12 sps:$4 sm:$0xff]   ;;  %v1037_v22 = vsel %vm211_vm2, %v1036_v15, %v1034_v14  ;;  %v1459_v4 = vrot.slane %v1458_v58, 7  ;;  %v1725_v14 = vmul.f32 0.25, %v1723_v7  ;;  %v8076_v15 = vld [vmem:[#allocation6 + $0x1e4] ss:$12 sps:$4 sm:$0xff]  }
  0x92   :  { %v8092_v58 = vld [vmem:[#allocation6 + $0x244] ss:$12 sps:$4 sm:$0xff]   ;;  %v8090_v60 = vld [vmem:[#allocation6 + $0x240] ss:$12 sps:$4 sm:$0xff]  }
  0x93   :  { %7098 = vmatmul.mubr.msk.bf16.vlgmr.msra.gmra.mrb[12].mxu0 %vm88_vm0, %v615_v29  ;;  %7625 = vmatmul.mubr.msk.bf16.vlgmr.msra.gmra.mrb[12].mxu1 %vm88_vm0, %v615_v29  ;;  %v8053_v29 = vld [vmem:[#allocation6 + $0x158] ss:$12 sps:$4 sm:$0xff]   ;;  %v1727_v24 = vpack.c.bf16 %v1725_v14, %v1725_v14  ;;  %v2145_v14 = vld [vmem:[#allocation2 + $0xe] sm:$0x1] }
  0x94   :  { %793 = vmatpush1.bf16.msra.mxu0 %v8026_v28  ;;  %7629 = vmatpush3.bf16.msra.mxu1 %v8029_v30  ;;  %v1038_v28 = vpack.c.b16 %v1037_v22, %v1037_v22  ;;  %v1175_v30 = vunpack.c.l.b16 %v1162_v23  ;;  %v8094_v7 = vld [vmem:[#allocation6 + $0x258] ss:$12 sps:$4 sm:$0xff]  }
  0x95   :  { %794 = vmatprep.subr.bf16.mxu0 %v8032_v33  ;;  %7630 = vmatprep.subr.bf16.mxu1 %v8529_v0  ;;  %v1304_v33 = vpack.c.bf16 %v1302_v25, %v1302_v25  ;;  %v103_v25 = vld [vmem:[#allocation3 + $0x20] sm:$0xff] }
  0x96   :  { %824 = vmatprep.mubr.bf16.mxu0 %v8530_v1  ;;  %7632 = vmatprep.mubr.msk.bf16.mxu1 %vm8531_vm1, %v8529_v0  ;;  %v1178_v39 = vsel %vm211_vm2, %v1177_v31, %v1175_v30  ;;  %v139_v30 = vld [vmem:[#allocation2 + $0x10] sm:$0xff]  ;;  %v145_v31 = vld [vmem:[#allocation2 + $0x40] sm:$0xff] }
  0x97   :  { %v1317_v41 = vunpack.c.l.b16 %v1304_v33  ;;  %v8081_v33 = vld [vmem:[#allocation6 + $0x200] ss:$12 sps:$4 sm:$0xff]  }
  0x98   :  { %795 = vmatpush1.bf16.msra.mxu0 %v8030_v40  ;;  %7631 = vmatpush3.bf16.msra.mxu1 %v8033_v45  ;;  %v1303_v40 = vpack.c.bf16 %v1301_v32, %v1301_v32  ;;  %v1179_v45 = vpack.c.b16 %v1178_v39, %v1178_v39  ;;  %v8078_v32 = vld [vmem:[#allocation6 + $0x1f8] ss:$12 sps:$4 sm:$0xff]   ;;  %v1740_v39 = vunpack.c.l.b16 %v1727_v24  ;;  %v8102_v24 = vld [vmem:[#allocation6 + $0x288] ss:$12 sps:$4 sm:$0xff]  }
  0x99   :  { %933 = vmatprep.subr.bf16.mxu0 %v8036_v48  ;;  %7636 = vmatprep.subr.bf16.mxu1 %v8529_v0  ;;  %v1318_v48 = vrot.slane %v1317_v41, 7 }
  0x9a   :  { %v1316_v47 = vunpack.c.l.b16 %v1303_v40 }
  0x9b   :  { %7106 = vmatmul.mubr.msk.bf16.vlgmr.msra.gmra.mrb[16].mxu0 %vm88_vm0, %v756_v56  ;;  %7633 = vmatmul.mubr.msk.bf16.vlgmr.msra.gmra.mrb[16].mxu1 %vm88_vm0, %v756_v56 }
  0x9c   :  { %934 = vmatpush1.bf16.msra.mxu0 %v8034_v55  ;;  %7637 = vmatpush3.bf16.msra.mxu1 %v8037_v57  ;;  %v8068_v55 = vld [vmem:[#allocation6 + $0x1b4] ss:$12 sps:$4 sm:$0xff]   ;;  %v1319_v56 = vsel %vm211_vm2, %v1318_v48, %v1316_v47  ;;  %v1444_v57 = vpack.c.bf16 %v1442_v49, %v1442_v49  ;;  %v1741_v48 = vrot.slane %v1740_v39, 7  ;;  %v1865_v49 = vmul.f32 0.25, %v1863_v42 }
  0x9d   :  { %935 = vmatprep.subr.bf16.mxu0 %v8040_v62  ;;  %7638 = vmatprep.subr.bf16.mxu1 %v8529_v0  ;;  %v1320_v62 = vpack.c.b16 %v1319_v56, %v1319_v56  ;;  %v8113_v42 = vld [vmem:[#allocation6 + $0x2c0] ss:$12 sps:$4 sm:$0xff]  }
  0x9e   :  { %965 = vmatprep.mubr.bf16.mxu0 %v8530_v1  ;;  %7640 = vmatprep.mubr.msk.bf16.mxu1 %vm8531_vm1, %v8529_v0 }
  0xa0   :  { %936 = vmatpush1.bf16.msra.mxu0 %v8038_v2  ;;  %7639 = vmatpush3.bf16.msra.mxu1 %v8041_v3  ;;  %v8072_v2 = vld [vmem:[#allocation6 + $0x1cc] ss:$12 sps:$4 sm:$0xff]   ;;  %v1457_v3 = vunpack.c.l.b16 %v1444_v57 }
  0xa1   :  { %1074 = vmatprep.subr.bf16.mxu0 %v8044_v8  ;;  %7644 = vmatprep.subr.bf16.mxu1 %v8529_v0  ;;  %v8070_v8 = vld [vmem:[#allocation6 + $0x1c8] ss:$12 sps:$4 sm:$0xff]  }
  0xa3   :  { %7114 = vmatmul.mubr.msk.bf16.vlgmr.msra.gmra.mrb[20].mxu0 %vm88_vm0, %v897_v11  ;;  %7641 = vmatmul.mubr.msk.bf16.vlgmr.msra.gmra.mrb[20].mxu1 %vm88_vm0, %v897_v11  ;;  %v1585_v11 = vpack.c.bf16 %v1583_v5, %v1583_v5 }
  0xa4   :  { %1075 = vmatpush1.bf16.msra.mxu0 %v8042_v10  ;;  %7645 = vmatpush3.bf16.msra.mxu1 %v8045_v12  ;;  %v1460_v10 = vsel %vm211_vm2, %v1459_v4, %v1457_v3  ;;  %v1599_v12 = vunpack.c.l.b16 %v1586_v6  ;;  %v2006_v4 = vmul.f32 0.25, %v2004_v59  ;;  %v2146_v6 = vld [vmem:[#allocation2 + $0x3e] sm:$0x1] }
  0xa5   :  { %1076 = vmatprep.subr.bf16.mxu0 %v8048_v13  ;;  %7646 = vmatprep.subr.bf16.mxu1 %v8529_v0  ;;  %v1722_v13 = vld [vmem:[#allocation2 + $0xb] sm:$0x1]  ;;  %v1461_v18 = vpack.c.b16 %v1460_v10, %v1460_v10  ;;  %v1598_v22 = vunpack.c.l.b16 %v1585_v11  ;;  %v8121_v59 = vld [vmem:[#allocation6 + $0x2f0] ss:$12 sps:$4 sm:$0xff]  }
  0xa6   :  { %1106 = vmatprep.mubr.bf16.mxu0 %v8530_v1  ;;  %7648 = vmatprep.mubr.msk.bf16.mxu1 %vm8531_vm1, %v8529_v0  ;;  %v1600_v23 = vrot.slane %v1599_v12, 7  ;;  %v2008_v10 = vpack.c.bf16 %v2006_v4, %v2006_v4  ;;  %v2148_v12 = vmul.f32 0.25, %v2146_v6  ;;  %v8122_v4 = vld [vmem:[#allocation6 + $0x300] ss:$12 sps:$4 sm:$0xff]  }
  0xa8   :  { %1077 = vmatpush1.bf16.msra.mxu0 %v8046_v19  ;;  %7647 = vmatpush3.bf16.msra.mxu1 %v8049_v20  ;;  %v8080_v19 = vld [vmem:[#allocation6 + $0x1fc] ss:$12 sps:$4 sm:$0xff]   ;;  %v1724_v20 = vmul.f32 0.25, %v1722_v13  ;;  %v8100_v13 = vld [vmem:[#allocation6 + $0x274] ss:$12 sps:$4 sm:$0xff]  }
  0xa9   :  { %1215 = vmatprep.subr.bf16.mxu0 %v8052_v21  ;;  %7652 = vmatprep.subr.bf16.mxu1 %v8529_v0  ;;  %v1864_v21 = vld [vmem:[#allocation2 + $0x3c] sm:$0x1] }
  0xaa   :  { %v1866_v40 = vmul.f32 0.25, %v1864_v21  ;;  %v2147_v21 = vmul.f32 0.25, %v2145_v14 }
  0xab   :  { %7122 = vmatmul.mubr.msk.bf16.vlgmr.msra.gmra.mrb[24].mxu0 %vm88_vm0, %v1038_v28  ;;  %7649 = vmatmul.mubr.msk.bf16.vlgmr.msra.gmra.mrb[24].mxu1 %vm88_vm0, %v1038_v28  ;;  %v121_v28 = vld [vmem:[#allocation3 + $0x90] sm:$0xff] }
  0xac   :  { %1216 = vmatpush1.bf16.msra.mxu0 %v8050_v27  ;;  %7653 = vmatpush3.bf16.msra.mxu1 %v8053_v29  ;;  %v115_v27 = vld [vmem:[#allocation3 + $0x30] sm:$0xff]  ;;  %v1868_v50 = vpack.c.bf16 %v1866_v40, %v1866_v40 }
  0xad   :  { %1217 = vmatprep.subr.bf16.mxu0 %v8056_v34  ;;  %7654 = vmatprep.subr.bf16.mxu1 %v8529_v0  ;;  %v127_v29 = vadd.f32 %v115_v27, %v103_v25  ;;  %v133_v34 = vadd.f32 %v121_v28, %v109_v26  ;;  %v8105_v25 = vld [vmem:[#allocation6 + $0x290] ss:$12 sps:$4 sm:$0xff]   ;;  %v2149_v27 = vpack.c.bf16 %v2147_v21, %v2147_v21 }
  0xae   :  { %1247 = vmatprep.mubr.bf16.mxu0 %v8530_v1  ;;  %7656 = vmatprep.mubr.msk.bf16.mxu1 %vm8531_vm1, %v8529_v0  ;;  %v1881_v56 = vunpack.c.l.b16 %v1868_v50 }
  0xaf   :  { %v157_v41 = vadd.f32 %v145_v31, %v133_v34  ;;  %v2286_v31 = vld [vmem:[#allocation2 + $0xf] sm:$0x1]  ;;  %v8109_v34 = vld [vmem:[#allocation6 + $0x2a8] ss:$12 sps:$4 sm:$0xff]  }
  0xb0   :  { %1218 = vmatpush1.bf16.msra.mxu0 %v8054_v36  ;;  %7655 = vmatpush3.bf16.msra.mxu1 %v8057_v37  ;;  %v1726_v36 = vpack.c.bf16 %v1724_v20, %v1724_v20  ;;  %v151_v37 = vadd.f32 %v139_v30, %v127_v29  ;;  %v1882_v3 = vrot.slane %v1881_v56, 7  ;;  %v8108_v30 = vld [vmem:[#allocation6 + $0x2a4] ss:$12 sps:$4 sm:$0xff]   ;;  %v8120_v56 = vld [vmem:[#allocation6 + $0x2ec] ss:$12 sps:$4 sm:$0xff]  }
  0xb1   :  { %1356 = vmatprep.subr.bf16.mxu0 %v8060_v38  ;;  %7660 = vmatprep.subr.bf16.mxu1 %v8529_v0  ;;  %v1601_v38 = vsel %vm211_vm2, %v1600_v23, %v1598_v22  ;;  %170 = vst.msk [vmem:[#allocation2 + $0x40] sm:$0xff] %vm88_vm0, %v157_v41  ;;  %v2150_v22 = vpack.c.bf16 %v2148_v12, %v2148_v12  ;;  %v2287_v23 = vld [vmem:[#allocation2 + $0x3f] sm:$0x1]  ;;  %v8110_v41 = vld [vmem:[#allocation6 + $0x2b8] ss:$12 sps:$4 sm:$0xff]  }
  0xb2   :  { %164 = vst.msk [vmem:[#allocation2 + $0x10] sm:$0xff] %vm88_vm0, %v151_v37  ;;  %v1739_v47 = vunpack.c.l.b16 %v1726_v36  ;;  %v2289_v29 = vmul.f32 0.25, %v2287_v23  ;;  %v2162_v36 = vunpack.c.l.b16 %v2149_v27 }
  0xb3   :  { %7130 = vmatmul.mubr.msk.bf16.vlgmr.msra.gmra.mrb[28].mxu0 %vm88_vm0, %v1179_v45  ;;  %7657 = vmatmul.mubr.msk.bf16.vlgmr.msra.gmra.mrb[28].mxu1 %vm88_vm0, %v1179_v45  ;;  %v8085_v45 = vld [vmem:[#allocation6 + $0x218] ss:$12 sps:$4 sm:$0xff]   ;;  %v2163_v28 = vunpack.c.l.b16 %v2150_v22 }
  0xb4   :  { %1357 = vmatpush1.bf16.msra.mxu0 %v8058_v44  ;;  %7661 = vmatpush3.bf16.msra.mxu1 %v8061_v46  ;;  %v1602_v44 = vpack.c.b16 %v1601_v38, %v1601_v38  ;;  %v8088_v46 = vld [vmem:[#allocation6 + $0x22c] ss:$12 sps:$4 sm:$0xff]   ;;  %v2288_v38 = vmul.f32 0.25, %v2286_v31  ;;  %v2291_v39 = vpack.c.bf16 %v2289_v29, %v2289_v29  ;;  %v8132_v29 = vld [vmem:[#allocation6 + $0x334] ss:$12 sps:$4 sm:$0xff]  }
  0xb5   :  { %1358 = vmatprep.subr.bf16.mxu0 %v8064_v51  ;;  %7662 = vmatprep.subr.bf16.mxu1 %v8529_v0  ;;  %v2005_v51 = vld [vmem:[#allocation2 + $0x3d] sm:$0x1]  ;;  %v2164_v37 = vrot.slane %v2163_v28, 7  ;;  %v8126_v22 = vld [vmem:[#allocation6 + $0x318] ss:$12 sps:$4 sm:$0xff]  }
  0xb6   :  { %1388 = vmatprep.mubr.bf16.mxu0 %v8530_v1  ;;  %7664 = vmatprep.mubr.msk.bf16.mxu1 %vm8531_vm1, %v8529_v0  ;;  %v2007_v57 = vmul.f32 0.25, %v2005_v51  ;;  %v8117_v51 = vld [vmem:[#allocation6 + $0x2d8] ss:$12 sps:$4 sm:$0xff]   ;;  %v8130_v31 = vld [vmem:[#allocation6 + $0x330] ss:$12 sps:$4 sm:$0xff]  }
  0xb8   :  { %1359 = vmatpush1.bf16.msra.mxu0 %v8062_v53  ;;  %7663 = vmatpush3.bf16.msra.mxu1 %v8065_v54  ;;  %v8089_v53 = vld [vmem:[#allocation6 + $0x230] ss:$12 sps:$4 sm:$0xff]   ;;  %v1742_v54 = vsel %vm211_vm2, %v1741_v48, %v1739_v47  ;;  %v2009_v5 = vpack.c.bf16 %v2007_v57, %v2007_v57  ;;  %v2429_v40 = vld [vmem:[#allocation2 + $0x40] sm:$0x1]  ;;  %v2570_v57 = vld [vmem:[#allocation2 + $0x41] sm:$0x1] }
  0xb9   :  { %1497 = vmatprep.subr.bf16.mxu0 %v8068_v55  ;;  %7668 = vmatprep.subr.bf16.mxu1 %v8529_v0  ;;  %v1867_v55 = vpack.c.bf16 %v1865_v49, %v1865_v49  ;;  %v8116_v47 = vld [vmem:[#allocation6 + $0x2d4] ss:$12 sps:$4 sm:$0xff]   ;;  %v2428_v48 = vld [vmem:[#allocation2 + $0x10] sm:$0x1] }
  0xba   :  { %v2022_v11 = vunpack.c.l.b16 %v2009_v5  ;;  %v8114_v49 = vld [vmem:[#allocation6 + $0x2d0] ss:$12 sps:$4 sm:$0xff]   ;;  %v8125_v5 = vld [vmem:[#allocation6 + $0x308] ss:$12 sps:$4 sm:$0xff]  }
  0xbb   :  { %7138 = vmatmul.mubr.msk.bf16.vlgmr.msra.gmra.mrb[32].mxu0 %vm88_vm0, %v1320_v62  ;;  %7665 = vmatmul.mubr.msk.bf16.vlgmr.msra.gmra.mrb[32].mxu1 %vm88_vm0, %v1320_v62  ;;  %v8093_v62 = vld [vmem:[#allocation6 + $0x248] ss:$12 sps:$4 sm:$0xff]  }
  0xbc   :  { %1498 = vmatpush1.bf16.msra.mxu0 %v8066_v61  ;;  %7669 = vmatpush3.bf16.msra.mxu1 %v8069_v63  ;;  %v1743_v61 = vpack.c.b16 %v1742_v54, %v1742_v54  ;;  %v8096_v63 = vld [vmem:[#allocation6 + $0x25c] ss:$12 sps:$4 sm:$0xff]   ;;  %v2023_v20 = vrot.slane %v2022_v11, 7  ;;  %v2430_v54 = vmul.f32 0.25, %v2428_v48  ;;  %v8138_v48 = vld [vmem:[#allocation6 + $0x360] ss:$12 sps:$4 sm:$0xff]  }
  0xbd   :  { %1499 = vmatprep.subr.bf16.mxu0 %v8072_v2  ;;  %7670 = vmatprep.subr.bf16.mxu1 %v8529_v0  ;;  %v1880_v2 = vunpack.c.l.b16 %v1867_v55  ;;  %v116_v11 = vld [vmem:[#allocation3 + $0x38] sm:$0xff] }
  0xbe   :  { %1529 = vmatprep.mubr.bf16.mxu0 %v8530_v1  ;;  %7672 = vmatprep.mubr.msk.bf16.mxu1 %vm8531_vm1, %v8529_v0 }
  0xc0   :  { %1500 = vmatpush1.bf16.msra.mxu0 %v8070_v8  ;;  %7671 = vmatpush3.bf16.msra.mxu1 %v8073_v9  ;;  %v8097_v8 = vld [vmem:[#allocation6 + $0x260] ss:$12 sps:$4 sm:$0xff]   ;;  %v1883_v9 = vsel %vm211_vm2, %v1882_v3, %v1880_v2  ;;  %v2572_v2 = vmul.f32 0.25, %v2570_v57  ;;  %v8124_v3 = vld [vmem:[#allocation6 + $0x304] ss:$12 sps:$4 sm:$0xff]  }
  0xc1   :  { %1638 = vmatprep.subr.bf16.mxu0 %v8076_v15  ;;  %7676 = vmatprep.subr.bf16.mxu1 %v8529_v0  ;;  %v8098_v15 = vld [vmem:[#allocation6 + $0x270] ss:$12 sps:$4 sm:$0xff]   ;;  %v8142_v57 = vld [vmem:[#allocation6 + $0x378] ss:$12 sps:$4 sm:$0xff]  }
  0xc2   :  { %v2574_v14 = vpack.c.bf16 %v2572_v2, %v2572_v2  ;;  %v2992_v2 = vld [vmem:[#allocation2 + $0x14] sm:$0x1] }
  0xc3   :  { %7146 = vmatmul.mubr.msk.bf16.vlgmr.msra.gmra.mrb[36].mxu0 %vm88_vm0, %v1461_v18  ;;  %7673 = vmatmul.mubr.msk.bf16.vlgmr.msra.gmra.mrb[36].mxu1 %vm88_vm0, %v1461_v18  ;;  %v8104_v18 = vld [vmem:[#allocation6 + $0x28c] ss:$12 sps:$4 sm:$0xff]  }
  0xc4   :  { %1639 = vmatpush1.bf16.msra.mxu0 %v8074_v16  ;;  %7677 = vmatpush3.bf16.msra.mxu1 %v8077_v17  ;;  %v1884_v16 = vpack.c.b16 %v1883_v9, %v1883_v9  ;;  %v8101_v17 = vld [vmem:[#allocation6 + $0x278] ss:$12 sps:$4 sm:$0xff]   ;;  %v104_v9 = vld [vmem:[#allocation3 + $0x28] sm:$0xff]  ;;  %v2587_v27 = vunpack.c.l.b16 %v2574_v14 }
  0xc5   :  { %1640 = vmatprep.subr.bf16.mxu0 %v8080_v19  ;;  %7678 = vmatprep.subr.bf16.mxu1 %v8529_v0  ;;  %v2021_v19 = vunpack.c.l.b16 %v2008_v10  ;;  %v110_v10 = vld [vmem:[#allocation3 + $0x88] sm:$0xff] }
  0xc6   :  { %1670 = vmatprep.mubr.bf16.mxu0 %v8530_v1  ;;  %7680 = vmatprep.mubr.msk.bf16.mxu1 %vm8531_vm1, %v8529_v0 }
  0xc7   :  { %v2024_v26 = vsel %vm211_vm2, %v2023_v20, %v2021_v19  ;;  %v2711_v19 = vld [vmem:[#allocation2 + $0x42] sm:$0x1] }
  0xc8   :  { %1641 = vmatpush1.bf16.msra.mxu0 %v8078_v32  ;;  %7679 = vmatpush3.bf16.msra.mxu1 %v8081_v33  ;;  %v8106_v32 = vld [vmem:[#allocation6 + $0x2a0] ss:$12 sps:$4 sm:$0xff]   ;;  %v2025_v33 = vpack.c.b16 %v2024_v26, %v2024_v26  ;;  %v2713_v28 = vmul.f32 0.25, %v2711_v19  ;;  %v3133_v19 = vld [vmem:[#allocation2 + $0x15] sm:$0x1] }
  0xc9   :  { %1779 = vmatprep.subr.bf16.mxu0 %v8084_v35  ;;  %7684 = vmatprep.subr.bf16.mxu1 %v8529_v0  ;;  %v8112_v35 = vld [vmem:[#allocation6 + $0x2bc] ss:$12 sps:$4 sm:$0xff]  }
  0xcb   :  { %7154 = vmatmul.mubr.msk.bf16.vlgmr.msra.gmra.mrb[40].mxu0 %vm88_vm0, %v1602_v44  ;;  %7681 = vmatmul.mubr.msk.bf16.vlgmr.msra.gmra.mrb[40].mxu1 %vm88_vm0, %v1602_v44  ;;  %v2290_v44 = vpack.c.bf16 %v2288_v38, %v2288_v38  ;;  %v2715_v38 = vpack.c.bf16 %v2713_v28, %v2713_v28  ;;  %v3275_v28 = vld [vmem:[#allocation2 + $0x46] sm:$0x1] }
  0xcc   :  { %1780 = vmatpush1.bf16.msra.mxu0 %v8082_v43  ;;  %7685 = vmatpush3.bf16.msra.mxu1 %v8085_v45  ;;  %v2165_v43 = vsel %vm211_vm2, %v2164_v37, %v2162_v36  ;;  %v2304_v45 = vunpack.c.l.b16 %v2291_v39  ;;  %v2588_v36 = vrot.slane %v2587_v27, 7  ;;  %v2852_v39 = vld [vmem:[#allocation2 + $0x43] sm:$0x1] }
  0xcd   :  { %1781 = vmatprep.subr.bf16.mxu0 %v8088_v46  ;;  %7686 = vmatprep.subr.bf16.mxu1 %v8529_v0  ;;  %v2431_v46 = vmul.f32 0.25, %v2429_v40  ;;  %v2166_v50 = vpack.c.b16 %v2165_v43, %v2165_v43  ;;  %v8134_v40 = vld [vmem:[#allocation6 + $0x348] ss:$12 sps:$4 sm:$0xff]  }
  0xce   :  { %1811 = vmatprep.mubr.bf16.mxu0 %v8530_v1  ;;  %7688 = vmatprep.mubr.msk.bf16.mxu1 %vm8531_vm1, %v8529_v0 }
  0xcf   :  { %v2433_v55 = vpack.c.bf16 %v2431_v46, %v2431_v46  ;;  %v8140_v46 = vld [vmem:[#allocation6 + $0x364] ss:$12 sps:$4 sm:$0xff]  }
  0xd0   :  { %1782 = vmatpush1.bf16.msra.mxu0 %v8086_v52  ;;  %7687 = vmatpush3.bf16.msra.mxu1 %v8089_v53  ;;  %v2303_v52 = vunpack.c.l.b16 %v2290_v44  ;;  %v2305_v53 = vrot.slane %v2304_v45, 7  ;;  %v2728_v44 = vunpack.c.l.b16 %v2715_v38  ;;  %v2854_v45 = vmul.f32 0.25, %v2852_v39 }
  0xd1   :  { %1920 = vmatprep.subr.bf16.mxu0 %v8092_v58  ;;  %7692 = vmatprep.subr.bf16.mxu1 %v8529_v0  ;;  %v8118_v58 = vld [vmem:[#allocation6 + $0x2e8] ss:$12 sps:$4 sm:$0xff]  }
  0xd3   :  { %7162 = vmatmul.mubr.msk.bf16.vlgmr.msra.gmra.mrb[44].mxu0 %vm88_vm0, %v1743_v61  ;;  %7689 = vmatmul.mubr.msk.bf16.vlgmr.msra.gmra.mrb[44].mxu1 %vm88_vm0, %v1743_v61  ;;  %v2432_v61 = vpack.c.bf16 %v2430_v54, %v2430_v54  ;;  %v2856_v54 = vpack.c.bf16 %v2854_v45, %v2854_v45  ;;  %v3416_v45 = vld [vmem:[#allocation2 + $0x47] sm:$0x1] }
  0xd4   :  { %1921 = vmatpush1.bf16.msra.mxu0 %v8090_v60  ;;  %7693 = vmatpush3.bf16.msra.mxu1 %v8093_v62  ;;  %v2306_v60 = vsel %vm211_vm2, %v2305_v53, %v2303_v52  ;;  %v2446_v62 = vunpack.c.l.b16 %v2433_v55  ;;  %v2729_v52 = vrot.slane %v2728_v44, 7  ;;  %v8144_v55 = vld [vmem:[#allocation6 + $0x37c] ss:$12 sps:$4 sm:$0xff]  }
  0xd5   :  { %1922 = vmatprep.subr.bf16.mxu0 %v8096_v63  ;;  %7694 = vmatprep.subr.bf16.mxu1 %v8529_v0  ;;  %v2569_v63 = vld [vmem:[#allocation2 + $0x11] sm:$0x1]  ;;  %v2307_v6 = vpack.c.b16 %v2306_v60, %v2306_v60  ;;  %v2445_v12 = vunpack.c.l.b16 %v2432_v61 }
  0xd6   :  { %1952 = vmatprep.mubr.bf16.mxu0 %v8530_v1  ;;  %7696 = vmatprep.mubr.msk.bf16.mxu1 %vm8531_vm1, %v8529_v0 }
  0xd8   :  { %1923 = vmatpush1.bf16.msra.mxu0 %v8094_v7  ;;  %7695 = vmatpush3.bf16.msra.mxu1 %v8097_v8  ;;  %v8128_v7 = vld [vmem:[#allocation6 + $0x31c] ss:$12 sps:$4 sm:$0xff]   ;;  %v2571_v8 = vmul.f32 0.25, %v2569_v63 }
  0xd9   :  { %2061 = vmatprep.subr.bf16.mxu0 %v8100_v13  ;;  %7700 = vmatprep.subr.bf16.mxu1 %v8529_v0  ;;  %v2447_v13 = vrot.slane %v2446_v62, 7  ;;  %v2869_v62 = vunpack.c.l.b16 %v2856_v54  ;;  %v8170_v54 = vld [vmem:[#allocation6 + $0x420] ss:$12 sps:$4 sm:$0xff]  }
  0xda   :  { %v2573_v26 = vpack.c.bf16 %v2571_v8, %v2571_v8 }
  0xdb   :  { %7170 = vmatmul.mubr.msk.bf16.vlgmr.msra.gmra.mrb[48].mxu0 %vm88_vm0, %v1884_v16  ;;  %7697 = vmatmul.mubr.msk.bf16.vlgmr.msra.gmra.mrb[48].mxu1 %vm88_vm0, %v1884_v16  ;;  %v128_v16 = vadd.f32 %v116_v11, %v104_v9  ;;  %v2870_v8 = vrot.slane %v2869_v62, 7  ;;  %v2994_v9 = vmul.f32 0.25, %v2992_v2  ;;  %v3134_v11 = vld [vmem:[#allocation2 + $0x45] sm:$0x1]  ;;  %v123_v62 = vld [vmem:[#allocation3 + $0xb0] sm:$0xff] }
  0xdc   :  { %2062 = vmatpush1.bf16.msra.mxu0 %v8098_v15  ;;  %7701 = vmatpush3.bf16.msra.mxu1 %v8101_v17  ;;  %v122_v15 = vld [vmem:[#allocation3 + $0x98] sm:$0xff]  ;;  %v141_v2 = vld [vmem:[#allocation2 + $0x20] sm:$0xff] }
  0xdd   :  { %2063 = vmatprep.subr.bf16.mxu0 %v8104_v18  ;;  %7702 = vmatprep.subr.bf16.mxu1 %v8529_v0  ;;  %v140_v17 = vld [vmem:[#allocation2 + $0x18] sm:$0xff]  ;;  %v146_v18 = vld [vmem:[#allocation2 + $0x48] sm:$0xff]  ;;  %v134_v20 = vadd.f32 %v122_v15, %v110_v10  ;;  %v2996_v15 = vpack.c.bf16 %v2994_v9, %v2994_v9 }
  0xde   :  { %2093 = vmatprep.mubr.bf16.mxu0 %v8530_v1  ;;  %7704 = vmatprep.mubr.msk.bf16.mxu1 %vm8531_vm1, %v8529_v0  ;;  %v152_v21 = vadd.f32 %v140_v17, %v128_v16  ;;  %v3136_v17 = vmul.f32 0.25, %v3134_v11 }
  0xdf   :  { %v158_v23 = vadd.f32 %v146_v18, %v134_v20  ;;  %v8156_v18 = vld [vmem:[#allocation6 + $0x3c4] ss:$12 sps:$4 sm:$0xff]   ;;  %v8154_v20 = vld [vmem:[#allocation6 + $0x3c0] ss:$12 sps:$4 sm:$0xff]  }
  0xe0   :  { %2064 = vmatpush1.bf16.msra.mxu0 %v8102_v24  ;;  %7703 = vmatpush3.bf16.msra.mxu1 %v8105_v25  ;;  %v8129_v24 = vld [vmem:[#allocation6 + $0x320] ss:$12 sps:$4 sm:$0xff]   ;;  %v2448_v25 = vsel %vm211_vm2, %v2447_v13, %v2445_v12  ;;  %165 = vst.msk [vmem:[#allocation2 + $0x18] sm:$0xff] %vm88_vm0, %v152_v21  ;;  %v8150_v12 = vld [vmem:[#allocation6 + $0x3a8] ss:$12 sps:$4 sm:$0xff]   ;;  %v3138_v27 = vpack.c.bf16 %v3136_v17, %v3136_v17 }
  0xe1   :  { %2202 = vmatprep.subr.bf16.mxu0 %v8108_v30  ;;  %7708 = vmatprep.subr.bf16.mxu1 %v8529_v0  ;;  %v2710_v30 = vld [vmem:[#allocation2 + $0x12] sm:$0x1]  ;;  %171 = vst.msk [vmem:[#allocation2 + $0x48] sm:$0xff] %vm88_vm0, %v158_v23  ;;  %v8160_v23 = vld [vmem:[#allocation6 + $0x3dc] ss:$12 sps:$4 sm:$0xff]  }
  0xe2   :  { %v2712_v37 = vmul.f32 0.25, %v2710_v30  ;;  %v8153_v13 = vld [vmem:[#allocation6 + $0x3b0] ss:$12 sps:$4 sm:$0xff]   ;;  %v8161_v30 = vld [vmem:[#allocation6 + $0x3e0] ss:$12 sps:$4 sm:$0xff]  }
  0xe3   :  { %7178 = vmatmul.mubr.msk.bf16.vlgmr.msra.gmra.mrb[52].mxu0 %vm88_vm0, %v2025_v33  ;;  %7705 = vmatmul.mubr.msk.bf16.vlgmr.msra.gmra.mrb[52].mxu1 %vm88_vm0, %v2025_v33  ;;  %v8133_v33 = vld [vmem:[#allocation6 + $0x338] ss:$12 sps:$4 sm:$0xff]  }
  0xe4   :  { %2203 = vmatpush1.bf16.msra.mxu0 %v8106_v32  ;;  %7709 = vmatpush3.bf16.msra.mxu1 %v8109_v34  ;;  %v2449_v32 = vpack.c.b16 %v2448_v25, %v2448_v25  ;;  %v8136_v34 = vld [vmem:[#allocation6 + $0x34c] ss:$12 sps:$4 sm:$0xff]   ;;  %v2714_v43 = vpack.c.bf16 %v2712_v37, %v2712_v37  ;;  %v8162_v37 = vld [vmem:[#allocation6 + $0x3f0] ss:$12 sps:$4 sm:$0xff]  }
  0xe5   :  { %2204 = vmatprep.subr.bf16.mxu0 %v8112_v35  ;;  %7710 = vmatprep.subr.bf16.mxu1 %v8529_v0  ;;  %v2586_v35 = vunpack.c.l.b16 %v2573_v26  ;;  %v3135_v26 = vmul.f32 0.25, %v3133_v19  ;;  %v8178_v19 = vld [vmem:[#allocation6 + $0x450] ss:$12 sps:$4 sm:$0xff]  }
  0xe6   :  { %2234 = vmatprep.mubr.bf16.mxu0 %v8530_v1  ;;  %7712 = vmatprep.mubr.msk.bf16.mxu1 %vm8531_vm1, %v8529_v0 }
  0xe8   :  { %2205 = vmatpush1.bf16.msra.mxu0 %v8110_v41  ;;  %7711 = vmatpush3.bf16.msra.mxu1 %v8113_v42  ;;  %v8137_v41 = vld [vmem:[#allocation6 + $0x350] ss:$12 sps:$4 sm:$0xff]   ;;  %v2589_v42 = vsel %vm211_vm2, %v2588_v36, %v2586_v35  ;;  %v3277_v35 = vmul.f32 0.25, %v3275_v28  ;;  %v8164_v36 = vld [vmem:[#allocation6 + $0x3f4] ss:$12 sps:$4 sm:$0xff]  }
  0xe9   :  { %2343 = vmatprep.subr.bf16.mxu0 %v8116_v47  ;;  %7716 = vmatprep.subr.bf16.mxu1 %v8529_v0  ;;  %v2851_v47 = vld [vmem:[#allocation2 + $0x13] sm:$0x1]  ;;  %v8182_v28 = vld [vmem:[#allocation6 + $0x468] ss:$12 sps:$4 sm:$0xff]  }
  0xea   :  { %v2853_v53 = vmul.f32 0.25, %v2851_v47  ;;  %v3279_v44 = vpack.c.bf16 %v3277_v35, %v3277_v35  ;;  %v3697_v35 = vld [vmem:[#allocation2 + $0x19] sm:$0x1] }
  0xeb   :  { %7186 = vmatmul.mubr.msk.bf16.vlgmr.msra.gmra.mrb[56].mxu0 %vm88_vm0, %v2166_v50  ;;  %7713 = vmatmul.mubr.msk.bf16.vlgmr.msra.gmra.mrb[56].mxu1 %vm88_vm0, %v2166_v50  ;;  %v8141_v50 = vld [vmem:[#allocation6 + $0x368] ss:$12 sps:$4 sm:$0xff]  }
  0xec   :  { %2344 = vmatpush1.bf16.msra.mxu0 %v8114_v49  ;;  %7717 = vmatpush3.bf16.msra.mxu1 %v8117_v51  ;;  %v2590_v49 = vpack.c.b16 %v2589_v42, %v2589_v42  ;;  %v2727_v51 = vunpack.c.l.b16 %v2714_v43  ;;  %v2855_v61 = vpack.c.bf16 %v2853_v53, %v2853_v53  ;;  %v3415_v53 = vld [vmem:[#allocation2 + $0x17] sm:$0x1] }
  0xed   :  { %2345 = vmatprep.subr.bf16.mxu0 %v8120_v56  ;;  %7718 = vmatprep.subr.bf16.mxu1 %v8529_v0  ;;  %v2993_v56 = vld [vmem:[#allocation2 + $0x44] sm:$0x1] }
  0xee   :  { %2375 = vmatprep.mubr.bf16.mxu0 %v8530_v1  ;;  %7720 = vmatprep.mubr.msk.bf16.mxu1 %vm8531_vm1, %v8529_v0  ;;  %v2730_v60 = vsel %vm211_vm2, %v2729_v52, %v2727_v51  ;;  %v2995_v63 = vmul.f32 0.25, %v2993_v56  ;;  %v3418_v51 = vmul.f32 0.25, %v3416_v45  ;;  %v8172_v52 = vld [vmem:[#allocation6 + $0x424] ss:$12 sps:$4 sm:$0xff]  }
  0xef   :  { %v105_v56 = vld [vmem:[#allocation3 + $0x40] sm:$0xff] }
  0xf0   :  { %2346 = vmatpush1.bf16.msra.mxu0 %v8118_v58  ;;  %7719 = vmatpush3.bf16.msra.mxu1 %v8121_v59  ;;  %v8145_v58 = vld [vmem:[#allocation6 + $0x380] ss:$12 sps:$4 sm:$0xff]   ;;  %v2997_v10 = vpack.c.bf16 %v2995_v63, %v2995_v63  ;;  %v8190_v45 = vld [vmem:[#allocation6 + $0x498] ss:$12 sps:$4 sm:$0xff]  }
  0xf1   :  { %2485 = vmatprep.subr.bf16.mxu0 %v8124_v3  ;;  %7724 = vmatprep.subr.bf16.mxu1 %v8529_v0  ;;  %v8148_v59 = vld [vmem:[#allocation6 + $0x394] ss:$12 sps:$4 sm:$0xff]   ;;  %v8146_v3 = vld [vmem:[#allocation6 + $0x390] ss:$12 sps:$4 sm:$0xff]  }
  0xf2   :  { %v3010_v16 = vunpack.c.l.b16 %v2997_v10  ;;  %v8174_v10 = vld [vmem:[#allocation6 + $0x438] ss:$12 sps:$4 sm:$0xff]  }
  0xf3   :  { %7194 = vmatmul.mubr.msk.bf16.vlgmr.msra.gmra.mrb[60].mxu0 %vm88_vm0, %v2307_v6  ;;  %7721 = vmatmul.mubr.msk.bf16.vlgmr.msra.gmra.mrb[60].mxu1 %vm88_vm0, %v2307_v6  ;;  %v8152_v6 = vld [vmem:[#allocation6 + $0x3ac] ss:$12 sps:$4 sm:$0xff]  }
  0xf4   :  { %2486 = vmatpush1.bf16.msra.mxu0 %v8122_v4  ;;  %7725 = vmatpush3.bf16.msra.mxu1 %v8125_v5  ;;  %v2731_v4 = vpack.c.b16 %v2730_v60, %v2730_v60  ;;  %v8149_v5 = vld [vmem:[#allocation6 + $0x398] ss:$12 sps:$4 sm:$0xff]   ;;  %v3011_v25 = vrot.slane %v3010_v16, 7  ;;  %v8176_v60 = vld [vmem:[#allocation6 + $0x43c] ss:$12 sps:$4 sm:$0xff]  }
  0xf5   :  { %2487 = vmatprep.subr.bf16.mxu0 %v8128_v7  ;;  %7726 = vmatprep.subr.bf16.mxu1 %v8529_v0  ;;  %v2868_v7 = vunpack.c.l.b16 %v2855_v61 }
  0xf6   :  { %2517 = vmatprep.mubr.bf16.mxu0 %v8530_v1  ;;  %7728 = vmatprep.mubr.msk.bf16.mxu1 %vm8531_vm1, %v8529_v0 }
  0xf7   :  { %v2871_v14 = vsel %vm211_vm2, %v2870_v8, %v2868_v7  ;;  %v3557_v8 = vld [vmem:[#allocation2 + $0x48] sm:$0x1] }
  0xf8   :  { %2488 = vmatpush1.bf16.msra.mxu0 %v8126_v22  ;;  %7727 = vmatpush3.bf16.msra.mxu1 %v8129_v24  ;;  %v2872_v21 = vpack.c.b16 %v2871_v14, %v2871_v14  ;;  %v8157_v22 = vld [vmem:[#allocation6 + $0x3c8] ss:$12 sps:$4 sm:$0xff]   ;;  %v3009_v24 = vunpack.c.l.b16 %v2996_v15  ;;  %v3559_v17 = vmul.f32 0.25, %v3557_v8  ;;  %v8202_v8 = vld [vmem:[#allocation6 + $0x4e0] ss:$12 sps:$4 sm:$0xff]  }
  0xf9   :  { %2626 = vmatprep.subr.bf16.mxu0 %v8132_v29  ;;  %7732 = vmatprep.subr.bf16.mxu1 %v8529_v0  ;;  %v8158_v29 = vld [vmem:[#allocation6 + $0x3d8] ss:$12 sps:$4 sm:$0xff]  }
  0xfb   :  { %7202 = vmatmul.mubr.msk.bf16.vlgmr.msra.gmra.mrb[64].mxu0 %vm88_vm0, %v2449_v32  ;;  %7729 = vmatmul.mubr.msk.bf16.vlgmr.msra.gmra.mrb[64].mxu1 %vm88_vm0, %v2449_v32  ;;  %v3137_v32 = vpack.c.bf16 %v3135_v26, %v3135_v26  ;;  %v3561_v26 = vpack.c.bf16 %v3559_v17, %v3559_v17  ;;  %v8206_v17 = vld [vmem:[#allocation6 + $0x4f8] ss:$12 sps:$4 sm:$0xff]  }
  0xfc   :  { %2627 = vmatpush1.bf16.msra.mxu0 %v8130_v31  ;;  %7733 = vmatpush3.bf16.msra.mxu1 %v8133_v33  ;;  %v3012_v31 = vsel %vm211_vm2, %v3011_v25, %v3009_v24  ;;  %v3151_v33 = vunpack.c.l.b16 %v3138_v27  ;;  %v3698_v27 = vld [vmem:[#allocation2 + $0x49] sm:$0x1] }
  0xfd   :  { %2628 = vmatprep.subr.bf16.mxu0 %v8136_v34  ;;  %7734 = vmatprep.subr.bf16.mxu1 %v8529_v0  ;;  %v3274_v34 = vld [vmem:[#allocation2 + $0x16] sm:$0x1]  ;;  %v3013_v38 = vpack.c.b16 %v3012_v31, %v3012_v31  ;;  %v3150_v42 = vunpack.c.l.b16 %v3137_v32  ;;  %v3574_v32 = vunpack.c.l.b16 %v3561_v26 }
  0xfe   :  { %2658 = vmatprep.mubr.bf16.mxu0 %v8530_v1  ;;  %7736 = vmatprep.mubr.msk.bf16.mxu1 %vm8531_vm1, %v8529_v0  ;;  %v3276_v39 = vmul.f32 0.25, %v3274_v34  ;;  %v3152_v43 = vrot.slane %v3151_v33, 7  ;;  %v3700_v33 = vmul.f32 0.25, %v3698_v27  ;;  %v8188_v34 = vld [vmem:[#allocation6 + $0x484] ss:$12 sps:$4 sm:$0xff]  }
  0xff   :  { %v8213_v27 = vld [vmem:[#allocation6 + $0x518] ss:$12 sps:$4 sm:$0xff]  }
 0x100   :  { %2629 = vmatpush1.bf16.msra.mxu0 %v8134_v40  ;;  %7735 = vmatpush3.bf16.msra.mxu1 %v8137_v41  ;;  %v8165_v40 = vld [vmem:[#allocation6 + $0x3f8] ss:$12 sps:$4 sm:$0xff]   ;;  %v3278_v47 = vpack.c.bf16 %v3276_v39, %v3276_v39  ;;  %v8192_v39 = vld [vmem:[#allocation6 + $0x49c] ss:$12 sps:$4 sm:$0xff]  }
 0x101   :  { %2767 = vmatprep.subr.bf16.mxu0 %v8140_v46  ;;  %7740 = vmatprep.subr.bf16.mxu1 %v8529_v0  ;;  %v8168_v41 = vld [vmem:[#allocation6 + $0x40c] ss:$12 sps:$4 sm:$0xff]   ;;  %v8166_v46 = vld [vmem:[#allocation6 + $0x408] ss:$12 sps:$4 sm:$0xff]  }
 0x102   :  { %v3291_v61 = vunpack.c.l.b16 %v3278_v47 }
 0x103   :  { %7210 = vmatmul.mubr.msk.bf16.vlgmr.msra.gmra.mrb[68].mxu0 %vm88_vm0, %v2590_v49  ;;  %7737 = vmatmul.mubr.msk.bf16.vlgmr.msra.gmra.mrb[68].mxu1 %vm88_vm0, %v2590_v49  ;;  %v3153_v49 = vsel %vm211_vm2, %v3152_v43, %v3150_v42  ;;  %v3699_v42 = vmul.f32 0.25, %v3697_v35  ;;  %v3702_v43 = vpack.c.bf16 %v3700_v33, %v3700_v33  ;;  %v4262_v33 = vld [vmem:[#allocation2 + $0x4d] sm:$0x1]  ;;  %v4261_v35 = vld [vmem:[#allocation2 + $0x1d] sm:$0x1] }
 0x104   :  { %2768 = vmatpush1.bf16.msra.mxu0 %v8138_v48  ;;  %7741 = vmatpush3.bf16.msra.mxu1 %v8141_v50  ;;  %v8169_v48 = vld [vmem:[#allocation6 + $0x410] ss:$12 sps:$4 sm:$0xff]   ;;  %v3292_v50 = vunpack.c.l.b16 %v3279_v44  ;;  %v3839_v44 = vld [vmem:[#allocation2 + $0x4a] sm:$0x1] }
 0x105   :  { %2769 = vmatprep.subr.bf16.mxu0 %v8144_v55  ;;  %7742 = vmatprep.subr.bf16.mxu1 %v8529_v0  ;;  %v8173_v55 = vld [vmem:[#allocation6 + $0x428] ss:$12 sps:$4 sm:$0xff]  }
 0x106   :  { %2799 = vmatprep.mubr.bf16.mxu0 %v8530_v1  ;;  %7744 = vmatprep.mubr.msk.bf16.mxu1 %vm8531_vm1, %v8529_v0 }
 0x108   :  { %2770 = vmatpush1.bf16.msra.mxu0 %v8142_v57  ;;  %7743 = vmatpush3.bf16.msra.mxu1 %v8145_v58  ;;  %v111_v57 = vld [vmem:[#allocation3 + $0xa0] sm:$0xff]  ;;  %v117_v58 = vld [vmem:[#allocation3 + $0x50] sm:$0xff] }
 0x109   :  { %2908 = vmatprep.subr.bf16.mxu0 %v8148_v59  ;;  %7748 = vmatprep.subr.bf16.mxu1 %v8529_v0  ;;  %v3154_v59 = vpack.c.b16 %v3153_v49, %v3153_v49  ;;  %v129_v63 = vadd.f32 %v117_v58, %v105_v56  ;;  %v135_v7 = vadd.f32 %v123_v62, %v111_v57  ;;  %v3715_v49 = vunpack.c.l.b16 %v3702_v43  ;;  %v8198_v62 = vld [vmem:[#allocation6 + $0x4c8] ss:$12 sps:$4 sm:$0xff]  }
 0x10a   :  { %v112_v43 = vld [vmem:[#allocation3 + $0xa8] sm:$0xff] }
 0x10b   :  { %7218 = vmatmul.mubr.msk.bf16.vlgmr.msra.gmra.mrb[72].mxu0 %vm88_vm0, %v2731_v4  ;;  %7745 = vmatmul.mubr.msk.bf16.vlgmr.msra.gmra.mrb[72].mxu1 %vm88_vm0, %v2731_v4  ;;  %v3293_v4 = vrot.slane %v3292_v50, 7  ;;  %v153_v9 = vadd.f32 %v141_v2, %v129_v63  ;;  %v3841_v50 = vmul.f32 0.25, %v3839_v44  ;;  %v3716_v57 = vrot.slane %v3715_v49, 7  ;;  %v8201_v63 = vld [vmem:[#allocation6 + $0x4d0] ss:$12 sps:$4 sm:$0xff]  }
 0x10c   :  { %2909 = vmatpush1.bf16.msra.mxu0 %v8146_v3  ;;  %7749 = vmatpush3.bf16.msra.mxu1 %v8149_v5  ;;  %v147_v3 = vld [vmem:[#allocation2 + $0x50] sm:$0xff]  ;;  %v3417_v5 = vmul.f32 0.25, %v3415_v53  ;;  %v118_v44 = vld [vmem:[#allocation3 + $0x58] sm:$0xff]  ;;  %v4263_v49 = vmul.f32 0.25, %v4261_v35 }
 0x10d   :  { %2910 = vmatprep.subr.bf16.mxu0 %v8152_v6  ;;  %7750 = vmatprep.subr.bf16.mxu1 %v8529_v0  ;;  %v3420_v6 = vpack.c.bf16 %v3418_v51, %v3418_v51  ;;  %v159_v11 = vadd.f32 %v147_v3, %v135_v7  ;;  %166 = vst.msk [vmem:[#allocation2 + $0x20] sm:$0xff] %vm88_vm0, %v153_v9  ;;  %v8196_v51 = vld [vmem:[#allocation6 + $0x4b4] ss:$12 sps:$4 sm:$0xff]   ;;  %v8194_v53 = vld [vmem:[#allocation6 + $0x4b0] ss:$12 sps:$4 sm:$0xff]  }
 0x10e   :  { %2940 = vmatprep.mubr.bf16.mxu0 %v8530_v1  ;;  %7752 = vmatprep.mubr.msk.bf16.mxu1 %vm8531_vm1, %v8529_v0  ;;  %v3294_v14 = vsel %vm211_vm2, %v3293_v4, %v3291_v61  ;;  %v3419_v15 = vpack.c.bf16 %v3417_v5, %v3417_v5  ;;  %v3980_v61 = vld [vmem:[#allocation2 + $0x4b] sm:$0x1]  ;;  %v8204_v2 = vld [vmem:[#allocation6 + $0x4e4] ss:$12 sps:$4 sm:$0xff]   ;;  %v3979_v7 = vld [vmem:[#allocation2 + $0x1b] sm:$0x1] }
 0x10f   :  { %v3433_v16 = vunpack.c.l.b16 %v3420_v6  ;;  %172 = vst.msk [vmem:[#allocation2 + $0x50] sm:$0xff] %vm88_vm0, %v159_v11  ;;  %v3982_v6 = vmul.f32 0.25, %v3980_v61  ;;  %v8230_v35 = vld [vmem:[#allocation6 + $0x588] ss:$12 sps:$4 sm:$0xff]  }
 0x110   :  { %2911 = vmatpush1.bf16.msra.mxu0 %v8150_v12  ;;  %7751 = vmatpush3.bf16.msra.mxu1 %v8153_v13  ;;  %v8177_v12 = vld [vmem:[#allocation6 + $0x440] ss:$12 sps:$4 sm:$0xff]  }
 0x111   :  { %3049 = vmatprep.subr.bf16.mxu0 %v8156_v18  ;;  %7756 = vmatprep.subr.bf16.mxu1 %v8529_v0  ;;  %v8180_v13 = vld [vmem:[#allocation6 + $0x454] ss:$12 sps:$4 sm:$0xff]   ;;  %v3556_v18 = vld [vmem:[#allocation2 + $0x18] sm:$0x1]  ;;  %v3434_v24 = vrot.slane %v3433_v16, 7 }
 0x112   :  { %v3558_v25 = vmul.f32 0.25, %v3556_v18  ;;  %v4121_v16 = vld [vmem:[#allocation2 + $0x4c] sm:$0x1] }
 0x113   :  { %7226 = vmatmul.mubr.msk.bf16.vlgmr.msra.gmra.mrb[76].mxu0 %vm88_vm0, %v2872_v21  ;;  %7753 = vmatmul.mubr.msk.bf16.vlgmr.msra.gmra.mrb[76].mxu1 %vm88_vm0, %v2872_v21  ;;  %v8181_v21 = vld [vmem:[#allocation6 + $0x458] ss:$12 sps:$4 sm:$0xff]   ;;  %v8209_v18 = vld [vmem:[#allocation6 + $0x500] ss:$12 sps:$4 sm:$0xff]  }
 0x114   :  { %3050 = vmatpush1.bf16.msra.mxu0 %v8154_v20  ;;  %7757 = vmatpush3.bf16.msra.mxu1 %v8157_v22  ;;  %v3295_v20 = vpack.c.b16 %v3294_v14, %v3294_v14  ;;  %v8184_v22 = vld [vmem:[#allocation6 + $0x46c] ss:$12 sps:$4 sm:$0xff]   ;;  %v3560_v31 = vpack.c.bf16 %v3558_v25, %v3558_v25  ;;  %v3984_v14 = vpack.c.bf16 %v3982_v6, %v3982_v6  ;;  %v8210_v25 = vld [vmem:[#allocation6 + $0x510] ss:$12 sps:$4 sm:$0xff]  }
 0x115   :  { %3051 = vmatprep.subr.bf16.mxu0 %v8160_v23  ;;  %7758 = vmatprep.subr.bf16.mxu1 %v8529_v0  ;;  %v3432_v23 = vunpack.c.l.b16 %v3419_v15  ;;  %v8208_v15 = vld [vmem:[#allocation6 + $0x4fc] ss:$12 sps:$4 sm:$0xff]  }
 0x116   :  { %3081 = vmatprep.mubr.bf16.mxu0 %v8530_v1  ;;  %7760 = vmatprep.mubr.msk.bf16.mxu1 %vm8531_vm1, %v8529_v0 }
 0x118   :  { %3052 = vmatpush1.bf16.msra.mxu0 %v8158_v29  ;;  %7759 = vmatpush3.bf16.msra.mxu1 %v8161_v30  ;;  %v8185_v29 = vld [vmem:[#allocation6 + $0x470] ss:$12 sps:$4 sm:$0xff]   ;;  %v3435_v30 = vsel %vm211_vm2, %v3434_v24, %v3432_v23  ;;  %v4123_v23 = vmul.f32 0.25, %v4121_v16 }
 0x119   :  { %3190 = vmatprep.subr.bf16.mxu0 %v8164_v36  ;;  %7764 = vmatprep.subr.bf16.mxu1 %v8529_v0  ;;  %v8186_v36 = vld [vmem:[#allocation6 + $0x480] ss:$12 sps:$4 sm:$0xff]   ;;  %v4120_v24 = vld [vmem:[#allocation2 + $0x1c] sm:$0x1] }
 0x11b   :  { %7234 = vmatmul.mubr.msk.bf16.vlgmr.msra.gmra.mrb[80].mxu0 %vm88_vm0, %v3013_v38  ;;  %7761 = vmatmul.mubr.msk.bf16.vlgmr.msra.gmra.mrb[80].mxu1 %vm88_vm0, %v3013_v38  ;;  %v8189_v38 = vld [vmem:[#allocation6 + $0x488] ss:$12 sps:$4 sm:$0xff]  }
 0x11c   :  { %3191 = vmatpush1.bf16.msra.mxu0 %v8162_v37  ;;  %7765 = vmatpush3.bf16.msra.mxu1 %v8165_v40  ;;  %v3436_v37 = vpack.c.b16 %v3435_v30, %v3435_v30  ;;  %v3573_v40 = vunpack.c.l.b16 %v3560_v31  ;;  %v4122_v31 = vmul.f32 0.25, %v4120_v24 }
 0x11d   :  { %3192 = vmatprep.subr.bf16.mxu0 %v8168_v41  ;;  %7766 = vmatprep.subr.bf16.mxu1 %v8529_v0  ;;  %v3575_v41 = vrot.slane %v3574_v32, 7  ;;  %v4125_v32 = vpack.c.bf16 %v4123_v23, %v4123_v23 }
 0x11e   :  { %3222 = vmatprep.mubr.bf16.mxu0 %v8530_v1  ;;  %7768 = vmatprep.mubr.msk.bf16.mxu1 %vm8531_vm1, %v8529_v0 }
 0x11f   :  { %v3576_v47 = vsel %vm211_vm2, %v3575_v41, %v3573_v40  ;;  %v4138_v40 = vunpack.c.l.b16 %v4125_v32  ;;  %v4264_v41 = vmul.f32 0.25, %v4262_v33  ;;  %v8232_v33 = vld [vmem:[#allocation6 + $0x58c] ss:$12 sps:$4 sm:$0xff]  }
 0x120   :  { %3193 = vmatpush1.bf16.msra.mxu0 %v8166_v46  ;;  %7767 = vmatpush3.bf16.msra.mxu1 %v8169_v48  ;;  %v8193_v46 = vld [vmem:[#allocation6 + $0x4a0] ss:$12 sps:$4 sm:$0xff]   ;;  %v3701_v48 = vpack.c.bf16 %v3699_v42, %v3699_v42 }
 0x121   :  { %3331 = vmatprep.subr.bf16.mxu0 %v8172_v52  ;;  %7772 = vmatprep.subr.bf16.mxu1 %v8529_v0  ;;  %v3838_v52 = vld [vmem:[#allocation2 + $0x1a] sm:$0x1]  ;;  %v106_v42 = vld [vmem:[#allocation3 + $0x48] sm:$0xff]  ;;  %v4139_v61 = vrot.slane %v4138_v40, 7  ;;  %v4543_v40 = vld [vmem:[#allocation2 + $0x1f] sm:$0x1] }
 0x122   :  { %v3714_v56 = vunpack.c.l.b16 %v3701_v48  ;;  %v3840_v58 = vmul.f32 0.25, %v3838_v52  ;;  %v8221_v48 = vld [vmem:[#allocation6 + $0x548] ss:$12 sps:$4 sm:$0xff]  }
 0x123   :  { %7242 = vmatmul.mubr.msk.bf16.vlgmr.msra.gmra.mrb[84].mxu0 %vm88_vm0, %v3154_v59  ;;  %7769 = vmatmul.mubr.msk.bf16.vlgmr.msra.gmra.mrb[84].mxu1 %vm88_vm0, %v3154_v59  ;;  %v3843_v59 = vpack.c.bf16 %v3841_v50, %v3841_v50  ;;  %v124_v50 = vld [vmem:[#allocation3 + $0xb8] sm:$0xff]  ;;  %v142_v52 = vld [vmem:[#allocation2 + $0x28] sm:$0xff] }
 0x124   :  { %3332 = vmatpush1.bf16.msra.mxu0 %v8170_v54  ;;  %7773 = vmatpush3.bf16.msra.mxu1 %v8173_v55  ;;  %v3577_v54 = vpack.c.b16 %v3576_v47, %v3576_v47  ;;  %v8197_v55 = vld [vmem:[#allocation6 + $0x4b8] ss:$12 sps:$4 sm:$0xff]   ;;  %v3717_v3 = vsel %vm211_vm2, %v3716_v57, %v3714_v56  ;;  %v3842_v4 = vpack.c.bf16 %v3840_v58, %v3840_v58  ;;  %v8218_v47 = vld [vmem:[#allocation6 + $0x540] ss:$12 sps:$4 sm:$0xff]  }
 0x125   :  { %3333 = vmatprep.subr.bf16.mxu0 %v8176_v60  ;;  %7774 = vmatprep.subr.bf16.mxu1 %v8529_v0  ;;  %v8200_v60 = vld [vmem:[#allocation6 + $0x4cc] ss:$12 sps:$4 sm:$0xff]   ;;  %v3856_v5 = vunpack.c.l.b16 %v3843_v59  ;;  %v3718_v9 = vpack.c.b16 %v3717_v3, %v3717_v3  ;;  %v136_v57 = vadd.f32 %v124_v50, %v112_v43 }
 0x126   :  { %3363 = vmatprep.mubr.bf16.mxu0 %v8530_v1  ;;  %7776 = vmatprep.mubr.msk.bf16.mxu1 %vm8531_vm1, %v8529_v0  ;;  %v3855_v11 = vunpack.c.l.b16 %v3842_v4  ;;  %v8224_v4 = vld [vmem:[#allocation6 + $0x55c] ss:$12 sps:$4 sm:$0xff]  }
 0x128   :  { %3334 = vmatpush1.bf16.msra.mxu0 %v8174_v10  ;;  %7775 = vmatpush3.bf16.msra.mxu1 %v8177_v12  ;;  %v8205_v10 = vld [vmem:[#allocation6 + $0x4e8] ss:$12 sps:$4 sm:$0xff]   ;;  %v3857_v12 = vrot.slane %v3856_v5, 7  ;;  %v4403_v5 = vld [vmem:[#allocation2 + $0x4e] sm:$0x1] }
 0x129   :  { %3472 = vmatprep.subr.bf16.mxu0 %v8180_v13  ;;  %7780 = vmatprep.subr.bf16.mxu1 %v8529_v0  ;;  %v3981_v13 = vmul.f32 0.25, %v3979_v7  ;;  %v8222_v7 = vld [vmem:[#allocation6 + $0x558] ss:$12 sps:$4 sm:$0xff]  }
 0x12b   :  { %7250 = vmatmul.mubr.msk.bf16.vlgmr.msra.gmra.mrb[88].mxu0 %vm88_vm0, %v3295_v20  ;;  %7777 = vmatmul.mubr.msk.bf16.vlgmr.msra.gmra.mrb[88].mxu1 %vm88_vm0, %v3295_v20  ;;  %v3858_v20 = vsel %vm211_vm2, %v3857_v12, %v3855_v11 }
 0x12c   :  { %3473 = vmatpush1.bf16.msra.mxu0 %v8178_v19  ;;  %7781 = vmatpush3.bf16.msra.mxu1 %v8181_v21  ;;  %v8212_v19 = vld [vmem:[#allocation6 + $0x514] ss:$12 sps:$4 sm:$0xff]   ;;  %v3983_v21 = vpack.c.bf16 %v3981_v13, %v3981_v13  ;;  %v3859_v26 = vpack.c.b16 %v3858_v20, %v3858_v20  ;;  %v4405_v13 = vmul.f32 0.25, %v4403_v5 }
 0x12d   :  { %3474 = vmatprep.subr.bf16.mxu0 %v8184_v22  ;;  %7782 = vmatprep.subr.bf16.mxu1 %v8529_v0  ;;  %v3997_v22 = vunpack.c.l.b16 %v3984_v14  ;;  %v4402_v14 = vld [vmem:[#allocation2 + $0x1e] sm:$0x1] }
 0x12e   :  { %3504 = vmatprep.mubr.bf16.mxu0 %v8530_v1  ;;  %7784 = vmatprep.mubr.msk.bf16.mxu1 %vm8531_vm1, %v8529_v0 }
 0x12f   :  { %v3998_v30 = vrot.slane %v3997_v22, 7 }
 0x130   :  { %3475 = vmatpush1.bf16.msra.mxu0 %v8182_v28  ;;  %7783 = vmatpush3.bf16.msra.mxu1 %v8185_v29  ;;  %v8216_v28 = vld [vmem:[#allocation6 + $0x52c] ss:$12 sps:$4 sm:$0xff]   ;;  %v3996_v29 = vunpack.c.l.b16 %v3983_v21 }
 0x131   :  { %3613 = vmatprep.subr.bf16.mxu0 %v8188_v34  ;;  %7788 = vmatprep.subr.bf16.mxu1 %v8529_v0  ;;  %v8214_v34 = vld [vmem:[#allocation6 + $0x528] ss:$12 sps:$4 sm:$0xff]  }
 0x133   :  { %7258 = vmatmul.mubr.msk.bf16.vlgmr.msra.gmra.mrb[92].mxu0 %vm88_vm0, %v3436_v37  ;;  %7785 = vmatmul.mubr.msk.bf16.vlgmr.msra.gmra.mrb[92].mxu1 %vm88_vm0, %v3436_v37  ;;  %v8220_v37 = vld [vmem:[#allocation6 + $0x544] ss:$12 sps:$4 sm:$0xff]  }
 0x134   :  { %3614 = vmatpush1.bf16.msra.mxu0 %v8186_v36  ;;  %7789 = vmatpush3.bf16.msra.mxu1 %v8189_v38  ;;  %v8217_v36 = vld [vmem:[#allocation6 + $0x530] ss:$12 sps:$4 sm:$0xff]   ;;  %v3999_v38 = vsel %vm211_vm2, %v3998_v30, %v3996_v29  ;;  %v4404_v29 = vmul.f32 0.25, %v4402_v14  ;;  %v4407_v30 = vpack.c.bf16 %v4405_v13, %v4405_v13 }
 0x135   :  { %3615 = vmatprep.subr.bf16.mxu0 %v8192_v39  ;;  %7790 = vmatprep.subr.bf16.mxu1 %v8529_v0  ;;  %v4124_v39 = vpack.c.bf16 %v4122_v31, %v4122_v31  ;;  %v4000_v56 = vpack.c.b16 %v3999_v38, %v3999_v38 }
 0x136   :  { %3645 = vmatprep.mubr.bf16.mxu0 %v8530_v1  ;;  %7792 = vmatprep.mubr.msk.bf16.mxu1 %vm8531_vm1, %v8529_v0  ;;  %v4406_v38 = vpack.c.bf16 %v4404_v29, %v4404_v29  ;;  %v8246_v29 = vld [vmem:[#allocation6 + $0x5e8] ss:$12 sps:$4 sm:$0xff]  }
 0x138   :  { %3616 = vmatpush1.bf16.msra.mxu0 %v8190_v45  ;;  %7791 = vmatpush3.bf16.msra.mxu1 %v8193_v46 }
 0x139   :  { %3754 = vmatprep.subr.bf16.mxu0 %v8196_v51  ;;  %7796 = vmatprep.subr.bf16.mxu1 %v8529_v0  ;;  %v130_v51 = vadd.f32 %v118_v44, %v106_v42  ;;  %v8236_v42 = vld [vmem:[#allocation6 + $0x5a4] ss:$12 sps:$4 sm:$0xff]  }
 0x13b   :  { %7266 = vmatmul.mubr.msk.bf16.vlgmr.msra.gmra.mrb[96].mxu0 %vm88_vm0, %v3577_v54  ;;  %7793 = vmatmul.mubr.msk.bf16.vlgmr.msra.gmra.mrb[96].mxu1 %vm88_vm0, %v3577_v54 }
 0x13c   :  { %3755 = vmatpush1.bf16.msra.mxu0 %v8194_v53  ;;  %7797 = vmatpush3.bf16.msra.mxu1 %v8197_v55  ;;  %v148_v53 = vld [vmem:[#allocation2 + $0x58] sm:$0xff] }
 0x13d   :  { %3756 = vmatprep.subr.bf16.mxu0 %v8200_v60  ;;  %7798 = vmatprep.subr.bf16.mxu1 %v8529_v0  ;;  %v4137_v60 = vunpack.c.l.b16 %v4124_v39  ;;  %v160_v6 = vadd.f32 %v148_v53, %v136_v57  ;;  %v4420_v39 = vunpack.c.l.b16 %v4407_v30  ;;  %v4545_v53 = vmul.f32 0.25, %v4543_v40  ;;  %v8249_v30 = vld [vmem:[#allocation6 + $0x5f0] ss:$12 sps:$4 sm:$0xff]   ;;  %v8253_v40 = vld [vmem:[#allocation6 + $0x608] ss:$12 sps:$4 sm:$0xff]  }
 0x13e   :  { %3786 = vmatprep.mubr.bf16.mxu0 %v8530_v1  ;;  %7800 = vmatprep.mubr.msk.bf16.mxu1 %vm8531_vm1, %v8529_v0  ;;  %v4419_v57 = vunpack.c.l.b16 %v4406_v38 }
 0x13f   :  { %173 = vst.msk [vmem:[#allocation2 + $0x58] sm:$0xff] %vm88_vm0, %v160_v6  ;;  %v4140_v11 = vsel %vm211_vm2, %v4139_v61, %v4137_v60 }
 0x140   :  { %3757 = vmatpush1.bf16.msra.mxu0 %v8198_v62  ;;  %7799 = vmatpush3.bf16.msra.mxu1 %v8201_v63  ;;  %v4266_v62 = vpack.c.bf16 %v4264_v41, %v4264_v41  ;;  %v154_v63 = vadd.f32 %v142_v52, %v130_v51  ;;  %v4141_v23 = vpack.c.b16 %v4140_v11, %v4140_v11  ;;  %v8240_v52 = vld [vmem:[#allocation6 + $0x5bc] ss:$12 sps:$4 sm:$0xff]  }
 0x141   :  { %3895 = vmatprep.subr.bf16.mxu0 %v8204_v2  ;;  %7804 = vmatprep.subr.bf16.mxu1 %v8529_v0 }
 0x142   :  { %167 = vst.msk [vmem:[#allocation2 + $0x28] sm:$0xff] %vm88_vm0, %v154_v63  ;;  %v4279_v12 = vunpack.c.l.b16 %v4266_v62  ;;  %v4686_v62 = vld [vmem:[#allocation2 + $0x50] sm:$0x1]  ;;  %v8238_v63 = vld [vmem:[#allocation6 + $0x5b8] ss:$12 sps:$4 sm:$0xff]  }
 0x143   :  { %7274 = vmatmul.mubr.msk.bf16.vlgmr.msra.gmra.mrb[100].mxu0 %vm88_vm0, %v3718_v9  ;;  %7801 = vmatmul.mubr.msk.bf16.vlgmr.msra.gmra.mrb[100].mxu1 %vm88_vm0, %v3718_v9  ;;  %v8228_v9 = vld [vmem:[#allocation6 + $0x574] ss:$12 sps:$4 sm:$0xff]   ;;  %v4688_v6 = vmul.f32 0.25, %v4686_v62 }
 0x144   :  { %3896 = vmatpush1.bf16.msra.mxu0 %v8202_v8  ;;  %7805 = vmatpush3.bf16.msra.mxu1 %v8205_v10  ;;  %v8225_v8 = vld [vmem:[#allocation6 + $0x560] ss:$12 sps:$4 sm:$0xff]   ;;  %v4265_v10 = vpack.c.bf16 %v4263_v49, %v4263_v49 }
 0x145   :  { %3897 = vmatprep.subr.bf16.mxu0 %v8208_v15  ;;  %7806 = vmatprep.subr.bf16.mxu1 %v8529_v0  ;;  %v4967_v62 = vld [vmem:[#allocation2 + $0x22] sm:$0x1] }
 0x146   :  { %3927 = vmatprep.mubr.bf16.mxu0 %v8530_v1  ;;  %7808 = vmatprep.mubr.msk.bf16.mxu1 %vm8531_vm1, %v8529_v0  ;;  %v4278_v24 = vunpack.c.l.b16 %v4265_v10 }
 0x148   :  { %3898 = vmatpush1.bf16.msra.mxu0 %v8206_v17  ;;  %7807 = vmatpush3.bf16.msra.mxu1 %v8209_v18  ;;  %v8226_v17 = vld [vmem:[#allocation6 + $0x570] ss:$12 sps:$4 sm:$0xff]   ;;  %v8229_v18 = vld [vmem:[#allocation6 + $0x578] ss:$12 sps:$4 sm:$0xff]  }
 0x149   :  { %4036 = vmatprep.subr.bf16.mxu0 %v8212_v19  ;;  %7812 = vmatprep.subr.bf16.mxu1 %v8529_v0 }
 0x14b   :  { %7282 = vmatmul.mubr.msk.bf16.vlgmr.msra.gmra.mrb[104].mxu0 %vm88_vm0, %v3859_v26  ;;  %7809 = vmatmul.mubr.msk.bf16.vlgmr.msra.gmra.mrb[104].mxu1 %vm88_vm0, %v3859_v26 }
 0x14c   :  { %4037 = vmatpush1.bf16.msra.mxu0 %v8210_v25  ;;  %7813 = vmatpush3.bf16.msra.mxu1 %v8213_v27 }
 0x14d   :  { %4038 = vmatprep.subr.bf16.mxu0 %v8216_v28  ;;  %7814 = vmatprep.subr.bf16.mxu1 %v8529_v0  ;;  %v4280_v28 = vrot.slane %v4279_v12, 7 }
 0x14e   :  { %v283_v45 = vpop.f32.mrb[0].mxu0  ;;  %v324_v46 = vpop.f32.mrb[0].mxu1  ;;  %4068 = vmatprep.mubr.bf16.mxu0 %v8530_v1  ;;  %7816 = vmatprep.mubr.msk.bf16.mxu1 %vm8531_vm1, %v8529_v0 }
 0x14f   :  { %v285_v54 = vpop.f32.mrb[1].mxu0  ;;  %v7602_v55 = vpop.f32.mrb[1].mxu1 }
 0x150   :  { %4039 = vmatpush1.bf16.msra.mxu0 %v8214_v34  ;;  %v287_v58 = vpop.f32.mrb[2].mxu0  ;;  %v327_v59 = vpop.f32.mrb[2].mxu1  ;;  %7815 = vmatpush3.bf16.msra.mxu1 %v8217_v36  ;;  %v4544_v34 = vld [vmem:[#allocation2 + $0x4f] sm:$0x1]  ;;  %v8233_v36 = vld [vmem:[#allocation6 + $0x590] ss:$12 sps:$4 sm:$0xff]  }
 0x151   :  { %v288_v2 = vpop.f32.mrb[3].mxu0  ;;  %v7603_v3 = vpop.f32.mrb[3].mxu1  ;;  %4177 = vmatprep.subr.bf16.mxu0 %v8220_v37  ;;  %7820 = vmatprep.subr.bf16.mxu1 %v8529_v0  ;;  %v4281_v37 = vsel %vm211_vm2, %v4280_v28, %v4278_v24  ;;  %v4546_v41 = vmul.f32 0.25, %v4544_v34  ;;  %v4421_v58 = vrot.slane %v4420_v39, 7  ;;  %v4690_v24 = vpack.c.bf16 %v4688_v6, %v4688_v6  ;;  %v4827_v28 = vld [vmem:[#allocation2 + $0x51] sm:$0x1] }
 0x152   :  { %v4282_v51 = vpack.c.b16 %v4281_v37, %v4281_v37  ;;  %v4547_v2 = vpack.c.bf16 %v4545_v53, %v4545_v53  ;;  %v8241_v3 = vld [vmem:[#allocation6 + $0x5c0] ss:$12 sps:$4 sm:$0xff]   ;;  %v8261_v6 = vld [vmem:[#allocation6 + $0x638] ss:$12 sps:$4 sm:$0xff]  }
 0x153   :  { %7290 = vmatmul.mubr.msk.bf16.vlgmr.msra.gmra.mrb[108].mxu0 %vm88_vm0, %v4000_v56  ;;  %7817 = vmatmul.mubr.msk.bf16.vlgmr.msra.gmra.mrb[108].mxu1 %vm88_vm0, %v4000_v56  ;;  %v4548_v59 = vpack.c.bf16 %v4546_v41, %v4546_v41  ;;  %v4826_v34 = vld [vmem:[#allocation2 + $0x21] sm:$0x1] }
 0x154   :  { %4178 = vmatpush1.bf16.msra.mxu0 %v8218_v47  ;;  %7821 = vmatpush3.bf16.msra.mxu1 %v8221_v48  ;;  %v8250_v39 = vld [vmem:[#allocation6 + $0x600] ss:$12 sps:$4 sm:$0xff]  }
 0x155   :  { %4179 = vmatprep.subr.bf16.mxu0 %v8224_v4  ;;  %7822 = vmatprep.subr.bf16.mxu1 %v8529_v0  ;;  %v4422_v4 = vsel %vm211_vm2, %v4421_v58, %v4419_v57  ;;  %v4561_v5 = vunpack.c.l.b16 %v4548_v59  ;;  %v8254_v57 = vld [vmem:[#allocation6 + $0x618] ss:$12 sps:$4 sm:$0xff]   ;;  %v8257_v58 = vld [vmem:[#allocation6 + $0x620] ss:$12 sps:$4 sm:$0xff]  }
 0x156   :  { %v406_v15 = vpop.f32.mrb[4].mxu0  ;;  %v447_v16 = vpop.f32.mrb[4].mxu1  ;;  %4209 = vmatprep.mubr.bf16.mxu0 %v8530_v1  ;;  %7824 = vmatprep.mubr.msk.bf16.mxu1 %vm8531_vm1, %v8529_v0 }
 0x157   :  { %v407_v19 = vadd.f32 %v406_v15, %v283_v45  ;;  %v448_v20 = vadd.f32 %v447_v16, %v324_v46  ;;  %v408_v21 = vpop.f32.mrb[5].mxu0  ;;  %v7610_v22 = vpop.f32.mrb[5].mxu1  ;;  %v8234_v45 = vld [vmem:[#allocation6 + $0x5a0] ss:$12 sps:$4 sm:$0xff]   ;;  %v8237_v46 = vld [vmem:[#allocation6 + $0x5a8] ss:$12 sps:$4 sm:$0xff]   ;;  %v4423_v16 = vpack.c.b16 %v4422_v4, %v4422_v4 }
 0x158   :  { %v409_v25 = vadd.f32 %v408_v21, %v285_v54  ;;  %4180 = vmatpush1.bf16.msra.mxu0 %v8222_v7  ;;  %v410_v26 = vpop.f32.mrb[6].mxu0  ;;  %v450_v27 = vpop.f32.mrb[6].mxu1  ;;  %7823 = vmatpush3.bf16.msra.mxu1 %v8225_v8  ;;  %v8244_v7 = vld [vmem:[#allocation6 + $0x5d4] ss:$12 sps:$4 sm:$0xff]   ;;  %v8242_v15 = vld [vmem:[#allocation6 + $0x5d0] ss:$12 sps:$4 sm:$0xff]  }
 0x159   :  { %v411_v31 = vpop.f32.mrb[7].mxu0  ;;  %v7611_v32 = vpop.f32.mrb[7].mxu1  ;;  %4318 = vmatprep.subr.bf16.mxu0 %v8228_v9  ;;  %7828 = vmatprep.subr.bf16.mxu1 %v8529_v0  ;;  %v4685_v8 = vld [vmem:[#allocation2 + $0x20] sm:$0x1]  ;;  %v8245_v21 = vld [vmem:[#allocation6 + $0x5d8] ss:$12 sps:$4 sm:$0xff]  }
 0x15a   :  { %v4562_v22 = vrot.slane %v4561_v5, 7  ;;  %v8248_v27 = vld [vmem:[#allocation6 + $0x5ec] ss:$12 sps:$4 sm:$0xff]   ;;  %v8258_v5 = vld [vmem:[#allocation6 + $0x630] ss:$12 sps:$4 sm:$0xff]  }
 0x15b   :  { %7298 = vmatmul.mubr.msk.bf16.vlgmr.msra.gmra.mrb[112].mxu0 %vm88_vm0, %v4141_v23  ;;  %7825 = vmatmul.mubr.msk.bf16.vlgmr.msra.gmra.mrb[112].mxu1 %vm88_vm0, %v4141_v23  ;;  %v4687_v23 = vmul.f32 0.25, %v4685_v8 }
 0x15c   :  { %4319 = vmatpush1.bf16.msra.mxu0 %v8226_v17  ;;  %7829 = vmatpush3.bf16.msra.mxu1 %v8229_v18  ;;  %v4560_v17 = vunpack.c.l.b16 %v4547_v2  ;;  %v8260_v2 = vld [vmem:[#allocation6 + $0x634] ss:$12 sps:$4 sm:$0xff]  }
 0x15d   :  { %4320 = vmatprep.subr.bf16.mxu0 %v8232_v33  ;;  %7830 = vmatprep.subr.bf16.mxu1 %v8529_v0  ;;  %v4689_v32 = vpack.c.bf16 %v4687_v23, %v4687_v23  ;;  %v4703_v33 = vunpack.c.l.b16 %v4690_v24  ;;  %v8262_v23 = vld [vmem:[#allocation6 + $0x648] ss:$12 sps:$4 sm:$0xff]   ;;  %v8265_v24 = vld [vmem:[#allocation6 + $0x650] ss:$12 sps:$4 sm:$0xff]  }
 0x15e   :  { %v544_v43 = vpop.f32.mrb[8].mxu0  ;;  %v585_v44 = vpop.f32.mrb[8].mxu1  ;;  %4350 = vmatprep.mubr.bf16.mxu0 %v8530_v1  ;;  %7832 = vmatprep.mubr.msk.bf16.mxu1 %vm8531_vm1, %v8529_v0  ;;  %v4563_v31 = vsel %vm211_vm2, %v4562_v22, %v4560_v17  ;;  %v5109_v22 = vld [vmem:[#allocation2 + $0x53] sm:$0x1] }
 0x15f   :  { %v591_v47 = vadd.f32 %v544_v43, %v407_v19  ;;  %v593_v48 = vadd.f32 %v585_v44, %v448_v20  ;;  %v546_v49 = vpop.f32.mrb[9].mxu0  ;;  %v7618_v50 = vpop.f32.mrb[9].mxu1 }
 0x160   :  { %v592_v54 = vadd.f32 %v546_v49, %v409_v25  ;;  %4321 = vmatpush1.bf16.msra.mxu0 %v8230_v35  ;;  %v548_v55 = vpop.f32.mrb[10].mxu0  ;;  %v588_v56 = vpop.f32.mrb[10].mxu1  ;;  %7831 = vmatpush3.bf16.msra.mxu1 %v8233_v36  ;;  %v4829_v35 = vmul.f32 0.25, %v4827_v28  ;;  %v8252_v36 = vld [vmem:[#allocation6 + $0x604] ss:$12 sps:$4 sm:$0xff]  }
 0x161   :  { %v549_v60 = vpop.f32.mrb[11].mxu0  ;;  %v7619_v61 = vpop.f32.mrb[11].mxu1  ;;  %4459 = vmatprep.subr.bf16.mxu0 %v8236_v42  ;;  %7836 = vmatprep.subr.bf16.mxu1 %v8529_v0  ;;  %v5108_v28 = vld [vmem:[#allocation2 + $0x23] sm:$0x1] }
 0x162   :  { %v4831_v53 = vpack.c.bf16 %v4829_v35, %v4829_v35 }
 0x163   :  { %7306 = vmatmul.mubr.msk.bf16.vlgmr.msra.gmra.mrb[116].mxu0 %vm88_vm0, %v4282_v51  ;;  %7833 = vmatmul.mubr.msk.bf16.vlgmr.msra.gmra.mrb[116].mxu1 %vm88_vm0, %v4282_v51  ;;  %v4702_v51 = vunpack.c.l.b16 %v4689_v32 }
 0x164   :  { %4460 = vmatpush1.bf16.msra.mxu0 %v8234_v45  ;;  %7837 = vmatpush3.bf16.msra.mxu1 %v8237_v46  ;;  %v4564_v45 = vpack.c.b16 %v4563_v31, %v4563_v31  ;;  %v8256_v46 = vld [vmem:[#allocation6 + $0x61c] ss:$12 sps:$4 sm:$0xff]   ;;  %v4844_v61 = vunpack.c.l.b16 %v4831_v53  ;;  %v8273_v53 = vld [vmem:[#allocation6 + $0x680] ss:$12 sps:$4 sm:$0xff]  }
 0x165   :  { %4461 = vmatprep.subr.bf16.mxu0 %v8240_v52  ;;  %7838 = vmatprep.subr.bf16.mxu1 %v8529_v0  ;;  %v4704_v52 = vrot.slane %v4703_v33, 7 }
 0x166   :  { %v685_v9 = vpop.f32.mrb[12].mxu0  ;;  %v726_v10 = vpop.f32.mrb[12].mxu1  ;;  %4491 = vmatprep.mubr.bf16.mxu0 %v8530_v1  ;;  %7840 = vmatprep.mubr.msk.bf16.mxu1 %vm8531_vm1, %v8529_v0 }
 0x167   :  { %v732_v11 = vadd.f32 %v685_v9, %v591_v47  ;;  %v734_v12 = vadd.f32 %v726_v10, %v593_v48  ;;  %v687_v13 = vpop.f32.mrb[13].mxu0  ;;  %v7626_v14 = vpop.f32.mrb[13].mxu1  ;;  %v4828_v47 = vmul.f32 0.25, %v4826_v34  ;;  %v4705_v59 = vsel %vm211_vm2, %v4704_v52, %v4702_v51  ;;  %v8270_v52 = vld [vmem:[#allocation6 + $0x678] ss:$12 sps:$4 sm:$0xff]  }
 0x168   :  { %v733_v18 = vadd.f32 %v687_v13, %v592_v54  ;;  %4462 = vmatpush1.bf16.msra.mxu0 %v8238_v63  ;;  %v689_v19 = vpop.f32.mrb[14].mxu0  ;;  %v729_v20 = vpop.f32.mrb[14].mxu1  ;;  %7839 = vmatpush3.bf16.msra.mxu1 %v8241_v3  ;;  %v4968_v54 = vld [vmem:[#allocation2 + $0x52] sm:$0x1]  ;;  %v4969_v13 = vmul.f32 0.25, %v4967_v62 }
 0x169   :  { %v690_v25 = vpop.f32.mrb[15].mxu0  ;;  %v7627_v26 = vpop.f32.mrb[15].mxu1  ;;  %4600 = vmatprep.subr.bf16.mxu0 %v8244_v7  ;;  %7844 = vmatprep.subr.bf16.mxu1 %v8529_v0  ;;  %v4830_v60 = vpack.c.bf16 %v4828_v47, %v4828_v47  ;;  %v4970_v63 = vmul.f32 0.25, %v4968_v54 }
 0x16a   :  { %v4971_v26 = vpack.c.bf16 %v4969_v13, %v4969_v13 }
 0x16b   :  { %7314 = vmatmul.mubr.msk.bf16.vlgmr.msra.gmra.mrb[120].mxu0 %vm88_vm0, %v4423_v16  ;;  %7841 = vmatmul.mubr.msk.bf16.vlgmr.msra.gmra.mrb[120].mxu1 %vm88_vm0, %v4423_v16  ;;  %v4843_v17 = vunpack.c.l.b16 %v4830_v60  ;;  %v4972_v19 = vpack.c.bf16 %v4970_v63, %v4970_v63 }
 0x16c   :  { %4601 = vmatpush1.bf16.msra.mxu0 %v8242_v15  ;;  %7845 = vmatpush3.bf16.msra.mxu1 %v8245_v21 }
 0x16d   :  { %4602 = vmatprep.subr.bf16.mxu0 %v8248_v27  ;;  %7846 = vmatprep.subr.bf16.mxu1 %v8529_v0  ;;  %v4985_v27 = vunpack.c.l.b16 %v4972_v19 }
 0x16e   :  { %v826_v37 = vpop.f32.mrb[16].mxu0  ;;  %v867_v38 = vpop.f32.mrb[16].mxu1  ;;  %4632 = vmatprep.mubr.bf16.mxu0 %v8530_v1  ;;  %7848 = vmatprep.mubr.msk.bf16.mxu1 %vm8531_vm1, %v8529_v0 }
 0x16f   :  { %v873_v41 = vadd.f32 %v826_v37, %v732_v11  ;;  %v875_v42 = vadd.f32 %v867_v38, %v734_v12  ;;  %v828_v43 = vpop.f32.mrb[17].mxu0  ;;  %v7634_v44 = vpop.f32.mrb[17].mxu1  ;;  %v4706_v11 = vpack.c.b16 %v4705_v59, %v4705_v59  ;;  %v8264_v12 = vld [vmem:[#allocation6 + $0x64c] ss:$12 sps:$4 sm:$0xff]  }
 0x170   :  { %v874_v48 = vadd.f32 %v828_v43, %v733_v18  ;;  %4603 = vmatpush1.bf16.msra.mxu0 %v8246_v29  ;;  %v830_v49 = vpop.f32.mrb[18].mxu0  ;;  %v870_v50 = vpop.f32.mrb[18].mxu1  ;;  %7847 = vmatpush3.bf16.msra.mxu1 %v8249_v30  ;;  %v4845_v18 = vrot.slane %v4844_v61, 7  ;;  %v5111_v29 = vmul.f32 0.25, %v5109_v22  ;;  %v8268_v30 = vld [vmem:[#allocation6 + $0x664] ss:$12 sps:$4 sm:$0xff]   ;;  %v4984_v44 = vunpack.c.l.b16 %v4971_v26 }
 0x171   :  { %v831_v55 = vpop.f32.mrb[19].mxu0  ;;  %v7635_v56 = vpop.f32.mrb[19].mxu1  ;;  %4742 = vmatprep.subr.bf16.mxu0 %v8252_v36  ;;  %7852 = vmatprep.subr.bf16.mxu1 %v8529_v0  ;;  %v8266_v37 = vld [vmem:[#allocation6 + $0x660] ss:$12 sps:$4 sm:$0xff]   ;;  %v8269_v43 = vld [vmem:[#allocation6 + $0x668] ss:$12 sps:$4 sm:$0xff]  }
 0x172   :  { %v4846_v25 = vsel %vm211_vm2, %v4845_v18, %v4843_v17  ;;  %v8272_v49 = vld [vmem:[#allocation6 + $0x67c] ss:$12 sps:$4 sm:$0xff]   ;;  %v5250_v50 = vld [vmem:[#allocation2 + $0x54] sm:$0x1]  ;;  %v5390_v22 = vld [vmem:[#allocation2 + $0x25] sm:$0x1] }
 0x173   :  { %7322 = vmatmul.mubr.msk.bf16.vlgmr.msra.gmra.mrb[124].mxu0 %vm88_vm0, %v4564_v45  ;;  %7849 = vmatmul.mubr.msk.bf16.vlgmr.msra.gmra.mrb[124].mxu1 %vm88_vm0, %v4564_v45  ;;  %v4847_v38 = vpack.c.b16 %v4846_v25, %v4846_v25  ;;  %v4986_v45 = vrot.slane %v4985_v27, 7  ;;  %v5252_v56 = vmul.f32 0.25, %v5250_v50  ;;  %v8278_v17 = vld [vmem:[#allocation6 + $0x6a8] ss:$12 sps:$4 sm:$0xff]   ;;  %v8281_v18 = vld [vmem:[#allocation6 + $0x6b0] ss:$12 sps:$4 sm:$0xff]  }
 0x174   :  { %4743 = vmatpush1.bf16.msra.mxu0 %v8250_v39  ;;  %7853 = vmatpush3.bf16.msra.mxu1 %v8253_v40  ;;  %v5110_v39 = vmul.f32 0.25, %v5108_v28 }
 0x175   :  { %4744 = vmatprep.subr.bf16.mxu0 %v8256_v46  ;;  %7854 = vmatprep.subr.bf16.mxu1 %v8529_v0  ;;  %v5113_v46 = vpack.c.bf16 %v5111_v29, %v5111_v29  ;;  %v4987_v54 = vsel %vm211_vm2, %v4986_v45, %v4984_v44  ;;  %v5532_v44 = vld [vmem:[#allocation2 + $0x56] sm:$0x1] }
 0x176   :  { %v967_v3 = vpop.f32.mrb[20].mxu0  ;;  %v1008_v4 = vpop.f32.mrb[20].mxu1  ;;  %4774 = vmatprep.mubr.bf16.mxu0 %v8530_v1  ;;  %7856 = vmatprep.mubr.msk.bf16.mxu1 %vm8531_vm1, %v8529_v0  ;;  %v5112_v51 = vpack.c.bf16 %v5110_v39, %v5110_v39  ;;  %v5534_v50 = vmul.f32 0.25, %v5532_v44 }
 0x177   :  { %v1014_v7 = vadd.f32 %v967_v3, %v873_v41  ;;  %v1016_v8 = vadd.f32 %v1008_v4, %v875_v42  ;;  %v969_v9 = vpop.f32.mrb[21].mxu0  ;;  %v7642_v10 = vpop.f32.mrb[21].mxu1  ;;  %v5126_v55 = vunpack.c.l.b16 %v5113_v46  ;;  %v8274_v3 = vld [vmem:[#allocation6 + $0x690] ss:$12 sps:$4 sm:$0xff]   ;;  %v4988_v4 = vpack.c.b16 %v4987_v54, %v4987_v54  ;;  %v8286_v46 = vld [vmem:[#allocation6 + $0x6d8] ss:$12 sps:$4 sm:$0xff]  }
 0x178   :  { %v1015_v14 = vadd.f32 %v969_v9, %v874_v48  ;;  %4745 = vmatpush1.bf16.msra.mxu0 %v8254_v57  ;;  %v971_v15 = vpop.f32.mrb[22].mxu0  ;;  %v1011_v16 = vpop.f32.mrb[22].mxu1  ;;  %7855 = vmatpush3.bf16.msra.mxu1 %v8257_v58  ;;  %v8276_v57 = vld [vmem:[#allocation6 + $0x694] ss:$12 sps:$4 sm:$0xff]   ;;  %v5249_v58 = vld [vmem:[#allocation2 + $0x24] sm:$0x1] }
 0x179   :  { %v972_v20 = vpop.f32.mrb[23].mxu0  ;;  %v7643_v21 = vpop.f32.mrb[23].mxu1  ;;  %4883 = vmatprep.subr.bf16.mxu0 %v8260_v2  ;;  %7860 = vmatprep.subr.bf16.mxu1 %v8529_v0  ;;  %v8277_v9 = vld [vmem:[#allocation6 + $0x698] ss:$12 sps:$4 sm:$0xff]   ;;  %v5127_v10 = vrot.slane %v5126_v55, 7 }
 0x17a   :  { %v8280_v15 = vld [vmem:[#allocation6 + $0x6ac] ss:$12 sps:$4 sm:$0xff]   ;;  %v5391_v16 = vld [vmem:[#allocation2 + $0x55] sm:$0x1] }
 0x17b   :  { %7330 = vmatmul.mubr.msk.bf16.vlgmr.msra.gmra.mrb[128].mxu0 %vm88_vm0, %v4706_v11  ;;  %7857 = vmatmul.mubr.msk.bf16.vlgmr.msra.gmra.mrb[128].mxu1 %vm88_vm0, %v4706_v11  ;;  %v5251_v11 = vmul.f32 0.25, %v5249_v58 }
 0x17c   :  { %4884 = vmatpush1.bf16.msra.mxu0 %v8258_v5  ;;  %7861 = vmatpush3.bf16.msra.mxu1 %v8261_v6  ;;  %v5125_v5 = vunpack.c.l.b16 %v5112_v51  ;;  %v8292_v51 = vld [vmem:[#allocation6 + $0x6f4] ss:$12 sps:$4 sm:$0xff]  }
 0x17d   :  { %4885 = vmatprep.subr.bf16.mxu0 %v8264_v12  ;;  %7862 = vmatprep.subr.bf16.mxu1 %v8529_v0  ;;  %v5254_v12 = vpack.c.bf16 %v5252_v56, %v5252_v56  ;;  %v5253_v20 = vpack.c.bf16 %v5251_v11, %v5251_v11  ;;  %v8294_v11 = vld [vmem:[#allocation6 + $0x708] ss:$12 sps:$4 sm:$0xff]  }
 0x17e   :  { %v1108_v31 = vpop.f32.mrb[24].mxu0  ;;  %v1149_v32 = vpop.f32.mrb[24].mxu1  ;;  %4915 = vmatprep.mubr.bf16.mxu0 %v8530_v1  ;;  %7864 = vmatprep.mubr.msk.bf16.mxu1 %vm8531_vm1, %v8529_v0  ;;  %v5128_v19 = vsel %vm211_vm2, %v5127_v10, %v5125_v5  ;;  %v5673_v10 = vld [vmem:[#allocation2 + $0x57] sm:$0x1] }
 0x17f   :  { %v1155_v33 = vadd.f32 %v1108_v31, %v1014_v7  ;;  %v1157_v34 = vadd.f32 %v1149_v32, %v1016_v8  ;;  %v1110_v35 = vpop.f32.mrb[25].mxu0  ;;  %v7650_v36 = vpop.f32.mrb[25].mxu1  ;;  %v5267_v21 = vunpack.c.l.b16 %v5254_v12  ;;  %v8282_v31 = vld [vmem:[#allocation6 + $0x6c0] ss:$12 sps:$4 sm:$0xff]   ;;  %v5129_v32 = vpack.c.b16 %v5128_v19, %v5128_v19  ;;  %v8297_v12 = vld [vmem:[#allocation6 + $0x710] ss:$12 sps:$4 sm:$0xff]  }
 0x180   :  { %v1156_v40 = vadd.f32 %v1110_v35, %v1015_v14  ;;  %4886 = vmatpush1.bf16.msra.mxu0 %v8262_v23  ;;  %v1112_v41 = vpop.f32.mrb[26].mxu0  ;;  %v1152_v42 = vpop.f32.mrb[26].mxu1  ;;  %7863 = vmatpush3.bf16.msra.mxu1 %v8265_v24  ;;  %v5393_v23 = vmul.f32 0.25, %v5391_v16  ;;  %v8284_v24 = vld [vmem:[#allocation6 + $0x6c4] ss:$12 sps:$4 sm:$0xff]  }
 0x181   :  { %v1113_v47 = vpop.f32.mrb[27].mxu0  ;;  %v7651_v48 = vpop.f32.mrb[27].mxu1  ;;  %5024 = vmatprep.subr.bf16.mxu0 %v8268_v30  ;;  %7868 = vmatprep.subr.bf16.mxu1 %v8529_v0  ;;  %v5268_v39 = vrot.slane %v5267_v21, 7  ;;  %v5672_v16 = vld [vmem:[#allocation2 + $0x27] sm:$0x1] }
 0x182   :  { %v8289_v47 = vld [vmem:[#allocation6 + $0x6e0] ss:$12 sps:$4 sm:$0xff]  }
 0x183   :  { %7338 = vmatmul.mubr.msk.bf16.vlgmr.msra.gmra.mrb[132].mxu0 %vm88_vm0, %v4847_v38  ;;  %7865 = vmatmul.mubr.msk.bf16.vlgmr.msra.gmra.mrb[132].mxu1 %vm88_vm0, %v4847_v38  ;;  %v5266_v38 = vunpack.c.l.b16 %v5253_v20 }
 0x184   :  { %5025 = vmatpush1.bf16.msra.mxu0 %v8266_v37  ;;  %7869 = vmatpush3.bf16.msra.mxu1 %v8269_v43  ;;  %v8285_v37 = vld [vmem:[#allocation6 + $0x6c8] ss:$12 sps:$4 sm:$0xff]  }
 0x185   :  { %5026 = vmatprep.subr.bf16.mxu0 %v8272_v49  ;;  %7870 = vmatprep.subr.bf16.mxu1 %v8529_v0  ;;  %v8288_v43 = vld [vmem:[#allocation6 + $0x6dc] ss:$12 sps:$4 sm:$0xff]   ;;  %v5269_v48 = vsel %vm211_vm2, %v5268_v39, %v5266_v38  ;;  %v5814_v38 = vld [vmem:[#allocation2 + $0x58] sm:$0x1] }
 0x186   :  { %v1249_v59 = vpop.f32.mrb[28].mxu0  ;;  %v1290_v60 = vpop.f32.mrb[28].mxu1  ;;  %5056 = vmatprep.mubr.bf16.mxu0 %v8530_v1  ;;  %7872 = vmatprep.mubr.msk.bf16.mxu1 %vm8531_vm1, %v8529_v0  ;;  %v5816_v44 = vmul.f32 0.25, %v5814_v38  ;;  %v6095_v38 = vld [vmem:[#allocation2 + $0x2a] sm:$0x1] }
 0x187   :  { %v1296_v61 = vadd.f32 %v1249_v59, %v1155_v33  ;;  %v1298_v62 = vadd.f32 %v1290_v60, %v1157_v34  ;;  %v1251_v63 = vpop.f32.mrb[29].mxu0  ;;  %v7658_v2 = vpop.f32.mrb[29].mxu1  ;;  %v5392_v33 = vmul.f32 0.25, %v5390_v22  ;;  %v8290_v59 = vld [vmem:[#allocation6 + $0x6f0] ss:$12 sps:$4 sm:$0xff]   ;;  %v5270_v60 = vpack.c.b16 %v5269_v48, %v5269_v48 }
 0x188   :  { %v1297_v6 = vadd.f32 %v1251_v63, %v1156_v40  ;;  %5027 = vmatpush1.bf16.msra.mxu0 %v8270_v52  ;;  %v1253_v7 = vpop.f32.mrb[30].mxu0  ;;  %v1293_v8 = vpop.f32.mrb[30].mxu1  ;;  %7871 = vmatpush3.bf16.msra.mxu1 %v8273_v53  ;;  %v5395_v40 = vpack.c.bf16 %v5393_v23, %v5393_v23  ;;  %v5531_v52 = vld [vmem:[#allocation2 + $0x26] sm:$0x1] }
 0x189   :  { %v1254_v13 = vpop.f32.mrb[31].mxu0  ;;  %v7659_v14 = vpop.f32.mrb[31].mxu1  ;;  %5165 = vmatprep.subr.bf16.mxu0 %v8276_v57  ;;  %7876 = vmatprep.subr.bf16.mxu1 %v8529_v0  ;;  %v5394_v45 = vpack.c.bf16 %v5392_v33, %v5392_v33  ;;  %v5533_v5 = vmul.f32 0.25, %v5531_v52 }
 0x18a   :  { %v5408_v49 = vunpack.c.l.b16 %v5395_v40  ;;  %v8302_v40 = vld [vmem:[#allocation6 + $0x738] ss:$12 sps:$4 sm:$0xff]  }
 0x18b   :  { %7346 = vmatmul.mubr.msk.bf16.vlgmr.msra.gmra.mrb[136].mxu0 %vm88_vm0, %v4988_v4  ;;  %7873 = vmatmul.mubr.msk.bf16.vlgmr.msra.gmra.mrb[136].mxu1 %vm88_vm0, %v4988_v4  ;;  %v5535_v14 = vpack.c.bf16 %v5533_v5, %v5533_v5  ;;  %v8310_v5 = vld [vmem:[#allocation6 + $0x768] ss:$12 sps:$4 sm:$0xff]  }
 0x18c   :  { %5166 = vmatpush1.bf16.msra.mxu0 %v8274_v3  ;;  %7877 = vmatpush3.bf16.msra.mxu1 %v8277_v9  ;;  %v8293_v3 = vld [vmem:[#allocation6 + $0x6f8] ss:$12 sps:$4 sm:$0xff]   ;;  %v5409_v4 = vrot.slane %v5408_v49, 7 }
 0x18d   :  { %5167 = vmatprep.subr.bf16.mxu0 %v8280_v15  ;;  %7878 = vmatprep.subr.bf16.mxu1 %v8529_v0  ;;  %v8296_v9 = vld [vmem:[#allocation6 + $0x70c] ss:$12 sps:$4 sm:$0xff]  }
 0x18e   :  { %v1390_v25 = vpop.f32.mrb[32].mxu0  ;;  %v1431_v26 = vpop.f32.mrb[32].mxu1  ;;  %5197 = vmatprep.mubr.bf16.mxu0 %v8530_v1  ;;  %7880 = vmatprep.mubr.msk.bf16.mxu1 %vm8531_vm1, %v8529_v0 }
 0x18f   :  { %v1437_v27 = vadd.f32 %v1390_v25, %v1296_v61  ;;  %v1439_v28 = vadd.f32 %v1431_v26, %v1298_v62  ;;  %v1392_v29 = vpop.f32.mrb[33].mxu0  ;;  %v7666_v30 = vpop.f32.mrb[33].mxu1  ;;  %v5407_v61 = vunpack.c.l.b16 %v5394_v45  ;;  %v8298_v25 = vld [vmem:[#allocation6 + $0x720] ss:$12 sps:$4 sm:$0xff]  }
 0x190   :  { %v1438_v34 = vadd.f32 %v1392_v29, %v1297_v6  ;;  %5168 = vmatpush1.bf16.msra.mxu0 %v8278_v17  ;;  %v1394_v35 = vpop.f32.mrb[34].mxu0  ;;  %v1434_v36 = vpop.f32.mrb[34].mxu1  ;;  %7879 = vmatpush3.bf16.msra.mxu1 %v8281_v18  ;;  %v5536_v6 = vpack.c.bf16 %v5534_v50, %v5534_v50  ;;  %v5675_v17 = vmul.f32 0.25, %v5673_v10  ;;  %v8300_v18 = vld [vmem:[#allocation6 + $0x724] ss:$12 sps:$4 sm:$0xff]  }
 0x191   :  { %v1395_v41 = vpop.f32.mrb[35].mxu0  ;;  %v7667_v42 = vpop.f32.mrb[35].mxu1  ;;  %5306 = vmatprep.subr.bf16.mxu0 %v8284_v24  ;;  %7884 = vmatprep.subr.bf16.mxu1 %v8529_v0  ;;  %v5410_v13 = vsel %vm211_vm2, %v5409_v4, %v5407_v61  ;;  %v8308_v45 = vld [vmem:[#allocation6 + $0x754] ss:$12 sps:$4 sm:$0xff]   ;;  %v5955_v4 = vld [vmem:[#allocation2 + $0x59] sm:$0x1] }
 0x192   :  { %v5549_v15 = vunpack.c.l.b16 %v5536_v6  ;;  %v5411_v26 = vpack.c.b16 %v5410_v13, %v5410_v13  ;;  %v8305_v41 = vld [vmem:[#allocation6 + $0x740] ss:$12 sps:$4 sm:$0xff]   ;;  %v8313_v6 = vld [vmem:[#allocation6 + $0x770] ss:$12 sps:$4 sm:$0xff]   ;;  %v5954_v10 = vld [vmem:[#allocation2 + $0x29] sm:$0x1] }
 0x193   :  { %7354 = vmatmul.mubr.msk.bf16.vlgmr.msra.gmra.mrb[140].mxu0 %vm88_vm0, %v5129_v32  ;;  %7881 = vmatmul.mubr.msk.bf16.vlgmr.msra.gmra.mrb[140].mxu1 %vm88_vm0, %v5129_v32  ;;  %v5548_v32 = vunpack.c.l.b16 %v5535_v14 }
 0x194   :  { %5307 = vmatpush1.bf16.msra.mxu0 %v8282_v31  ;;  %7885 = vmatpush3.bf16.msra.mxu1 %v8285_v37  ;;  %v8301_v31 = vld [vmem:[#allocation6 + $0x728] ss:$12 sps:$4 sm:$0xff]   ;;  %v5550_v33 = vrot.slane %v5549_v15, 7 }
 0x195   :  { %5308 = vmatprep.subr.bf16.mxu0 %v8288_v43  ;;  %7886 = vmatprep.subr.bf16.mxu1 %v8529_v0  ;;  %v8304_v37 = vld [vmem:[#allocation6 + $0x73c] ss:$12 sps:$4 sm:$0xff]  }
 0x196   :  { %v1531_v53 = vpop.f32.mrb[36].mxu0  ;;  %v1572_v54 = vpop.f32.mrb[36].mxu1  ;;  %5338 = vmatprep.mubr.bf16.mxu0 %v8530_v1  ;;  %7888 = vmatprep.mubr.msk.bf16.mxu1 %vm8531_vm1, %v8529_v0  ;;  %v5551_v42 = vsel %vm211_vm2, %v5550_v33, %v5548_v32  ;;  %v6096_v32 = vld [vmem:[#allocation2 + $0x5a] sm:$0x1] }
 0x197   :  { %v1578_v55 = vadd.f32 %v1531_v53, %v1437_v27  ;;  %v1580_v56 = vadd.f32 %v1572_v54, %v1439_v28  ;;  %v1533_v57 = vpop.f32.mrb[37].mxu0  ;;  %v7674_v58 = vpop.f32.mrb[37].mxu1  ;;  %v5674_v27 = vmul.f32 0.25, %v5672_v16  ;;  %v8306_v53 = vld [vmem:[#allocation6 + $0x750] ss:$12 sps:$4 sm:$0xff]   ;;  %v5552_v54 = vpack.c.b16 %v5551_v42, %v5551_v42 }
 0x198   :  { %v1579_v62 = vadd.f32 %v1533_v57, %v1438_v34  ;;  %5309 = vmatpush1.bf16.msra.mxu0 %v8286_v46  ;;  %v1535_v63 = vpop.f32.mrb[38].mxu0  ;;  %v1575_v2 = vpop.f32.mrb[38].mxu1  ;;  %7887 = vmatpush3.bf16.msra.mxu1 %v8289_v47  ;;  %v5677_v34 = vpack.c.bf16 %v5675_v17, %v5675_v17  ;;  %v5813_v46 = vld [vmem:[#allocation2 + $0x28] sm:$0x1]  ;;  %v8318_v33 = vld [vmem:[#allocation6 + $0x798] ss:$12 sps:$4 sm:$0xff]  }
 0x199   :  { %v1536_v7 = vpop.f32.mrb[39].mxu0  ;;  %v7675_v8 = vpop.f32.mrb[39].mxu1  ;;  %5447 = vmatprep.subr.bf16.mxu0 %v8292_v51  ;;  %7892 = vmatprep.subr.bf16.mxu1 %v8529_v0  ;;  %v5676_v39 = vpack.c.bf16 %v5674_v27, %v5674_v27  ;;  %v5815_v61 = vmul.f32 0.25, %v5813_v46 }
 0x19a   :  { %v5690_v43 = vunpack.c.l.b16 %v5677_v34  ;;  %v8321_v34 = vld [vmem:[#allocation6 + $0x7a0] ss:$12 sps:$4 sm:$0xff]  }
 0x19b   :  { %7362 = vmatmul.mubr.msk.bf16.vlgmr.msra.gmra.mrb[144].mxu0 %vm88_vm0, %v5270_v60  ;;  %7889 = vmatmul.mubr.msk.bf16.vlgmr.msra.gmra.mrb[144].mxu1 %vm88_vm0, %v5270_v60  ;;  %v5817_v8 = vpack.c.bf16 %v5815_v61, %v5815_v61 }
 0x19c   :  { %5448 = vmatpush1.bf16.msra.mxu0 %v8290_v59  ;;  %7893 = vmatpush3.bf16.msra.mxu1 %v8293_v3  ;;  %v8309_v59 = vld [vmem:[#allocation6 + $0x758] ss:$12 sps:$4 sm:$0xff]   ;;  %v5691_v60 = vrot.slane %v5690_v43, 7 }
 0x19d   :  { %5449 = vmatprep.subr.bf16.mxu0 %v8296_v9  ;;  %7894 = vmatprep.subr.bf16.mxu1 %v8529_v0  ;;  %v8312_v3 = vld [vmem:[#allocation6 + $0x76c] ss:$12 sps:$4 sm:$0xff]  }
 0x19e   :  { %v1672_v19 = vpop.f32.mrb[40].mxu0  ;;  %v1713_v20 = vpop.f32.mrb[40].mxu1  ;;  %5479 = vmatprep.mubr.bf16.mxu0 %v8530_v1  ;;  %7896 = vmatprep.mubr.msk.bf16.mxu1 %vm8531_vm1, %v8529_v0 }
 0x19f   :  { %v1719_v21 = vadd.f32 %v1672_v19, %v1578_v55  ;;  %v1721_v22 = vadd.f32 %v1713_v20, %v1580_v56  ;;  %v1674_v23 = vpop.f32.mrb[41].mxu0  ;;  %v7682_v24 = vpop.f32.mrb[41].mxu1  ;;  %v5689_v55 = vunpack.c.l.b16 %v5676_v39  ;;  %v8314_v19 = vld [vmem:[#allocation6 + $0x780] ss:$12 sps:$4 sm:$0xff]   ;;  %v6098_v39 = vmul.f32 0.25, %v6096_v32 }
 0x1a0   :  { %v1720_v28 = vadd.f32 %v1674_v23, %v1579_v62  ;;  %5450 = vmatpush1.bf16.msra.mxu0 %v8294_v11  ;;  %v1676_v29 = vpop.f32.mrb[42].mxu0  ;;  %v1716_v30 = vpop.f32.mrb[42].mxu1  ;;  %7895 = vmatpush3.bf16.msra.mxu1 %v8297_v12  ;;  %v5818_v62 = vpack.c.bf16 %v5816_v44, %v5816_v44  ;;  %v5957_v11 = vmul.f32 0.25, %v5955_v4  ;;  %v8316_v12 = vld [vmem:[#allocation6 + $0x784] ss:$12 sps:$4 sm:$0xff]  }
 0x1a1   :  { %v1677_v35 = vpop.f32.mrb[43].mxu0  ;;  %v7683_v36 = vpop.f32.mrb[43].mxu1  ;;  %5588 = vmatprep.subr.bf16.mxu0 %v8300_v18  ;;  %7900 = vmatprep.subr.bf16.mxu1 %v8529_v0  ;;  %v5692_v7 = vsel %vm211_vm2, %v5691_v60, %v5689_v55  ;;  %v6237_v60 = vld [vmem:[#allocation2 + $0x5b] sm:$0x1]  ;;  %v6377_v32 = vld [vmem:[#allocation2 + $0x2c] sm:$0x1] }
 0x1a2   :  { %v5831_v9 = vunpack.c.l.b16 %v5818_v62  ;;  %v5693_v20 = vpack.c.b16 %v5692_v7, %v5692_v7  ;;  %v8326_v62 = vld [vmem:[#allocation6 + $0x7c8] ss:$12 sps:$4 sm:$0xff]   ;;  %v6239_v4 = vmul.f32 0.25, %v6237_v60 }
 0x1a3   :  { %7370 = vmatmul.mubr.msk.bf16.vlgmr.msra.gmra.mrb[148].mxu0 %vm88_vm0, %v5411_v26  ;;  %7897 = vmatmul.mubr.msk.bf16.vlgmr.msra.gmra.mrb[148].mxu1 %vm88_vm0, %v5411_v26  ;;  %v5830_v26 = vunpack.c.l.b16 %v5817_v8 }
 0x1a4   :  { %5589 = vmatpush1.bf16.msra.mxu0 %v8298_v25  ;;  %7901 = vmatpush3.bf16.msra.mxu1 %v8301_v31  ;;  %v8317_v25 = vld [vmem:[#allocation6 + $0x788] ss:$12 sps:$4 sm:$0xff]   ;;  %v5832_v27 = vrot.slane %v5831_v9, 7 }
 0x1a5   :  { %5590 = vmatprep.subr.bf16.mxu0 %v8304_v37  ;;  %7902 = vmatprep.subr.bf16.mxu1 %v8529_v0  ;;  %v8320_v31 = vld [vmem:[#allocation6 + $0x79c] ss:$12 sps:$4 sm:$0xff]  }
 0x1a6   :  { %v1813_v47 = vpop.f32.mrb[44].mxu0  ;;  %v1854_v48 = vpop.f32.mrb[44].mxu1  ;;  %5620 = vmatprep.mubr.bf16.mxu0 %v8530_v1  ;;  %7904 = vmatprep.mubr.msk.bf16.mxu1 %vm8531_vm1, %v8529_v0  ;;  %v5833_v35 = vsel %vm211_vm2, %v5832_v27, %v5830_v26  ;;  %v6378_v26 = vld [vmem:[#allocation2 + $0x5c] sm:$0x1]  ;;  %v8334_v27 = vld [vmem:[#allocation6 + $0x7f8] ss:$12 sps:$4 sm:$0xff]  }
 0x1a7   :  { %v1860_v49 = vadd.f32 %v1813_v47, %v1719_v21  ;;  %v1862_v50 = vadd.f32 %v1854_v48, %v1721_v22  ;;  %v1815_v51 = vpop.f32.mrb[45].mxu0  ;;  %v7690_v52 = vpop.f32.mrb[45].mxu1  ;;  %v5956_v21 = vmul.f32 0.25, %v5954_v10  ;;  %v8322_v47 = vld [vmem:[#allocation6 + $0x7b0] ss:$12 sps:$4 sm:$0xff]   ;;  %v5834_v48 = vpack.c.b16 %v5833_v35, %v5833_v35 }
 0x1a8   :  { %v1861_v56 = vadd.f32 %v1815_v51, %v1720_v28  ;;  %5591 = vmatpush1.bf16.msra.mxu0 %v8302_v40  ;;  %v1817_v57 = vpop.f32.mrb[46].mxu0  ;;  %v1857_v58 = vpop.f32.mrb[46].mxu1  ;;  %7903 = vmatpush3.bf16.msra.mxu1 %v8305_v41  ;;  %v5959_v28 = vpack.c.bf16 %v5957_v11, %v5957_v11  ;;  %v8324_v40 = vld [vmem:[#allocation6 + $0x7b4] ss:$12 sps:$4 sm:$0xff]  }
 0x1a9   :  { %v1818_v63 = vpop.f32.mrb[47].mxu0  ;;  %v7691_v2 = vpop.f32.mrb[47].mxu1  ;;  %5729 = vmatprep.subr.bf16.mxu0 %v8308_v45  ;;  %7908 = vmatprep.subr.bf16.mxu1 %v8529_v0  ;;  %v5958_v36 = vpack.c.bf16 %v5956_v21, %v5956_v21 }
 0x1aa   :  { %v5972_v37 = vunpack.c.l.b16 %v5959_v28  ;;  %v8329_v63 = vld [vmem:[#allocation6 + $0x7d0] ss:$12 sps:$4 sm:$0xff]   ;;  %v8337_v28 = vld [vmem:[#allocation6 + $0x800] ss:$12 sps:$4 sm:$0xff]  }
 0x1ab   :  { %7378 = vmatmul.mubr.msk.bf16.vlgmr.msra.gmra.mrb[152].mxu0 %vm88_vm0, %v5552_v54  ;;  %7905 = vmatmul.mubr.msk.bf16.vlgmr.msra.gmra.mrb[152].mxu1 %vm88_vm0, %v5552_v54  ;;  %v5971_v54 = vunpack.c.l.b16 %v5958_v36 }
 0x1ac   :  { %5730 = vmatpush1.bf16.msra.mxu0 %v8306_v53  ;;  %7909 = vmatpush3.bf16.msra.mxu1 %v8309_v59  ;;  %v8325_v53 = vld [vmem:[#allocation6 + $0x7b8] ss:$12 sps:$4 sm:$0xff]   ;;  %v5973_v55 = vrot.slane %v5972_v37, 7 }
 0x1ad   :  { %5731 = vmatprep.subr.bf16.mxu0 %v8312_v3  ;;  %7910 = vmatprep.subr.bf16.mxu1 %v8529_v0  ;;  %v8328_v59 = vld [vmem:[#allocation6 + $0x7cc] ss:$12 sps:$4 sm:$0xff]  }
 0x1ae   :  { %v1954_v13 = vpop.f32.mrb[48].mxu0  ;;  %v1995_v14 = vpop.f32.mrb[48].mxu1  ;;  %5761 = vmatprep.mubr.bf16.mxu0 %v8530_v1  ;;  %7912 = vmatprep.mubr.msk.bf16.mxu1 %vm8531_vm1, %v8529_v0  ;;  %v5974_v2 = vsel %vm211_vm2, %v5973_v55, %v5971_v54  ;;  %v6519_v54 = vld [vmem:[#allocation2 + $0x5d] sm:$0x1] }
 0x1af   :  { %v2001_v15 = vadd.f32 %v1954_v13, %v1860_v49  ;;  %v2003_v16 = vadd.f32 %v1995_v14, %v1862_v50  ;;  %v1956_v17 = vpop.f32.mrb[49].mxu0  ;;  %v7698_v18 = vpop.f32.mrb[49].mxu1  ;;  %v6097_v49 = vmul.f32 0.25, %v6095_v38  ;;  %v8330_v13 = vld [vmem:[#allocation6 + $0x7e0] ss:$12 sps:$4 sm:$0xff]   ;;  %v5975_v14 = vpack.c.b16 %v5974_v2, %v5974_v2 }
 0x1b0   :  { %v2002_v22 = vadd.f32 %v1956_v17, %v1861_v56  ;;  %5732 = vmatpush1.bf16.msra.mxu0 %v8310_v5  ;;  %v1958_v23 = vpop.f32.mrb[50].mxu0  ;;  %v1998_v24 = vpop.f32.mrb[50].mxu1  ;;  %7911 = vmatpush3.bf16.msra.mxu1 %v8313_v6  ;;  %v6100_v56 = vpack.c.bf16 %v6098_v39, %v6098_v39  ;;  %v8332_v5 = vld [vmem:[#allocation6 + $0x7e4] ss:$12 sps:$4 sm:$0xff]   ;;  %v6236_v6 = vld [vmem:[#allocation2 + $0x2b] sm:$0x1] }
 0x1b1   :  { %v1959_v29 = vpop.f32.mrb[51].mxu0  ;;  %v7699_v30 = vpop.f32.mrb[51].mxu1  ;;  %5870 = vmatprep.subr.bf16.mxu0 %v8316_v12  ;;  %7916 = vmatprep.subr.bf16.mxu1 %v8529_v0  ;;  %v6099_v61 = vpack.c.bf16 %v6097_v49, %v6097_v49  ;;  %v6238_v21 = vmul.f32 0.25, %v6236_v6  ;;  %v6521_v60 = vmul.f32 0.25, %v6519_v54 }
 0x1b2   :  { %v6113_v3 = vunpack.c.l.b16 %v6100_v56  ;;  %v8342_v56 = vld [vmem:[#allocation6 + $0x828] ss:$12 sps:$4 sm:$0xff]  }
 0x1b3   :  { %7386 = vmatmul.mubr.msk.bf16.vlgmr.msra.gmra.mrb[156].mxu0 %vm88_vm0, %v5693_v20  ;;  %7913 = vmatmul.mubr.msk.bf16.vlgmr.msra.gmra.mrb[156].mxu1 %vm88_vm0, %v5693_v20  ;;  %v6240_v30 = vpack.c.bf16 %v6238_v21, %v6238_v21  ;;  %v8350_v21 = vld [vmem:[#allocation6 + $0x858] ss:$12 sps:$4 sm:$0xff]  }
 0x1b4   :  { %5871 = vmatpush1.bf16.msra.mxu0 %v8314_v19  ;;  %7917 = vmatpush3.bf16.msra.mxu1 %v8317_v25  ;;  %v8333_v19 = vld [vmem:[#allocation6 + $0x7e8] ss:$12 sps:$4 sm:$0xff]   ;;  %v6114_v20 = vrot.slane %v6113_v3, 7 }
 0x1b5   :  { %5872 = vmatprep.subr.bf16.mxu0 %v8320_v31  ;;  %7918 = vmatprep.subr.bf16.mxu1 %v8529_v0  ;;  %v8336_v25 = vld [vmem:[#allocation6 + $0x7fc] ss:$12 sps:$4 sm:$0xff]  }
 0x1b6   :  { %v2095_v41 = vpop.f32.mrb[52].mxu0  ;;  %v2136_v42 = vpop.f32.mrb[52].mxu1  ;;  %5902 = vmatprep.mubr.bf16.mxu0 %v8530_v1  ;;  %7920 = vmatprep.mubr.msk.bf16.mxu1 %vm8531_vm1, %v8529_v0 }
 0x1b7   :  { %v2142_v43 = vadd.f32 %v2095_v41, %v2001_v15  ;;  %v2144_v44 = vadd.f32 %v2136_v42, %v2003_v16  ;;  %v2097_v45 = vpop.f32.mrb[53].mxu0  ;;  %v7706_v46 = vpop.f32.mrb[53].mxu1  ;;  %v6112_v15 = vunpack.c.l.b16 %v6099_v61  ;;  %v8338_v41 = vld [vmem:[#allocation6 + $0x810] ss:$12 sps:$4 sm:$0xff]  }
 0x1b8   :  { %v2143_v50 = vadd.f32 %v2097_v45, %v2002_v22  ;;  %5873 = vmatpush1.bf16.msra.mxu0 %v8318_v33  ;;  %v2099_v51 = vpop.f32.mrb[54].mxu0  ;;  %v2139_v52 = vpop.f32.mrb[54].mxu1  ;;  %7919 = vmatpush3.bf16.msra.mxu1 %v8321_v34  ;;  %v6241_v22 = vpack.c.bf16 %v6239_v4, %v6239_v4  ;;  %v6380_v33 = vmul.f32 0.25, %v6378_v26  ;;  %v8340_v34 = vld [vmem:[#allocation6 + $0x814] ss:$12 sps:$4 sm:$0xff]  }
 0x1b9   :  { %v2100_v57 = vpop.f32.mrb[55].mxu0  ;;  %v7707_v58 = vpop.f32.mrb[55].mxu1  ;;  %6011 = vmatprep.subr.bf16.mxu0 %v8324_v40  ;;  %7924 = vmatprep.subr.bf16.mxu1 %v8529_v0  ;;  %v6115_v29 = vsel %vm211_vm2, %v6114_v20, %v6112_v15  ;;  %v8348_v61 = vld [vmem:[#allocation6 + $0x844] ss:$12 sps:$4 sm:$0xff]   ;;  %v6660_v20 = vld [vmem:[#allocation2 + $0x5e] sm:$0x1] }
 0x1ba   :  { %v6254_v31 = vunpack.c.l.b16 %v6241_v22  ;;  %v6116_v42 = vpack.c.b16 %v6115_v29, %v6115_v29  ;;  %v8345_v57 = vld [vmem:[#allocation6 + $0x830] ss:$12 sps:$4 sm:$0xff]   ;;  %v8353_v22 = vld [vmem:[#allocation6 + $0x860] ss:$12 sps:$4 sm:$0xff]  }
 0x1bb   :  { %7394 = vmatmul.mubr.msk.bf16.vlgmr.msra.gmra.mrb[160].mxu0 %vm88_vm0, %v5834_v48  ;;  %7921 = vmatmul.mubr.msk.bf16.vlgmr.msra.gmra.mrb[160].mxu1 %vm88_vm0, %v5834_v48  ;;  %v6253_v48 = vunpack.c.l.b16 %v6240_v30  ;;  %v6659_v26 = vld [vmem:[#allocation2 + $0x2e] sm:$0x1] }
 0x1bc   :  { %6012 = vmatpush1.bf16.msra.mxu0 %v8322_v47  ;;  %7925 = vmatpush3.bf16.msra.mxu1 %v8325_v53  ;;  %v8341_v47 = vld [vmem:[#allocation6 + $0x818] ss:$12 sps:$4 sm:$0xff]   ;;  %v6255_v49 = vrot.slane %v6254_v31, 7 }
 0x1bd   :  { %6013 = vmatprep.subr.bf16.mxu0 %v8328_v59  ;;  %7926 = vmatprep.subr.bf16.mxu1 %v8529_v0  ;;  %v8344_v53 = vld [vmem:[#allocation6 + $0x82c] ss:$12 sps:$4 sm:$0xff]  }
 0x1be   :  { %v2236_v7 = vpop.f32.mrb[56].mxu0  ;;  %v2277_v8 = vpop.f32.mrb[56].mxu1  ;;  %6043 = vmatprep.mubr.bf16.mxu0 %v8530_v1  ;;  %7928 = vmatprep.mubr.msk.bf16.mxu1 %vm8531_vm1, %v8529_v0  ;;  %v6256_v58 = vsel %vm211_vm2, %v6255_v49, %v6253_v48  ;;  %v6801_v48 = vld [vmem:[#allocation2 + $0x5f] sm:$0x1] }
 0x1bf   :  { %v2283_v9 = vadd.f32 %v2236_v7, %v2142_v43  ;;  %v2285_v10 = vadd.f32 %v2277_v8, %v2144_v44  ;;  %v2238_v11 = vpop.f32.mrb[57].mxu0  ;;  %v7714_v12 = vpop.f32.mrb[57].mxu1  ;;  %v6379_v43 = vmul.f32 0.25, %v6377_v32  ;;  %v8346_v7 = vld [vmem:[#allocation6 + $0x840] ss:$12 sps:$4 sm:$0xff]   ;;  %v6257_v8 = vpack.c.b16 %v6256_v58, %v6256_v58 }
 0x1c0   :  { %v2284_v16 = vadd.f32 %v2238_v11, %v2143_v50  ;;  %6014 = vmatpush1.bf16.msra.mxu0 %v8326_v62  ;;  %v2240_v17 = vpop.f32.mrb[58].mxu0  ;;  %v2280_v18 = vpop.f32.mrb[58].mxu1  ;;  %7927 = vmatpush3.bf16.msra.mxu1 %v8329_v63  ;;  %v6382_v50 = vpack.c.bf16 %v6380_v33, %v6380_v33  ;;  %v6518_v62 = vld [vmem:[#allocation2 + $0x2d] sm:$0x1]  ;;  %v6803_v54 = vmul.f32 0.25, %v6801_v48 }
 0x1c1   :  { %v2241_v23 = vpop.f32.mrb[59].mxu0  ;;  %v7715_v24 = vpop.f32.mrb[59].mxu1  ;;  %6152 = vmatprep.subr.bf16.mxu0 %v8332_v5  ;;  %7932 = vmatprep.subr.bf16.mxu1 %v8529_v0  ;;  %v6381_v55 = vpack.c.bf16 %v6379_v43, %v6379_v43  ;;  %v6520_v15 = vmul.f32 0.25, %v6518_v62 }
 0x1c2   :  { %v6395_v59 = vunpack.c.l.b16 %v6382_v50  ;;  %v8358_v50 = vld [vmem:[#allocation6 + $0x888] ss:$12 sps:$4 sm:$0xff]  }
 0x1c3   :  { %7402 = vmatmul.mubr.msk.bf16.vlgmr.msra.gmra.mrb[164].mxu0 %vm88_vm0, %v5975_v14  ;;  %7929 = vmatmul.mubr.msk.bf16.vlgmr.msra.gmra.mrb[164].mxu1 %vm88_vm0, %v5975_v14  ;;  %v6522_v24 = vpack.c.bf16 %v6520_v15, %v6520_v15  ;;  %v8369_v15 = vld [vmem:[#allocation6 + $0x8c0] ss:$12 sps:$4 sm:$0xff]  }
 0x1c4   :  { %6153 = vmatpush1.bf16.msra.mxu0 %v8330_v13  ;;  %7933 = vmatpush3.bf16.msra.mxu1 %v8333_v19  ;;  %v8349_v13 = vld [vmem:[#allocation6 + $0x848] ss:$12 sps:$4 sm:$0xff]   ;;  %v6396_v14 = vrot.slane %v6395_v59, 7 }
 0x1c5   :  { %6154 = vmatprep.subr.bf16.mxu0 %v8336_v25  ;;  %7934 = vmatprep.subr.bf16.mxu1 %v8529_v0  ;;  %v8352_v19 = vld [vmem:[#allocation6 + $0x85c] ss:$12 sps:$4 sm:$0xff]  }
 0x1c6   :  { %v2377_v35 = vpop.f32.mrb[60].mxu0  ;;  %v2418_v36 = vpop.f32.mrb[60].mxu1  ;;  %6184 = vmatprep.mubr.bf16.mxu0 %v8530_v1  ;;  %7936 = vmatprep.mubr.msk.bf16.mxu1 %vm8531_vm1, %v8529_v0 }
 0x1c7   :  { %v2424_v37 = vadd.f32 %v2377_v35, %v2283_v9  ;;  %v2426_v38 = vadd.f32 %v2418_v36, %v2285_v10  ;;  %v2379_v39 = vpop.f32.mrb[61].mxu0  ;;  %v7722_v40 = vpop.f32.mrb[61].mxu1  ;;  %v6394_v9 = vunpack.c.l.b16 %v6381_v55  ;;  %v8354_v35 = vld [vmem:[#allocation6 + $0x870] ss:$12 sps:$4 sm:$0xff]  }
 0x1c8   :  { %v2425_v44 = vadd.f32 %v2379_v39, %v2284_v16  ;;  %6155 = vmatpush1.bf16.msra.mxu0 %v8334_v27  ;;  %v2381_v45 = vpop.f32.mrb[62].mxu0  ;;  %v2421_v46 = vpop.f32.mrb[62].mxu1  ;;  %7935 = vmatpush3.bf16.msra.mxu1 %v8337_v28  ;;  %v6523_v16 = vpack.c.bf16 %v6521_v60, %v6521_v60  ;;  %v6662_v27 = vmul.f32 0.25, %v6660_v20  ;;  %v8356_v28 = vld [vmem:[#allocation6 + $0x874] ss:$12 sps:$4 sm:$0xff]  }
 0x1c9   :  { %v2382_v51 = vpop.f32.mrb[63].mxu0  ;;  %v7723_v52 = vpop.f32.mrb[63].mxu1  ;;  %6293 = vmatprep.subr.bf16.mxu0 %v8340_v34  ;;  %7940 = vmatprep.subr.bf16.mxu1 %v8529_v0  ;;  %v6397_v23 = vsel %vm211_vm2, %v6396_v14, %v6394_v9  ;;  %v8364_v55 = vld [vmem:[#allocation6 + $0x8a4] ss:$12 sps:$4 sm:$0xff]  }
 0x1ca   :  { %v6536_v25 = vunpack.c.l.b16 %v6523_v16  ;;  %v6398_v36 = vpack.c.b16 %v6397_v23, %v6397_v23  ;;  %v8361_v51 = vld [vmem:[#allocation6 + $0x890] ss:$12 sps:$4 sm:$0xff]   ;;  %v8366_v14 = vld [vmem:[#allocation6 + $0x8b8] ss:$12 sps:$4 sm:$0xff]  }
 0x1cb   :  { %7410 = vmatmul.mubr.msk.bf16.vlgmr.msra.gmra.mrb[168].mxu0 %vm88_vm0, %v6116_v42  ;;  %7937 = vmatmul.mubr.msk.bf16.vlgmr.msra.gmra.mrb[168].mxu1 %vm88_vm0, %v6116_v42  ;;  %v6535_v42 = vunpack.c.l.b16 %v6522_v24 }
 0x1cc   :  { %6294 = vmatpush1.bf16.msra.mxu0 %v8338_v41  ;;  %7941 = vmatpush3.bf16.msra.mxu1 %v8341_v47  ;;  %v8357_v41 = vld [vmem:[#allocation6 + $0x878] ss:$12 sps:$4 sm:$0xff]   ;;  %v6537_v43 = vrot.slane %v6536_v25, 7 }
 0x1cd   :  { %6295 = vmatprep.subr.bf16.mxu0 %v8344_v53  ;;  %7942 = vmatprep.subr.bf16.mxu1 %v8529_v0  ;;  %v8360_v47 = vld [vmem:[#allocation6 + $0x88c] ss:$12 sps:$4 sm:$0xff]  }
 0x1ce   :  { %v2519_v63 = vpop.f32.mrb[64].mxu0  ;;  %v2560_v2 = vpop.f32.mrb[64].mxu1  ;;  %6325 = vmatprep.mubr.bf16.mxu0 %v8530_v1  ;;  %7944 = vmatprep.mubr.msk.bf16.mxu1 %vm8531_vm1, %v8529_v0  ;;  %v6538_v52 = vsel %vm211_vm2, %v6537_v43, %v6535_v42 }
 0x1cf   :  { %v2566_v3 = vadd.f32 %v2519_v63, %v2424_v37  ;;  %v2568_v4 = vadd.f32 %v2560_v2, %v2426_v38  ;;  %v2521_v5 = vpop.f32.mrb[65].mxu0  ;;  %v7730_v6 = vpop.f32.mrb[65].mxu1  ;;  %v6661_v37 = vmul.f32 0.25, %v6659_v26  ;;  %v8362_v63 = vld [vmem:[#allocation6 + $0x8a0] ss:$12 sps:$4 sm:$0xff]   ;;  %v6539_v2 = vpack.c.b16 %v6538_v52, %v6538_v52 }
 0x1d0   :  { %v2567_v10 = vadd.f32 %v2521_v5, %v2425_v44  ;;  %6296 = vmatpush1.bf16.msra.mxu0 %v8342_v56  ;;  %v2523_v11 = vpop.f32.mrb[66].mxu0  ;;  %v2563_v12 = vpop.f32.mrb[66].mxu1  ;;  %7943 = vmatpush3.bf16.msra.mxu1 %v8345_v57  ;;  %v6664_v44 = vpack.c.bf16 %v6662_v27, %v6662_v27  ;;  %v6800_v56 = vld [vmem:[#allocation2 + $0x2f] sm:$0x1]  ;;  %v8370_v26 = vld [vmem:[#allocation6 + $0x8d0] ss:$12 sps:$4 sm:$0xff]  }
 0x1d1   :  { %v2524_v17 = vpop.f32.mrb[67].mxu0  ;;  %v7731_v18 = vpop.f32.mrb[67].mxu1  ;;  %6434 = vmatprep.subr.bf16.mxu0 %v8348_v61  ;;  %7948 = vmatprep.subr.bf16.mxu1 %v8529_v0  ;;  %v6663_v49 = vpack.c.bf16 %v6661_v37, %v6661_v37  ;;  %v6802_v9 = vmul.f32 0.25, %v6800_v56  ;;  %v8374_v37 = vld [vmem:[#allocation6 + $0x8e8] ss:$12 sps:$4 sm:$0xff]  }
 0x1d2   :  { %v6677_v53 = vunpack.c.l.b16 %v6664_v44 }
 0x1d3   :  { %7418 = vmatmul.mubr.msk.bf16.vlgmr.msra.gmra.mrb[172].mxu0 %vm88_vm0, %v6257_v8  ;;  %7945 = vmatmul.mubr.msk.bf16.vlgmr.msra.gmra.mrb[172].mxu1 %vm88_vm0, %v6257_v8  ;;  %v6804_v17 = vpack.c.bf16 %v6802_v9, %v6802_v9 }
 0x1d4   :  { %6435 = vmatpush1.bf16.msra.mxu0 %v8346_v7  ;;  %7949 = vmatpush3.bf16.msra.mxu1 %v8349_v13  ;;  %v8365_v7 = vld [vmem:[#allocation6 + $0x8a8] ss:$12 sps:$4 sm:$0xff]   ;;  %v6678_v8 = vrot.slane %v6677_v53, 7 }
 0x1d5   :  { %6436 = vmatprep.subr.bf16.mxu0 %v8352_v19  ;;  %7950 = vmatprep.subr.bf16.mxu1 %v8529_v0  ;;  %v8368_v13 = vld [vmem:[#allocation6 + $0x8bc] ss:$12 sps:$4 sm:$0xff]   ;;  %v8372_v19 = vld [vmem:[#allocation6 + $0x8d4] ss:$12 sps:$4 sm:$0xff]  }
 0x1d6   :  { %v2660_v29 = vpop.f32.mrb[68].mxu0  ;;  %v2701_v30 = vpop.f32.mrb[68].mxu1  ;;  %6466 = vmatprep.mubr.bf16.mxu0 %v8530_v1  ;;  %7952 = vmatprep.mubr.msk.bf16.mxu1 %vm8531_vm1, %v8529_v0 }
 0x1d7   :  { %v2707_v31 = vadd.f32 %v2660_v29, %v2566_v3  ;;  %v2709_v32 = vadd.f32 %v2701_v30, %v2568_v4  ;;  %v2662_v33 = vpop.f32.mrb[69].mxu0  ;;  %v7738_v34 = vpop.f32.mrb[69].mxu1  ;;  %v6676_v3 = vunpack.c.l.b16 %v6663_v49 }
 0x1d8   :  { %v2708_v38 = vadd.f32 %v2662_v33, %v2567_v10  ;;  %6437 = vmatpush1.bf16.msra.mxu0 %v8350_v21  ;;  %v2664_v39 = vpop.f32.mrb[70].mxu0  ;;  %v2704_v40 = vpop.f32.mrb[70].mxu1  ;;  %7951 = vmatpush3.bf16.msra.mxu1 %v8353_v22  ;;  %v6805_v10 = vpack.c.bf16 %v6803_v54, %v6803_v54 }
 0x1d9   :  { %v2665_v45 = vpop.f32.mrb[71].mxu0  ;;  %v7739_v46 = vpop.f32.mrb[71].mxu1  ;;  %6575 = vmatprep.subr.bf16.mxu0 %v8356_v28  ;;  %7956 = vmatprep.subr.bf16.mxu1 %v8529_v0  ;;  %v6679_v16 = vsel %vm211_vm2, %v6678_v8, %v6676_v3 }
 0x1da   :  { %v6818_v18 = vunpack.c.l.b16 %v6805_v10  ;;  %v6680_v27 = vpack.c.b16 %v6679_v16, %v6679_v16 }
 0x1db   :  { %7426 = vmatmul.mubr.msk.bf16.vlgmr.msra.gmra.mrb[176].mxu0 %vm88_vm0, %v6398_v36  ;;  %7953 = vmatmul.mubr.msk.bf16.vlgmr.msra.gmra.mrb[176].mxu1 %vm88_vm0, %v6398_v36  ;;  %v8376_v36 = vld [vmem:[#allocation6 + $0x8ec] ss:$12 sps:$4 sm:$0xff]  }
 0x1dc   :  { %6576 = vmatpush1.bf16.msra.mxu0 %v8354_v35  ;;  %7957 = vmatpush3.bf16.msra.mxu1 %v8357_v41  ;;  %v6819_v33 = vrot.slane %v6818_v18, 7 }
 0x1dd   :  { %6577 = vmatprep.subr.bf16.mxu0 %v8360_v47  ;;  %7958 = vmatprep.subr.bf16.mxu1 %v8529_v0 }
 0x1de   :  { %v2801_v57 = vpop.f32.mrb[72].mxu0  ;;  %v2842_v58 = vpop.f32.mrb[72].mxu1  ;;  %6607 = vmatprep.mubr.bf16.mxu0 %v8530_v1  ;;  %7960 = vmatprep.mubr.msk.bf16.mxu1 %vm8531_vm1, %v8529_v0 }
 0x1df   :  { %v2848_v59 = vadd.f32 %v2801_v57, %v2707_v31  ;;  %v2850_v60 = vadd.f32 %v2842_v58, %v2709_v32  ;;  %v2803_v61 = vpop.f32.mrb[73].mxu0  ;;  %v7746_v62 = vpop.f32.mrb[73].mxu1  ;;  %v8373_v31 = vld [vmem:[#allocation6 + $0x8d8] ss:$12 sps:$4 sm:$0xff]   ;;  %v6817_v32 = vunpack.c.l.b16 %v6804_v17 }
 0x1e0   :  { %v2849_v4 = vadd.f32 %v2803_v61, %v2708_v38  ;;  %6578 = vmatpush1.bf16.msra.mxu0 %v8358_v50  ;;  %v2805_v5 = vpop.f32.mrb[74].mxu0  ;;  %v2845_v6 = vpop.f32.mrb[74].mxu1  ;;  %7959 = vmatpush3.bf16.msra.mxu1 %v8361_v51  ;;  %v8377_v38 = vld [vmem:[#allocation6 + $0x8f0] ss:$12 sps:$4 sm:$0xff]  }
 0x1e1   :  { %v2806_v11 = vpop.f32.mrb[75].mxu0  ;;  %v7747_v12 = vpop.f32.mrb[75].mxu1  ;;  %6716 = vmatprep.subr.bf16.mxu0 %v8364_v55  ;;  %7964 = vmatprep.subr.bf16.mxu1 %v8529_v0  ;;  %v6820_v39 = vsel %vm211_vm2, %v6819_v33, %v6817_v32 }
 0x1e2   :  { %v6821_v46 = vpack.c.b16 %v6820_v39, %v6820_v39 }
 0x1e3   :  { %7434 = vmatmul.mubr.msk.bf16.vlgmr.msra.gmra.mrb[180].mxu0 %vm88_vm0, %v6539_v2  ;;  %7961 = vmatmul.mubr.msk.bf16.vlgmr.msra.gmra.mrb[180].mxu1 %vm88_vm0, %v6539_v2 }
 0x1e4   :  { %6717 = vmatpush1.bf16.msra.mxu0 %v8362_v63  ;;  %7965 = vmatpush3.bf16.msra.mxu1 %v8365_v7 }
 0x1e5   :  { %6718 = vmatprep.subr.bf16.mxu0 %v8368_v13  ;;  %7966 = vmatprep.subr.bf16.mxu1 %v8529_v0 }
 0x1e6   :  { %v2942_v20 = vpop.f32.mrb[76].mxu0  ;;  %v2983_v21 = vpop.f32.mrb[76].mxu1  ;;  %6748 = vmatprep.mubr.bf16.mxu0 %v8530_v1  ;;  %7968 = vmatprep.mubr.msk.bf16.mxu1 %vm8531_vm1, %v8529_v0 }
 0x1e7   :  { %v2989_v22 = vadd.f32 %v2942_v20, %v2848_v59  ;;  %v2991_v23 = vadd.f32 %v2983_v21, %v2850_v60  ;;  %v2944_v24 = vpop.f32.mrb[77].mxu0  ;;  %v7754_v25 = vpop.f32.mrb[77].mxu1 }
 0x1e8   :  { %v2990_v28 = vadd.f32 %v2944_v24, %v2849_v4  ;;  %6719 = vmatpush1.bf16.msra.mxu0 %v8366_v14  ;;  %v2946_v29 = vpop.f32.mrb[78].mxu0  ;;  %v2986_v30 = vpop.f32.mrb[78].mxu1  ;;  %7967 = vmatpush3.bf16.msra.mxu1 %v8369_v15 }
 0x1e9   :  { %v2947_v34 = vpop.f32.mrb[79].mxu0  ;;  %v7755_v35 = vpop.f32.mrb[79].mxu1  ;;  %6857 = vmatprep.subr.bf16.mxu0 %v8372_v19  ;;  %7972 = vmatprep.subr.bf16.mxu1 %v8529_v0 }
 0x1eb   :  { %7442 = vmatmul.mubr.msk.bf16.vlgmr.msra.gmra.mrb[184].mxu0 %vm88_vm0, %v6680_v27  ;;  %7969 = vmatmul.mubr.msk.bf16.vlgmr.msra.gmra.mrb[184].mxu1 %vm88_vm0, %v6680_v27 }
 0x1ec   :  { %6858 = vmatpush1.bf16.msra.mxu0 %v8370_v26  ;;  %7973 = vmatpush3.bf16.msra.mxu1 %v8373_v31 }
 0x1ed   :  { %6859 = vmatprep.subr.bf16.mxu0 %v8376_v36  ;;  %7974 = vmatprep.subr.bf16.mxu1 %v8529_v0 }
 0x1ee   :  { %v3083_v40 = vpop.f32.mrb[80].mxu0  ;;  %v3124_v41 = vpop.f32.mrb[80].mxu1  ;;  %6889 = vmatprep.mubr.bf16.mxu0 %v8530_v1  ;;  %7976 = vmatprep.mubr.msk.bf16.mxu1 %vm8531_vm1, %v8529_v0 }
 0x1ef   :  { %v3130_v42 = vadd.f32 %v3083_v40, %v2989_v22  ;;  %v3132_v43 = vadd.f32 %v3124_v41, %v2991_v23  ;;  %v3085_v44 = vpop.f32.mrb[81].mxu0  ;;  %v7762_v45 = vpop.f32.mrb[81].mxu1 }
 0x1f0   :  { %v3131_v47 = vadd.f32 %v3085_v44, %v2990_v28  ;;  %6860 = vmatpush1.bf16.msra.mxu0 %v8374_v37  ;;  %v3087_v48 = vpop.f32.mrb[82].mxu0  ;;  %v3127_v49 = vpop.f32.mrb[82].mxu1  ;;  %7975 = vmatpush3.bf16.msra.mxu1 %v8377_v38 }
 0x1f1   :  { %v3088_v50 = vpop.f32.mrb[83].mxu0  ;;  %v7763_v51 = vpop.f32.mrb[83].mxu1 }
 0x1f3   :  { %7450 = vmatmul.mubr.msk.bf16.vlgmr.msra.gmra.mrb[188].mxu0 %vm88_vm0, %v6821_v46  ;;  %7977 = vmatmul.mubr.msk.bf16.vlgmr.msra.gmra.mrb[188].mxu1 %vm88_vm0, %v6821_v46 }
 0x1f6   :  { %v3224_v1 = vpop.f32.mrb[84].mxu0  ;;  %v3265_v52 = vpop.f32.mrb[84].mxu1 }
 0x1f7   :  { %v3271_v53 = vadd.f32 %v3224_v1, %v3130_v42  ;;  %v3273_v0 = vadd.f32 %v3265_v52, %v3132_v43  ;;  %v3226_v54 = vpop.f32.mrb[85].mxu0  ;;  %v7770_v55 = vpop.f32.mrb[85].mxu1 }
 0x1f8   :  { %v3272_v56 = vadd.f32 %v3226_v54, %v3131_v47  ;;  %v3228_v57 = vpop.f32.mrb[86].mxu0  ;;  %v3268_v58 = vpop.f32.mrb[86].mxu1 }
 0x1f9   :  { %v3229_v59 = vpop.f32.mrb[87].mxu0  ;;  %v7771_v60 = vpop.f32.mrb[87].mxu1 }
 0x1fe   :  { %v3365_v61 = vpop.f32.mrb[88].mxu0  ;;  %v3406_v62 = vpop.f32.mrb[88].mxu1 }
 0x1ff   :  { %v3412_v63 = vadd.f32 %v3365_v61, %v3271_v53  ;;  %v3414_v2 = vadd.f32 %v3406_v62, %v3273_v0  ;;  %v3367_v3 = vpop.f32.mrb[89].mxu0  ;;  %v7778_v4 = vpop.f32.mrb[89].mxu1 }
 0x200   :  { %v3413_v5 = vadd.f32 %v3367_v3, %v3272_v56  ;;  %v3369_v6 = vpop.f32.mrb[90].mxu0  ;;  %v3409_v7 = vpop.f32.mrb[90].mxu1 }
 0x201   :  { %v3370_v8 = vpop.f32.mrb[91].mxu0  ;;  %v7779_v9 = vpop.f32.mrb[91].mxu1 }
 0x206   :  { %v3506_v10 = vpop.f32.mrb[92].mxu0  ;;  %v3547_v11 = vpop.f32.mrb[92].mxu1 }
 0x207   :  { %v3553_v12 = vadd.f32 %v3506_v10, %v3412_v63  ;;  %v3555_v13 = vadd.f32 %v3547_v11, %v3414_v2  ;;  %v3508_v14 = vpop.f32.mrb[93].mxu0  ;;  %v7786_v15 = vpop.f32.mrb[93].mxu1 }
 0x208   :  { %v3554_v16 = vadd.f32 %v3508_v14, %v3413_v5  ;;  %v3510_v17 = vpop.f32.mrb[94].mxu0  ;;  %v3550_v18 = vpop.f32.mrb[94].mxu1 }
 0x209   :  { %v3511_v19 = vpop.f32.mrb[95].mxu0  ;;  %v7787_v20 = vpop.f32.mrb[95].mxu1 }
 0x20e   :  { %v3647_v21 = vpop.f32.mrb[96].mxu0  ;;  %v3688_v22 = vpop.f32.mrb[96].mxu1 }
 0x20f   :  { %v3694_v23 = vadd.f32 %v3647_v21, %v3553_v12  ;;  %v3696_v24 = vadd.f32 %v3688_v22, %v3555_v13  ;;  %v3649_v25 = vpop.f32.mrb[97].mxu0  ;;  %v7794_v26 = vpop.f32.mrb[97].mxu1 }
 0x210   :  { %v3695_v27 = vadd.f32 %v3649_v25, %v3554_v16  ;;  %v3651_v28 = vpop.f32.mrb[98].mxu0  ;;  %v3691_v29 = vpop.f32.mrb[98].mxu1 }
 0x211   :  { %v3652_v30 = vpop.f32.mrb[99].mxu0  ;;  %v7795_v31 = vpop.f32.mrb[99].mxu1 }
 0x216   :  { %v3788_v32 = vpop.f32.mrb[100].mxu0  ;;  %v3829_v33 = vpop.f32.mrb[100].mxu1 }
 0x217   :  { %v3835_v34 = vadd.f32 %v3788_v32, %v3694_v23  ;;  %v3837_v35 = vadd.f32 %v3829_v33, %v3696_v24  ;;  %v3790_v36 = vpop.f32.mrb[101].mxu0  ;;  %v7802_v37 = vpop.f32.mrb[101].mxu1 }
 0x218   :  { %v3836_v38 = vadd.f32 %v3790_v36, %v3695_v27  ;;  %v3792_v39 = vpop.f32.mrb[102].mxu0  ;;  %v3832_v40 = vpop.f32.mrb[102].mxu1 }
 0x219   :  { %v3793_v41 = vpop.f32.mrb[103].mxu0  ;;  %v7803_v42 = vpop.f32.mrb[103].mxu1 }
 0x21e   :  { %v3929_v43 = vpop.f32.mrb[104].mxu0  ;;  %v3970_v44 = vpop.f32.mrb[104].mxu1 }
 0x21f   :  { %v3976_v45 = vadd.f32 %v3929_v43, %v3835_v34  ;;  %v3978_v46 = vadd.f32 %v3970_v44, %v3837_v35  ;;  %v3931_v47 = vpop.f32.mrb[105].mxu0  ;;  %v7810_v48 = vpop.f32.mrb[105].mxu1 }
 0x220   :  { %v3977_v49 = vadd.f32 %v3931_v47, %v3836_v38  ;;  %v3933_v50 = vpop.f32.mrb[106].mxu0  ;;  %v3973_v51 = vpop.f32.mrb[106].mxu1 }
 0x221   :  { %v3934_v1 = vpop.f32.mrb[107].mxu0  ;;  %v7811_v52 = vpop.f32.mrb[107].mxu1 }
 0x226   :  { %v4070_v53 = vpop.f32.mrb[108].mxu0  ;;  %v4111_v0 = vpop.f32.mrb[108].mxu1 }
 0x227   :  { %v4117_v54 = vadd.f32 %v4070_v53, %v3976_v45  ;;  %v4119_v55 = vadd.f32 %v4111_v0, %v3978_v46  ;;  %v4072_v56 = vpop.f32.mrb[109].mxu0  ;;  %v7818_v57 = vpop.f32.mrb[109].mxu1 }
 0x228   :  { %v4118_v58 = vadd.f32 %v4072_v56, %v3977_v49  ;;  %v4074_v59 = vpop.f32.mrb[110].mxu0  ;;  %v4114_v60 = vpop.f32.mrb[110].mxu1 }
 0x229   :  { %v4075_v61 = vpop.f32.mrb[111].mxu0  ;;  %v7819_v62 = vpop.f32.mrb[111].mxu1 }
 0x22e   :  { %v4211_v63 = vpop.f32.mrb[112].mxu0  ;;  %v4252_v2 = vpop.f32.mrb[112].mxu1 }
 0x22f   :  { %v4258_v3 = vadd.f32 %v4211_v63, %v4117_v54  ;;  %v4260_v4 = vadd.f32 %v4252_v2, %v4119_v55  ;;  %v4213_v5 = vpop.f32.mrb[113].mxu0  ;;  %v7826_v6 = vpop.f32.mrb[113].mxu1 }
 0x230   :  { %v4259_v7 = vadd.f32 %v4213_v5, %v4118_v58  ;;  %v4215_v8 = vpop.f32.mrb[114].mxu0  ;;  %v4255_v9 = vpop.f32.mrb[114].mxu1 }
 0x231   :  { %v4216_v10 = vpop.f32.mrb[115].mxu0  ;;  %v7827_v11 = vpop.f32.mrb[115].mxu1 }
 0x236   :  { %v4352_v12 = vpop.f32.mrb[116].mxu0  ;;  %v4393_v13 = vpop.f32.mrb[116].mxu1 }
 0x237   :  { %v4399_v14 = vadd.f32 %v4352_v12, %v4258_v3  ;;  %v4401_v15 = vadd.f32 %v4393_v13, %v4260_v4  ;;  %v4354_v16 = vpop.f32.mrb[117].mxu0  ;;  %v7834_v17 = vpop.f32.mrb[117].mxu1 }
 0x238   :  { %v4400_v18 = vadd.f32 %v4354_v16, %v4259_v7  ;;  %v4356_v19 = vpop.f32.mrb[118].mxu0  ;;  %v4396_v20 = vpop.f32.mrb[118].mxu1 }
 0x239   :  { %v4357_v21 = vpop.f32.mrb[119].mxu0  ;;  %v7835_v22 = vpop.f32.mrb[119].mxu1 }
 0x23e   :  { %v4493_v23 = vpop.f32.mrb[120].mxu0  ;;  %v4534_v24 = vpop.f32.mrb[120].mxu1 }
 0x23f   :  { %v4540_v25 = vadd.f32 %v4493_v23, %v4399_v14  ;;  %v4542_v26 = vadd.f32 %v4534_v24, %v4401_v15  ;;  %v4495_v27 = vpop.f32.mrb[121].mxu0  ;;  %v7842_v28 = vpop.f32.mrb[121].mxu1 }
 0x240   :  { %v4541_v29 = vadd.f32 %v4495_v27, %v4400_v18  ;;  %v4497_v30 = vpop.f32.mrb[122].mxu0  ;;  %v4537_v31 = vpop.f32.mrb[122].mxu1 }
 0x241   :  { %v4498_v32 = vpop.f32.mrb[123].mxu0  ;;  %v7843_v33 = vpop.f32.mrb[123].mxu1 }
 0x246   :  { %v4634_v34 = vpop.f32.mrb[124].mxu0  ;;  %v4675_v35 = vpop.f32.mrb[124].mxu1 }
 0x247   :  { %v4681_v36 = vadd.f32 %v4634_v34, %v4540_v25  ;;  %v4683_v37 = vadd.f32 %v4675_v35, %v4542_v26  ;;  %v4636_v38 = vpop.f32.mrb[125].mxu0  ;;  %v7850_v39 = vpop.f32.mrb[125].mxu1 }
 0x248   :  { %v4682_v40 = vadd.f32 %v4636_v38, %v4541_v29  ;;  %v4638_v41 = vpop.f32.mrb[126].mxu0  ;;  %v4678_v42 = vpop.f32.mrb[126].mxu1 }
 0x249   :  { %v4639_v43 = vpop.f32.mrb[127].mxu0  ;;  %v7851_v44 = vpop.f32.mrb[127].mxu1 }
 0x24e   :  { %v4776_v45 = vpop.f32.mrb[128].mxu0  ;;  %v4817_v46 = vpop.f32.mrb[128].mxu1 }
 0x24f   :  { %v4823_v47 = vadd.f32 %v4776_v45, %v4681_v36  ;;  %v4825_v48 = vadd.f32 %v4817_v46, %v4683_v37  ;;  %v4778_v49 = vpop.f32.mrb[129].mxu0  ;;  %v7858_v50 = vpop.f32.mrb[129].mxu1 }
 0x250   :  { %v4824_v51 = vadd.f32 %v4778_v49, %v4682_v40  ;;  %v4780_v1 = vpop.f32.mrb[130].mxu0  ;;  %v4820_v52 = vpop.f32.mrb[130].mxu1 }
 0x251   :  { %v4781_v53 = vpop.f32.mrb[131].mxu0  ;;  %v7859_v0 = vpop.f32.mrb[131].mxu1 }
 0x256   :  { %v4917_v54 = vpop.f32.mrb[132].mxu0  ;;  %v4958_v55 = vpop.f32.mrb[132].mxu1 }
 0x257   :  { %v4964_v56 = vadd.f32 %v4917_v54, %v4823_v47  ;;  %v4966_v57 = vadd.f32 %v4958_v55, %v4825_v48  ;;  %v4919_v58 = vpop.f32.mrb[133].mxu0  ;;  %v7866_v59 = vpop.f32.mrb[133].mxu1 }
 0x258   :  { %v4965_v60 = vadd.f32 %v4919_v58, %v4824_v51  ;;  %v4921_v61 = vpop.f32.mrb[134].mxu0  ;;  %v4961_v62 = vpop.f32.mrb[134].mxu1 }
 0x259   :  { %v4922_v63 = vpop.f32.mrb[135].mxu0  ;;  %v7867_v2 = vpop.f32.mrb[135].mxu1 }
 0x25e   :  { %v5058_v3 = vpop.f32.mrb[136].mxu0  ;;  %v5099_v4 = vpop.f32.mrb[136].mxu1 }
 0x25f   :  { %v5105_v5 = vadd.f32 %v5058_v3, %v4964_v56  ;;  %v5107_v6 = vadd.f32 %v5099_v4, %v4966_v57  ;;  %v5060_v7 = vpop.f32.mrb[137].mxu0  ;;  %v7874_v8 = vpop.f32.mrb[137].mxu1 }
 0x260   :  { %v5106_v9 = vadd.f32 %v5060_v7, %v4965_v60  ;;  %v5062_v10 = vpop.f32.mrb[138].mxu0  ;;  %v5102_v11 = vpop.f32.mrb[138].mxu1 }
 0x261   :  { %v5063_v12 = vpop.f32.mrb[139].mxu0  ;;  %v7875_v13 = vpop.f32.mrb[139].mxu1 }
 0x266   :  { %v5199_v14 = vpop.f32.mrb[140].mxu0  ;;  %v5240_v15 = vpop.f32.mrb[140].mxu1 }
 0x267   :  { %v5246_v16 = vadd.f32 %v5199_v14, %v5105_v5  ;;  %v5248_v17 = vadd.f32 %v5240_v15, %v5107_v6  ;;  %v5201_v18 = vpop.f32.mrb[141].mxu0  ;;  %v7882_v19 = vpop.f32.mrb[141].mxu1 }
 0x268   :  { %v5247_v20 = vadd.f32 %v5201_v18, %v5106_v9  ;;  %v5203_v21 = vpop.f32.mrb[142].mxu0  ;;  %v5243_v22 = vpop.f32.mrb[142].mxu1 }
 0x269   :  { %v5204_v23 = vpop.f32.mrb[143].mxu0  ;;  %v7883_v24 = vpop.f32.mrb[143].mxu1 }
 0x26e   :  { %v5340_v25 = vpop.f32.mrb[144].mxu0  ;;  %v5381_v26 = vpop.f32.mrb[144].mxu1 }
 0x26f   :  { %v5387_v27 = vadd.f32 %v5340_v25, %v5246_v16  ;;  %v5389_v28 = vadd.f32 %v5381_v26, %v5248_v17  ;;  %v5342_v29 = vpop.f32.mrb[145].mxu0  ;;  %v7890_v30 = vpop.f32.mrb[145].mxu1 }
 0x270   :  { %v5388_v31 = vadd.f32 %v5342_v29, %v5247_v20  ;;  %v5344_v32 = vpop.f32.mrb[146].mxu0  ;;  %v5384_v33 = vpop.f32.mrb[146].mxu1 }
 0x271   :  { %v5345_v34 = vpop.f32.mrb[147].mxu0  ;;  %v7891_v35 = vpop.f32.mrb[147].mxu1 }
 0x276   :  { %v5481_v36 = vpop.f32.mrb[148].mxu0  ;;  %v5522_v37 = vpop.f32.mrb[148].mxu1 }
 0x277   :  { %v5528_v38 = vadd.f32 %v5481_v36, %v5387_v27  ;;  %v5530_v39 = vadd.f32 %v5522_v37, %v5389_v28  ;;  %v5483_v40 = vpop.f32.mrb[149].mxu0  ;;  %v7898_v41 = vpop.f32.mrb[149].mxu1 }
 0x278   :  { %v5529_v42 = vadd.f32 %v5483_v40, %v5388_v31  ;;  %v5485_v43 = vpop.f32.mrb[150].mxu0  ;;  %v5525_v44 = vpop.f32.mrb[150].mxu1 }
 0x279   :  { %v5486_v45 = vpop.f32.mrb[151].mxu0  ;;  %v7899_v46 = vpop.f32.mrb[151].mxu1 }
 0x27e   :  { %v5622_v47 = vpop.f32.mrb[152].mxu0  ;;  %v5663_v48 = vpop.f32.mrb[152].mxu1 }
 0x27f   :  { %v5669_v49 = vadd.f32 %v5622_v47, %v5528_v38  ;;  %v5671_v50 = vadd.f32 %v5663_v48, %v5530_v39  ;;  %v5624_v51 = vpop.f32.mrb[153].mxu0  ;;  %v7906_v1 = vpop.f32.mrb[153].mxu1 }
 0x280   :  { %v5670_v52 = vadd.f32 %v5624_v51, %v5529_v42  ;;  %v5626_v53 = vpop.f32.mrb[154].mxu0  ;;  %v5666_v0 = vpop.f32.mrb[154].mxu1 }
 0x281   :  { %v5627_v54 = vpop.f32.mrb[155].mxu0  ;;  %v7907_v55 = vpop.f32.mrb[155].mxu1 }
 0x286   :  { %v5763_v56 = vpop.f32.mrb[156].mxu0  ;;  %v5804_v57 = vpop.f32.mrb[156].mxu1 }
 0x287   :  { %v5810_v58 = vadd.f32 %v5763_v56, %v5669_v49  ;;  %v5812_v59 = vadd.f32 %v5804_v57, %v5671_v50  ;;  %v5765_v60 = vpop.f32.mrb[157].mxu0  ;;  %v7914_v61 = vpop.f32.mrb[157].mxu1 }
 0x288   :  { %v5811_v62 = vadd.f32 %v5765_v60, %v5670_v52  ;;  %v5767_v63 = vpop.f32.mrb[158].mxu0  ;;  %v5807_v2 = vpop.f32.mrb[158].mxu1 }
 0x289   :  { %v5768_v3 = vpop.f32.mrb[159].mxu0  ;;  %v7915_v4 = vpop.f32.mrb[159].mxu1 }
 0x28e   :  { %v5904_v5 = vpop.f32.mrb[160].mxu0  ;;  %v5945_v6 = vpop.f32.mrb[160].mxu1 }
 0x28f   :  { %v5951_v7 = vadd.f32 %v5904_v5, %v5810_v58  ;;  %v5953_v8 = vadd.f32 %v5945_v6, %v5812_v59  ;;  %v5906_v9 = vpop.f32.mrb[161].mxu0  ;;  %v7922_v10 = vpop.f32.mrb[161].mxu1 }
 0x290   :  { %v5952_v11 = vadd.f32 %v5906_v9, %v5811_v62  ;;  %v5908_v12 = vpop.f32.mrb[162].mxu0  ;;  %v5948_v13 = vpop.f32.mrb[162].mxu1 }
 0x291   :  { %v5909_v14 = vpop.f32.mrb[163].mxu0  ;;  %v7923_v15 = vpop.f32.mrb[163].mxu1 }
 0x296   :  { %v6045_v16 = vpop.f32.mrb[164].mxu0  ;;  %v6086_v17 = vpop.f32.mrb[164].mxu1 }
 0x297   :  { %v6092_v18 = vadd.f32 %v6045_v16, %v5951_v7  ;;  %v6094_v19 = vadd.f32 %v6086_v17, %v5953_v8  ;;  %v6047_v20 = vpop.f32.mrb[165].mxu0  ;;  %v7930_v21 = vpop.f32.mrb[165].mxu1  ;;  %v6943_v7 = vlaneseq }
 0x298   :  { %v6093_v22 = vadd.f32 %v6047_v20, %v5952_v11  ;;  %v6049_v23 = vpop.f32.mrb[166].mxu0  ;;  %v6089_v24 = vpop.f32.mrb[166].mxu1  ;;  %v6941_v21 = vld [vmem:[#allocation8] sm:$0x7] }
 0x299   :  { %v6050_v25 = vpop.f32.mrb[167].mxu0  ;;  %v7931_v26 = vpop.f32.mrb[167].mxu1  ;;  %v9044_v8 = vshrl.u32 %v6943_v7, 7 }
 0x29b   :  { %v9047_v20 = vsub.s32 0, %v9044_v8  ;;  %v9053_v23 = vsub.s32 1, %v9044_v8 }
 0x29d   :  { %v6946_v24 = vrot.slane %v6941_v21, %v9047_v20 }
 0x29e   :  { %v6186_v27 = vpop.f32.mrb[168].mxu0  ;;  %v6227_v28 = vpop.f32.mrb[168].mxu1 }
 0x29f   :  { %v6233_v29 = vadd.f32 %v6186_v27, %v6092_v18  ;;  %v6235_v30 = vadd.f32 %v6227_v28, %v6094_v19  ;;  %v6188_v31 = vpop.f32.mrb[169].mxu0  ;;  %v7938_v32 = vpop.f32.mrb[169].mxu1  ;;  %v6950_v28 = vrot.slane %v6941_v21, %v9053_v23 }
 0x2a0   :  { %v6234_v33 = vadd.f32 %v6188_v31, %v6093_v22  ;;  %v6190_v34 = vpop.f32.mrb[170].mxu0  ;;  %v6230_v35 = vpop.f32.mrb[170].mxu1  ;;  %v9050_v22 = vsub.s32 2, %v9044_v8 }
 0x2a1   :  { %v6191_v36 = vpop.f32.mrb[171].mxu0  ;;  %v7939_v37 = vpop.f32.mrb[171].mxu1 }
 0x2a2   :  { %v6954_v27 = vrot.slane %v6941_v21, %v9050_v22 }
 0x2a6   :  { %v6327_v38 = vpop.f32.mrb[172].mxu0  ;;  %v6368_v39 = vpop.f32.mrb[172].mxu1 }
 0x2a7   :  { %v6374_v40 = vadd.f32 %v6327_v38, %v6233_v29  ;;  %v6376_v41 = vadd.f32 %v6368_v39, %v6235_v30  ;;  %v6329_v42 = vpop.f32.mrb[173].mxu0  ;;  %v7946_v43 = vpop.f32.mrb[173].mxu1 }
 0x2a8   :  { %v6375_v44 = vadd.f32 %v6329_v42, %v6234_v33  ;;  %v6331_v45 = vpop.f32.mrb[174].mxu0  ;;  %v6371_v46 = vpop.f32.mrb[174].mxu1 }
 0x2a9   :  { %v6332_v47 = vpop.f32.mrb[175].mxu0  ;;  %v7947_v48 = vpop.f32.mrb[175].mxu1 }
 0x2ae   :  { %v6468_v49 = vpop.f32.mrb[176].mxu0  ;;  %v6509_v50 = vpop.f32.mrb[176].mxu1 }
 0x2af   :  { %v6515_v51 = vadd.f32 %v6468_v49, %v6374_v40  ;;  %v6517_v1 = vadd.f32 %v6509_v50, %v6376_v41  ;;  %v6470_v52 = vpop.f32.mrb[177].mxu0  ;;  %v7954_v53 = vpop.f32.mrb[177].mxu1 }
 0x2b0   :  { %v6516_v0 = vadd.f32 %v6470_v52, %v6375_v44  ;;  %v6472_v54 = vpop.f32.mrb[178].mxu0  ;;  %v6512_v55 = vpop.f32.mrb[178].mxu1 }
 0x2b1   :  { %v6473_v56 = vpop.f32.mrb[179].mxu0  ;;  %v7955_v57 = vpop.f32.mrb[179].mxu1 }
 0x2b6   :  { %v6609_v58 = vpop.f32.mrb[180].mxu0  ;;  %v6650_v59 = vpop.f32.mrb[180].mxu1 }
 0x2b7   :  { %v6656_v60 = vadd.f32 %v6609_v58, %v6515_v51  ;;  %v6658_v61 = vadd.f32 %v6650_v59, %v6517_v1  ;;  %v6611_v62 = vpop.f32.mrb[181].mxu0  ;;  %v7962_v63 = vpop.f32.mrb[181].mxu1 }
 0x2b8   :  { %v6657_v2 = vadd.f32 %v6611_v62, %v6516_v0  ;;  %v6613_v3 = vpop.f32.mrb[182].mxu0  ;;  %v6653_v4 = vpop.f32.mrb[182].mxu1  ;;  %v8532_v62 = vmov 1983009808  }
 0x2b9   :  { %v6614_v5 = vpop.f32.mrb[183].mxu0  ;;  %v7963_v6 = vpop.f32.mrb[183].mxu1  ;;  %v7035_v63 = vunpack.c.l.s4 %v8532_v62 }
 0x2be   :  { %v6750_v9 = vpop.f32.mrb[184].mxu0  ;;  %v6791_v10 = vpop.f32.mrb[184].mxu1 }
 0x2bf   :  { %v6797_v11 = vadd.f32 %v6750_v9, %v6656_v60  ;;  %v6799_v12 = vadd.f32 %v6791_v10, %v6658_v61  ;;  %v6752_v13 = vpop.f32.mrb[185].mxu0  ;;  %v7970_v14 = vpop.f32.mrb[185].mxu1  ;;  %v6961_v60 = vld [vmem:[#allocation9] sm:$0x7]  ;;  %v6962_v61 = vld [vmem:[#allocation11] sm:$0x7] }
 0x2c0   :  { %v6798_v15 = vadd.f32 %v6752_v13, %v6657_v2  ;;  %v6754_v16 = vpop.f32.mrb[186].mxu0  ;;  %v6794_v17 = vpop.f32.mrb[186].mxu1  ;;  %v6996_v2 = vrot.slane %v6961_v60, %v9047_v20  ;;  %v7000_v3 = vrot.slane %v6961_v60, %v9053_v23  ;;  %v7004_v4 = vrot.slane %v6961_v60, %v9050_v22 }
 0x2c1   :  { %v6755_v18 = vpop.f32.mrb[187].mxu0  ;;  %v7971_v19 = vpop.f32.mrb[187].mxu1  ;;  %v7015_v6 = vrot.slane %v6962_v61, %v9047_v20  ;;  %v7019_v7 = vrot.slane %v6962_v61, %v9053_v23  ;;  %v7023_v9 = vrot.slane %v6962_v61, %v9050_v22  ;;  %v7036_v13 = vunpack.c.0.s8 %v7035_v63 }
 0x2c3   :  { %v7039_v21 = vsub.s32 %v7036_v13, %v9044_v8 }
 0x2c6   :  { %v6891_v25 = vpop.f32.mrb[188].mxu0  ;;  %v6932_v26 = vpop.f32.mrb[188].mxu1 }
 0x2c7   :  { %v6938_v29 = vadd.f32 %v6891_v25, %v6797_v11  ;;  %v6940_v30 = vadd.f32 %v6932_v26, %v6799_v12  ;;  %v6893_v31 = vpop.f32.mrb[189].mxu0  ;;  %v7978_v32 = vpop.f32.mrb[189].mxu1 }
 0x2c8   :  { %v6939_v33 = vadd.f32 %v6893_v31, %v6798_v15  ;;  %v6895_v34 = vpop.f32.mrb[190].mxu0  ;;  %v6935_v35 = vpop.f32.mrb[190].mxu1 }
 0x2c9   :  { %v6958_v36 = vadd.f32 %v6946_v24, %v6938_v29  ;;  %v6896_v37 = vpop.f32.mrb[191].mxu0  ;;  %v7979_v38 = vpop.f32.mrb[191].mxu1  ;;  %v6960_v39 = vadd.f32 %v6954_v27, %v6940_v30 }
 0x2ca   :  { %v6959_v40 = vadd.f32 %v6950_v28, %v6939_v33 }
 0x2cb   :  { %v6964_v41 = vsel %vm6963_vm3, %v6958_v36, 0.0  ;;  %v6967_v44 = vsel %vm6963_vm3, %v6960_v39, 0.0 }
 0x2cc   :  { %v6965_v42 = vsel %vm6963_vm3, %v6959_v40, 0.0 }
 0x2cd   :  { %v6966_v43 = vadd.f32 %v6965_v42, %v6964_v41 }
 0x2cf   :  { %v6968_v45 = vadd.f32 %v6967_v44, %v6966_v43 }
 0x2d1   :  { %6969 = vadd.xlane.f32.xlu0 %v6968_v45 }
 0x35e   :  { %v6970_v46 = vpop.xlane.xlu0 %6969 }
 0x35f   :  { %v6972_v47 = vmul.f32 0.0026041667, %v6970_v46 }
 0x361   :  { %v6973_v48 = vsub.f32 %v6958_v36, %v6972_v47  ;;  %v6974_v49 = vsub.f32 %v6959_v40, %v6972_v47  ;;  %v6975_v50 = vsub.f32 %v6960_v39, %v6972_v47 }
 0x363   :  { %v6976_v51 = vmul.f32 %v6973_v48, %v6973_v48  ;;  %v6977_v1 = vmul.f32 %v6974_v49, %v6974_v49  ;;  %v6978_v52 = vmul.f32 %v6975_v50, %v6975_v50 }
 0x365   :  { %v6979_v53 = vsel %vm6963_vm3, %v6976_v51, 0.0  ;;  %v6980_v0 = vsel %vm6963_vm3, %v6977_v1, 0.0  ;;  %v6982_v55 = vsel %vm6963_vm3, %v6978_v52, 0.0 }
 0x366   :  { %v6981_v54 = vadd.f32 %v6980_v0, %v6979_v53 }
 0x368   :  { %v6983_v56 = vadd.f32 %v6982_v55, %v6981_v54 }
 0x36a   :  { %6984 = vadd.xlane.f32.xlu0 %v6983_v56 }
 0x3f7   :  { %v6985_v57 = vpop.xlane.xlu0 %6984 }
 0x3f8   :  { %v6986_v58 = vmul.f32 0.0026041667, %v6985_v57 }
 0x3fa   :  { %v6987_v59 = vadd.f32 1e-06, %v6986_v58 }
 0x3fc   :  { %8378 = vrsqrt.f32 %v6987_v59 }
 0x406   :  { %v8379_v5 = vpop.eup %8378 }
 0x407   :  { %v6989_v10 = vmul.f32 %v8379_v5, %v6973_v48  ;;  %v6990_v11 = vmul.f32 %v8379_v5, %v6974_v49  ;;  %v6991_v12 = vmul.f32 %v8379_v5, %v6975_v50 }
 0x409   :  { %v7008_v14 = vmul.f32 %v6996_v2, %v6989_v10  ;;  %v7009_v15 = vmul.f32 %v7000_v3, %v6990_v11  ;;  %v7010_v16 = vmul.f32 %v7004_v4, %v6991_v12 }
 0x40b   :  { %v7027_v17 = vadd.f32 %v7015_v6, %v7008_v14  ;;  %v7028_v18 = vadd.f32 %v7019_v7, %v7009_v15  ;;  %v7029_v19 = vadd.f32 %v7023_v9, %v7010_v16 }
 0x40d   :  { %v7033_v24 = vcombine.low %v7027_v17, %v7028_v18  ;;  %v7047_v25 = vrot.slane %v7029_v19, %v7039_v21 }
 0x40f   :  { %v7040_v20 = vrot.slane %v7033_v24, %v7039_v21 }
 0x411   :  { %v7048_v23 = vcombine.low %v7040_v20, %v7047_v25 }
 0x413   :  { %7050 = vst [vmem:[#allocation12] sm:$0x3f] %v7048_v23 }
 0x414   :  { %8501 = shalt.err (!%p8498_p2)
}
 0x415   :  { %s8502_s8 = scalar_lea.hbm %s9088_s5, 96 }
 0x416   :  { %p8503_p3 = scmp.ne.s32.totalorder %s9088_s5, %s8502_s8  ;;  %p8506_p4 = scmp.lt.u32.totalorder %s8502_s8, %s9088_s5 }
 0x418   :  { %p8508_p5 = pnand %p8506_p4, %p8503_p3 }
 0x41a   :  { %8511 = shalt.err (!%p8508_p5)
}
 0x41b   :  { %7060 = dma.vmem_to_hbm [thread:$0]  %s7058_s29, 96, %s9088_s5, [#allocation5]  }
 0x41c   :  { %8518 = dma.done.wait [#allocation5], 96  }
 0x41d   :  { %8519 = vsyncadd [#allocation5], 4294967200 }
 0x41e   :  { %7064 = vsyncpa [#allocation4], 1 }
 0x41f   :  { %7065 = vsyncpa [#allocation7], 1 }
 0x420   :  { %7066 = vsyncpa [#allocation10], 1 }
 0x421   :  { %7067 = vsyncpa [#allocation5], 1 }

</bundles_post_ra>
